<compile_context>
chip_gen: v6e
topology: v6e:2x2x1
jax: 0.10.0
libtpu: 0.0.40
codegen_flags: <defaults>
</compile_context>

<pallas_src>
import math

import jax
import jax.numpy as jnp
from jax import lax
from jax.experimental import pallas as pl
from jax.experimental.pallas import tpu as pltpu

# ---- model hyper-parameters (small, consistent with an enc-dec model) ----
V = 64          # shared src/trg vocab size (trg_embed = src_embed in Model)
VP = 128        # vocab padded to lane width for a lane-dense decode output
D = 32          # model dim
H = 4           # attention heads
DH = D // H     # head dim
FF = 64         # feed-forward dim
PAD, BOS, EOS = 1, 2, 3     # Vocabulary.stoi[PAD/BOS/EOS]
LN_EPS = 1e-5               # torch nn.LayerNorm default
NEG = -1e9                  # additive mask value (stands in for -inf)

N_ENC_W = 14                # number of encoder weight tensors (flat order)
N_DEC_W = 22                # number of decoder weight tensors (flat order)


# ----------------------- in-kernel building blocks -----------------------

def _ln(x, g, b):
    """LayerNorm over the last dim. x: [R, D]; g, b: [1, D]."""
    mu = jnp.mean(x, axis=-1, keepdims=True)
    var = jnp.mean((x - mu) ** 2, axis=-1, keepdims=True)
    return (x - mu) * lax.rsqrt(var + LN_EPS) * g + b


def _split_heads(x):
    """[R, D] -> [H, R, DH] (lane slices stacked along a new leading axis)."""
    return jnp.stack([x[:, h * DH:(h + 1) * DH] for h in range(H)], axis=0)


def _mha(q, k, v, wo_h, mask_adds, tq, tk):
    """Head-batched multi-head attention (1/sqrt(DH) already folded into the
    Q projection weights).  Per batch element (static B loop):
      one [H,tq,DH]x[H,tk,DH] score dot_general, ONE softmax over [H,tq,tk],
      one [H,tq,tk]x[H,tk,DH] context dot_general, one batched output
      projection with wo_h[h] = Wo[h*DH:(h+1)*DH, :].

    q: [B*tq, D]; k, v: [B*tk, D]; wo_h: [H, DH, D];
    mask_adds[b]: additive mask broadcastable to [H, tq, tk].
    Returns [B*tq, D] (output-projection bias added by caller).
    """
    nb = q.shape[0] // tq
    outs = []
    for b in range(nb):
        qh = _split_heads(q[b * tq:(b + 1) * tq])             # [H, tq, DH]
        kh = _split_heads(k[b * tk:(b + 1) * tk])             # [H, tk, DH]
        vh = _split_heads(v[b * tk:(b + 1) * tk])             # [H, tk, DH]
        s = lax.dot_general(qh, kh, (((2,), (2,)), ((0,), (0,))),
                            preferred_element_type=jnp.float32)   # [H,tq,tk]
        s = s + mask_adds[b]
        s = s - jnp.max(s, axis=-1, keepdims=True)
        p = jnp.exp(s)
        p = p * pl.reciprocal(jnp.sum(p, axis=-1, keepdims=True), approx=True)
        ctx = lax.dot_general(p, vh, (((2,), (1,)), ((0,), (0,))),
                              preferred_element_type=jnp.float32)  # [H,tq,DH]
        oh = lax.dot_general(ctx, wo_h, (((2,), (1,)), ((0,), (0,))),
                             preferred_element_type=jnp.float32)   # [H,tq,D]
        o = oh[0]
        for h in range(1, H):
            o = o + oh[h]
        outs.append(o)
    return jnp.concatenate(outs, axis=0) if nb > 1 else outs[0]


def _embed(tok_col, emb, pe, nb):
    """Embeddings(scale=True) + sinusoidal PE, fused in-kernel.
    tok_col: [nb*L, 1] int32; emb: [V, D]; pe: [L, D]. Returns [nb*L, D]."""
    rows = tok_col.shape[0]
    onehot = (lax.broadcasted_iota(jnp.int32, (rows, V), 1) == tok_col
              ).astype(jnp.float32)
    x = jnp.dot(onehot, emb, preferred_element_type=jnp.float32) * math.sqrt(D)
    pe_rows = pe if nb == 1 else jnp.concatenate([pe] * nb, axis=0)
    return x + pe_rows


def _pad_mask_add(valid_row):
    """[1, L] validity (1.0 valid / 0.0 pad) -> additive mask [1, 1, L]."""
    return ((valid_row - 1.0) * 1e9)[None]


def _encoder_stack(x, src_valid, w):
    """TransformerEncoder (1 layer + final LN). x: [B*S, D]; src_valid: [B,S]."""
    (ln1_g, ln1_b, wqkv, bqkv, wo_h, bo,
     fln_g, fln_b, w1, b1, w2, b2, oln_g, oln_b) = w
    nb, s_len = src_valid.shape
    masks = [_pad_mask_add(src_valid[b:b + 1, :]) for b in range(nb)]

    # --- self-attention sublayer (pre-LN) ---
    xn = _ln(x, ln1_g, ln1_b)
    qkv = jnp.dot(xn, wqkv, preferred_element_type=jnp.float32) + bqkv
    x = x + _mha(qkv[:, :D], qkv[:, D:2 * D], qkv[:, 2 * D:],
                 wo_h, masks, s_len, s_len) + bo

    # --- position-wise feed-forward sublayer ---
    xn = _ln(x, fln_g, fln_b)
    hdn = jnp.maximum(
        jnp.dot(xn, w1, preferred_element_type=jnp.float32) + b1, 0.0)
    x = x + jnp.dot(hdn, w2, preferred_element_type=jnp.float32) + b2

    # --- final encoder LayerNorm ---
    return _ln(x, oln_g, oln_b)


def _decoder_stack(x, mem, src_valid, trg_valid, w, w_out):
    """TransformerDecoder (1 layer + final LN + output proj).
    x: [B*T, D]; mem: [B*S, D]. Returns (padded logits [B*T, VP], att [B*T, D])."""
    (ln1_g, ln1_b, s_wqkv, s_bqkv, s_wo_h, s_bo,
     ln2_g, ln2_b, c_wq, c_bq, c_wkv, c_bkv, c_wo_h, c_bo,
     fln_g, fln_b, w1, b1, w2, b2, oln_g, oln_b) = w
    nb, t_len = trg_valid.shape

    # masks built once per call (single-step grid)
    row = lax.broadcasted_iota(jnp.int32, (t_len, t_len), 0)
    col = lax.broadcasted_iota(jnp.int32, (t_len, t_len), 1)
    causal = jnp.where(col <= row, 0.0, NEG).astype(jnp.float32)
    self_masks = [(((trg_valid[b:b + 1, :] - 1.0) * 1e9) + causal)[None]
                  for b in range(nb)]
    cross_masks = [_pad_mask_add(src_valid[b:b + 1, :]) for b in range(nb)]
    s_len = src_valid.shape[1]

    # --- masked self-attention sublayer ---
    xn = _ln(x, ln1_g, ln1_b)
    qkv = jnp.dot(xn, s_wqkv, preferred_element_type=jnp.float32) + s_bqkv
    x = x + _mha(qkv[:, :D], qkv[:, D:2 * D], qkv[:, 2 * D:],
                 s_wo_h, self_masks, t_len, t_len) + s_bo

    # --- source-target (cross) attention sublayer ---
    xn = _ln(x, ln2_g, ln2_b)
    q = jnp.dot(xn, c_wq, preferred_element_type=jnp.float32) + c_bq
    kv = jnp.dot(mem, c_wkv, preferred_element_type=jnp.float32) + c_bkv
    x = x + _mha(q, kv[:, :D], kv[:, D:], c_wo_h,
                 cross_masks, t_len, s_len) + c_bo

    # --- position-wise feed-forward sublayer ---
    xn = _ln(x, fln_g, fln_b)
    hdn = jnp.maximum(
        jnp.dot(xn, w1, preferred_element_type=jnp.float32) + b1, 0.0)
    x = x + jnp.dot(hdn, w2, preferred_element_type=jnp.float32) + b2

    # --- final decoder LayerNorm + (padded, lane-dense) output projection ---
    att = _ln(x, oln_g, oln_b)                               # att_vectors
    logits = jnp.dot(att, w_out, preferred_element_type=jnp.float32)
    vcol = lax.broadcasted_iota(jnp.int32, logits.shape, 1)
    logits = jnp.where(vcol < V, logits, NEG)                # kill padded lanes
    return logits, att


# ------------------------------ fused kernels ------------------------------

def _loss_kernel(*refs):
    """Embedding + encoder + decoder + log_softmax + masked NLL -> (1,1)."""
    (src_tok_ref, trg_tok_ref, lab_ref, src_valid_ref, trg_valid_ref,
     emb_ref, pe_s_ref, pe_t_ref) = refs[:8]
    i = 8
    enc_w = tuple(r[...] for r in refs[i:i + N_ENC_W]); i += N_ENC_W
    dec_w = tuple(r[...] for r in refs[i:i + N_DEC_W]); i += N_DEC_W
    w_out = refs[i][...]; i += 1
    loss_ref = refs[i]

    src_valid = src_valid_ref[...]
    trg_valid = trg_valid_ref[...]
    emb = emb_ref[...]
    nb = src_valid.shape[0]

    x_src = _embed(src_tok_ref[...], emb, pe_s_ref[...], nb)      # [B*S, D]
    mem = _encoder_stack(x_src, src_valid, enc_w)                 # [B*S, D]

    x_trg = _embed(trg_tok_ref[...], emb, pe_t_ref[...], nb)      # [B*T, D]
    logits, _ = _decoder_stack(x_trg, mem, src_valid, trg_valid, dec_w, w_out)

    # log_softmax + NLL (XentLoss, smoothing=0) over non-pad targets, in-kernel
    z = logits - jnp.max(logits, axis=-1, keepdims=True)
    logp = z - jnp.log(jnp.sum(jnp.exp(z), axis=-1, keepdims=True))
    lab = lab_ref[...]                                             # [B*T, 1]
    lab_oh = lax.broadcasted_iota(jnp.int32, logp.shape, 1) == lab
    valid = (lab != PAD).astype(jnp.float32)                       # [B*T, 1]
    picked = jnp.sum(jnp.where(lab_oh, logp, 0.0), axis=-1, keepdims=True)
    loss_ref[...] = -jnp.sum(picked * valid, axis=0, keepdims=True)


def _encode_kernel(*refs):
    """Embedding + full TransformerEncoder for the whole batch (one block)."""
    src_tok_ref, src_valid_ref, emb_ref, pe_s_ref = refs[:4]
    enc_w = tuple(r[...] for r in refs[4:4 + N_ENC_W])
    o_ref = refs[4 + N_ENC_W]

    src_valid = src_valid_ref[...]
    nb, s_len = src_valid.shape
    x = _embed(src_tok_ref[...], emb_ref[...], pe_s_ref[...], nb)
    out = _encoder_stack(x, src_valid, enc_w)
    o_ref[...] = out.reshape(nb, s_len, D)


def _decode_kernel(*refs):
    """Embedding + full TransformerDecoder + output layer for the whole batch."""
    (trg_tok_ref, mem_ref, src_valid_ref, trg_valid_ref,
     emb_ref, pe_t_ref) = refs[:6]
    i = 6
    dec_w = tuple(r[...] for r in refs[i:i + N_DEC_W]); i += N_DEC_W
    w_out = refs[i][...]; i += 1
    logits_ref, att_ref = refs[i], refs[i + 1]

    src_valid = src_valid_ref[...]
    trg_valid = trg_valid_ref[...]
    nb, t_len = trg_valid.shape
    s_len = src_valid.shape[1]
    mem = mem_ref[...].reshape(nb * s_len, D)
    x = _embed(trg_tok_ref[...], emb_ref[...], pe_t_ref[...], nb)
    logits, att = _decoder_stack(x, mem, src_valid, trg_valid, dec_w, w_out)
    logits_ref[...] = logits.reshape(nb, t_len, VP)
    att_ref[...] = att.reshape(nb, t_len, D)


# --------------------------- pallas_call wrappers ---------------------------

def _full_spec(shape):
    """Whole-array block (single grid step, everything VMEM-resident)."""
    shp = tuple(int(s) for s in shape)
    n = len(shp)
    return pl.BlockSpec(shp, lambda *_: (0,) * n)


def _enc_weights(params):
    e = params['enc']; a, f = e['attn'], e['ffn']
    return [e['ln1_g'], e['ln1_b'], a['wqkv'], a['bqkv'], a['wo_h'], a['bo'],
            f['ln_g'], f['ln_b'], f['w1'], f['b1'], f['w2'], f['b2'],
            params['enc_ln_g'], params['enc_ln_b']]


def _dec_weights(params):
    d = params['dec']; s, c, f = d['self_attn'], d['cross_attn'], d['ffn']
    return [d['ln1_g'], d['ln1_b'], s['wqkv'], s['bqkv'], s['wo_h'], s['bo'],
            d['ln2_g'], d['ln2_b'], c['wq'], c['bq'], c['wkv'], c['bkv'],
            c['wo_h'], c['bo'],
            f['ln_g'], f['ln_b'], f['w1'], f['b1'], f['w2'], f['b2'],
            params['dec_ln_g'], params['dec_ln_b']]


def _call(kernel, inputs, out_shape, out_specs):
    return pl.pallas_call(
        kernel,
        out_shape=out_shape,
        grid=(1,),                               # single block, no megacore split
        in_specs=[_full_spec(a.shape) for a in inputs],
        out_specs=out_specs,
        compiler_params=pltpu.CompilerParams(
            dimension_semantics=("arbitrary",)),
    )(*inputs)


@jax.jit
def loss_forward(params, src, trg_input, trg, src_mask, trg_mask):
    b, s = src.shape
    t = trg_input.shape[1]
    inputs = ([src.reshape(b * s, 1).astype(jnp.int32),
               trg_input.reshape(b * t, 1).astype(jnp.int32),
               trg.reshape(b * t, 1).astype(jnp.int32),
               src_mask.reshape(b, s).astype(jnp.float32),
               trg_mask.reshape(b, t).astype(jnp.float32),
               params['embed'], params['pe'][:s], params['pe'][:t]]
              + _enc_weights(params) + _dec_weights(params)
              + [params['w_out']])
    loss = _call(_loss_kernel, inputs,
                 jax.ShapeDtypeStruct((1, 1), jnp.float32),
                 _full_spec((1, 1)))
    return loss[0, 0]


@jax.jit
def encode_forward(params, src, src_mask):
    b, s = src.shape
    inputs = ([src.reshape(b * s, 1).astype(jnp.int32),
               src_mask.reshape(b, s).astype(jnp.float32),
               params['embed'], params['pe'][:s]] + _enc_weights(params))
    return _call(_encode_kernel, inputs,
                 jax.ShapeDtypeStruct((b, s, D), jnp.float32),
                 _full_spec((b, s, D)))


@jax.jit
def decode_forward(params, trg_input, encoder_output, src_mask, trg_mask):
    b, t = trg_input.shape
    s = encoder_output.shape[1]
    inputs = ([trg_input.reshape(b * t, 1).astype(jnp.int32),
               encoder_output,
               src_mask.reshape(b, s).astype(jnp.float32),
               trg_mask.reshape(b, t).astype(jnp.float32),
               params['embed'], params['pe'][:t]]
              + _dec_weights(params) + [params['w_out']])
    return _call(_decode_kernel, inputs,
                 (jax.ShapeDtypeStruct((b, t, VP), jnp.float32),
                  jax.ShapeDtypeStruct((b, t, D), jnp.float32)),
                 (_full_spec((b, t, VP)), _full_spec((b, t, D))))


# ------------------------- model-level composition -------------------------

def model_forward(params, return_type=None, **kwargs):
    """Mirror of Model.forward: returns a 4-tuple."""
    if return_type is None:
        raise ValueError('Please specify return_type: {`loss`, `encode`, `decode`}.')
    return_tuple = (None, None, None, None)
    if 'loss' in return_type:
        # XentLoss (pad_index=PAD, smoothing=0): log_softmax + masked NLL sum,
        # fully fused with encode+decode into one pallas_call.
        # TODO(synk): vMF loss branch not implemented (XentLoss path only).
        batch_loss = loss_forward(params, kwargs['src'], kwargs['trg_input'],
                                  kwargs['trg'], kwargs['src_mask'],
                                  kwargs['trg_mask'])
        return_tuple = (batch_loss, None, None, None)
    elif return_type == 'encode':
        enc_out = encode_forward(params, kwargs['src'], kwargs['src_mask'])
        # TransformerEncoder returns (output, hidden=None)
        return_tuple = (enc_out, None, None, None)
    elif return_type == 'decode':
        logits_p, att = decode_forward(params, kwargs['trg_input'],
                                       kwargs['encoder_output'],
                                       kwargs['src_mask'], kwargs['trg_mask'])
        # TransformerDecoder returns (outputs, hidden, att_probs, att_vectors);
        # outputs are vocab-padded to 128 lanes -> slice back to V outside.
        return_tuple = (logits_p[:, :, :V], None, None, att)
    return return_tuple


# ------------------------------- param init -------------------------------

def init_params(key, max_len=64):
    ks = jax.random.split(key, 8)
    mk = lambda k, shp: jax.random.normal(k, shp, jnp.float32) * 0.02

    pos = jnp.arange(max_len)[:, None].astype(jnp.float32)
    div = jnp.exp(jnp.arange(0, D, 2).astype(jnp.float32)
                  * (-math.log(10000.0) / D))
    pe = jnp.zeros((max_len, D), jnp.float32)
    pe = pe.at[:, 0::2].set(jnp.sin(pos * div)).at[:, 1::2].set(jnp.cos(pos * div))

    ones_d = jnp.ones((1, D), jnp.float32)
    zeros_d = jnp.zeros((1, D), jnp.float32)
    scale = 1.0 / math.sqrt(DH)   # attention scale folded into Q weights (free)

    def self_attn_params(k):
        k1, k2, k3, k4 = jax.random.split(k, 4)
        wq, wk, wv, wo = (mk(k1, (D, D)), mk(k2, (D, D)),
                          mk(k3, (D, D)), mk(k4, (D, D)))
        # Q columns pre-scaled; q-bias is zero so no bias scaling needed.
        return {'wqkv': jnp.concatenate([wq * scale, wk, wv], axis=1),
                'bqkv': jnp.zeros((1, 3 * D), jnp.float32),
                'wo_h': wo.reshape(H, DH, D),        # per-head output proj
                'bo': zeros_d}

    def cross_attn_params(k):
        k1, k2, k3, k4 = jax.random.split(k, 4)
        return {'wq': mk(k1, (D, D)) * scale, 'bq': zeros_d,
                'wkv': jnp.concatenate([mk(k2, (D, D)), mk(k3, (D, D))], axis=1),
                'bkv': jnp.zeros((1, 2 * D), jnp.float32),
                'wo_h': mk(k4, (D, D)).reshape(H, DH, D), 'bo': zeros_d}

    def ffn_params(k):
        k1, k2 = jax.random.split(k)
        return {'ln_g': ones_d, 'ln_b': zeros_d,
                'w1': mk(k1, (D, FF)), 'b1': jnp.zeros((1, FF), jnp.float32),
                'w2': mk(k2, (FF, D)), 'b2': zeros_d}

    # output layer (bias=False); pad vocab dim to 128 lanes with zero columns
    w_out = jnp.pad(mk(ks[6], (D, V)), ((0, 0), (0, VP - V)))

    return {
        'embed': mk(ks[0], (V, D)),
        'pe': pe,
        'enc': {'ln1_g': ones_d, 'ln1_b': zeros_d,
                'attn': self_attn_params(ks[1]), 'ffn': ffn_params(ks[2])},
        'enc_ln_g': ones_d, 'enc_ln_b': zeros_d,
        'dec': {'ln1_g': ones_d, 'ln1_b': zeros_d,
                'self_attn': self_attn_params(ks[3]),
                'ln2_g': ones_d, 'ln2_b': zeros_d,
                'cross_attn': cross_attn_params(ks[4]),
                'ffn': ffn_params(ks[5])},
        'dec_ln_g': ones_d, 'dec_ln_b': zeros_d,
        'w_out': w_out,
    }


# ---------------------------------- main ----------------------------------

if __name__ == "__main__":
    key = jax.random.PRNGKey(0)
    pk, sk, tk_ = jax.random.split(key, 3)
    params = init_params(pk)

    B, S, T = 2, 8, 8
    src = jax.random.randint(sk, (B, S), 4, V).astype(jnp.int32)
    src = src.at[1, 6:].set(PAD)                       # some padding
    trg = jax.random.randint(tk_, (B, T), 4, V).astype(jnp.int32)
    trg = trg.at[1, 5:].set(PAD).at[0, 7].set(EOS).at[1, 4].set(EOS)
    trg_input = jnp.concatenate(
        [jnp.full((B, 1), BOS, jnp.int32), trg[:, :-1]], axis=1)

    src_mask = (src != PAD)[:, None, :]                # [B, 1, S] bool
    trg_mask = (trg_input != PAD)[:, None, :]          # [B, 1, T] bool
    src_length = jnp.sum((src != PAD).astype(jnp.int32), axis=1)

    # loss path: single fused kernel (embed + encoder + decoder + NLL)
    batch_loss, _, _, _ = model_forward(
        params, return_type='loss', src=src, trg=trg, trg_input=trg_input,
        src_mask=src_mask, trg_mask=trg_mask, src_length=src_length)
    batch_loss = jax.block_until_ready(batch_loss)

    # encode path
    enc_out, enc_hidden, _, _ = model_forward(
        params, return_type='encode', src=src, src_length=src_length,
        src_mask=src_mask)
    enc_out = jax.block_until_ready(enc_out)

    # decode path
    dec_out, _, _, att_vectors = model_forward(
        params, return_type='decode', encoder_output=enc_out,
        encoder_hidden=None, src_mask=src_mask, trg_input=trg_input,
        unroll_steps=T, trg_mask=trg_mask)
    dec_out = jax.block_until_ready(dec_out)

    assert enc_out.shape == (B, S, D)
    assert dec_out.shape == (B, T, V)
    assert att_vectors.shape == (B, T, D)
    assert batch_loss.shape == () and bool(jnp.isfinite(batch_loss))
    print("KERNEL_OK")
</pallas_src>

<mosaic_0001>
module attributes {stable_mosaic.version = 11 : i64} {
  func.func @_loss_kernel(%arg0: i32, %arg1: memref<16x1xi32, #tpu.memory_space<vmem>>, %arg2: memref<16x1xi32, #tpu.memory_space<vmem>>, %arg3: memref<16x1xi32, #tpu.memory_space<vmem>>, %arg4: memref<2x8xf32, #tpu.memory_space<vmem>>, %arg5: memref<2x8xf32, #tpu.memory_space<vmem>>, %arg6: memref<64x32xf32, #tpu.memory_space<vmem>>, %arg7: memref<8x32xf32, #tpu.memory_space<vmem>>, %arg8: memref<8x32xf32, #tpu.memory_space<vmem>>, %arg9: memref<1x32xf32, #tpu.memory_space<vmem>>, %arg10: memref<1x32xf32, #tpu.memory_space<vmem>>, %arg11: memref<32x96xf32, #tpu.memory_space<vmem>>, %arg12: memref<1x96xf32, #tpu.memory_space<vmem>>, %arg13: memref<4x8x32xf32, #tpu.memory_space<vmem>>, %arg14: memref<1x32xf32, #tpu.memory_space<vmem>>, %arg15: memref<1x32xf32, #tpu.memory_space<vmem>>, %arg16: memref<1x32xf32, #tpu.memory_space<vmem>>, %arg17: memref<32x64xf32, #tpu.memory_space<vmem>>, %arg18: memref<1x64xf32, #tpu.memory_space<vmem>>, %arg19: memref<64x32xf32, #tpu.memory_space<vmem>>, %arg20: memref<1x32xf32, #tpu.memory_space<vmem>>, %arg21: memref<1x32xf32, #tpu.memory_space<vmem>>, %arg22: memref<1x32xf32, #tpu.memory_space<vmem>>, %arg23: memref<1x32xf32, #tpu.memory_space<vmem>>, %arg24: memref<1x32xf32, #tpu.memory_space<vmem>>, %arg25: memref<32x96xf32, #tpu.memory_space<vmem>>, %arg26: memref<1x96xf32, #tpu.memory_space<vmem>>, %arg27: memref<4x8x32xf32, #tpu.memory_space<vmem>>, %arg28: memref<1x32xf32, #tpu.memory_space<vmem>>, %arg29: memref<1x32xf32, #tpu.memory_space<vmem>>, %arg30: memref<1x32xf32, #tpu.memory_space<vmem>>, %arg31: memref<32x32xf32, #tpu.memory_space<vmem>>, %arg32: memref<1x32xf32, #tpu.memory_space<vmem>>, %arg33: memref<32x64xf32, #tpu.memory_space<vmem>>, %arg34: memref<1x64xf32, #tpu.memory_space<vmem>>, %arg35: memref<4x8x32xf32, #tpu.memory_space<vmem>>, %arg36: memref<1x32xf32, #tpu.memory_space<vmem>>, %arg37: memref<1x32xf32, #tpu.memory_space<vmem>>, %arg38: memref<1x32xf32, #tpu.memory_space<vmem>>, %arg39: memref<32x64xf32, #tpu.memory_space<vmem>>, %arg40: memref<1x64xf32, #tpu.memory_space<vmem>>, %arg41: memref<64x32xf32, #tpu.memory_space<vmem>>, %arg42: memref<1x32xf32, #tpu.memory_space<vmem>>, %arg43: memref<1x32xf32, #tpu.memory_space<vmem>>, %arg44: memref<1x32xf32, #tpu.memory_space<vmem>>, %arg45: memref<32x128xf32, #tpu.memory_space<vmem>>, %arg46: memref<1x1xf32, #tpu.memory_space<vmem>>) attributes {dimension_semantics = [#tpu.dimension_semantics<arbitrary>], iteration_bounds = array<i64: 1>, scalar_prefetch = 0 : i64, scratch_operands = 0 : i64, tpu.core_type = #tpu.core_type<tc>, window_params = [{pipeline_mode = #tpu.pipeline_mode<synchronous>, transform_indices = @transform_0, window_bounds = array<i64: 16, 1>}, {pipeline_mode = #tpu.pipeline_mode<synchronous>, transform_indices = @transform_1, window_bounds = array<i64: 16, 1>}, {pipeline_mode = #tpu.pipeline_mode<synchronous>, transform_indices = @transform_2, window_bounds = array<i64: 16, 1>}, {pipeline_mode = #tpu.pipeline_mode<synchronous>, transform_indices = @transform_3, window_bounds = array<i64: 2, 8>}, {pipeline_mode = #tpu.pipeline_mode<synchronous>, transform_indices = @transform_4, window_bounds = array<i64: 2, 8>}, {pipeline_mode = #tpu.pipeline_mode<synchronous>, transform_indices = @transform_5, window_bounds = array<i64: 64, 32>}, {pipeline_mode = #tpu.pipeline_mode<synchronous>, transform_indices = @transform_6, window_bounds = array<i64: 8, 32>}, {pipeline_mode = #tpu.pipeline_mode<synchronous>, transform_indices = @transform_7, window_bounds = array<i64: 8, 32>}, {pipeline_mode = #tpu.pipeline_mode<synchronous>, transform_indices = @transform_8, window_bounds = array<i64: 1, 32>}, {pipeline_mode = #tpu.pipeline_mode<synchronous>, transform_indices = @transform_9, window_bounds = array<i64: 1, 32>}, {pipeline_mode = #tpu.pipeline_mode<synchronous>, transform_indices = @transform_10, window_bounds = array<i64: 32, 96>}, {pipeline_mode = #tpu.pipeline_mode<synchronous>, transform_indices = @transform_11, window_bounds = array<i64: 1, 96>}, {pipeline_mode = #tpu.pipeline_mode<synchronous>, transform_indices = @transform_12, window_bounds = array<i64: 4, 8, 32>}, {pipeline_mode = #tpu.pipeline_mode<synchronous>, transform_indices = @transform_13, window_bounds = array<i64: 1, 32>}, {pipeline_mode = #tpu.pipeline_mode<synchronous>, transform_indices = @transform_14, window_bounds = array<i64: 1, 32>}, {pipeline_mode = #tpu.pipeline_mode<synchronous>, transform_indices = @transform_15, window_bounds = array<i64: 1, 32>}, {pipeline_mode = #tpu.pipeline_mode<synchronous>, transform_indices = @transform_16, window_bounds = array<i64: 32, 64>}, {pipeline_mode = #tpu.pipeline_mode<synchronous>, transform_indices = @transform_17, window_bounds = array<i64: 1, 64>}, {pipeline_mode = #tpu.pipeline_mode<synchronous>, transform_indices = @transform_18, window_bounds = array<i64: 64, 32>}, {pipeline_mode = #tpu.pipeline_mode<synchronous>, transform_indices = @transform_19, window_bounds = array<i64: 1, 32>}, {pipeline_mode = #tpu.pipeline_mode<synchronous>, transform_indices = @transform_20, window_bounds = array<i64: 1, 32>}, {pipeline_mode = #tpu.pipeline_mode<synchronous>, transform_indices = @transform_21, window_bounds = array<i64: 1, 32>}, {pipeline_mode = #tpu.pipeline_mode<synchronous>, transform_indices = @transform_22, window_bounds = array<i64: 1, 32>}, {pipeline_mode = #tpu.pipeline_mode<synchronous>, transform_indices = @transform_23, window_bounds = array<i64: 1, 32>}, {pipeline_mode = #tpu.pipeline_mode<synchronous>, transform_indices = @transform_24, window_bounds = array<i64: 32, 96>}, {pipeline_mode = #tpu.pipeline_mode<synchronous>, transform_indices = @transform_25, window_bounds = array<i64: 1, 96>}, {pipeline_mode = #tpu.pipeline_mode<synchronous>, transform_indices = @transform_26, window_bounds = array<i64: 4, 8, 32>}, {pipeline_mode = #tpu.pipeline_mode<synchronous>, transform_indices = @transform_27, window_bounds = array<i64: 1, 32>}, {pipeline_mode = #tpu.pipeline_mode<synchronous>, transform_indices = @transform_28, window_bounds = array<i64: 1, 32>}, {pipeline_mode = #tpu.pipeline_mode<synchronous>, transform_indices = @transform_29, window_bounds = array<i64: 1, 32>}, {pipeline_mode = #tpu.pipeline_mode<synchronous>, transform_indices = @transform_30, window_bounds = array<i64: 32, 32>}, {pipeline_mode = #tpu.pipeline_mode<synchronous>, transform_indices = @transform_31, window_bounds = array<i64: 1, 32>}, {pipeline_mode = #tpu.pipeline_mode<synchronous>, transform_indices = @transform_32, window_bounds = array<i64: 32, 64>}, {pipeline_mode = #tpu.pipeline_mode<synchronous>, transform_indices = @transform_33, window_bounds = array<i64: 1, 64>}, {pipeline_mode = #tpu.pipeline_mode<synchronous>, transform_indices = @transform_34, window_bounds = array<i64: 4, 8, 32>}, {pipeline_mode = #tpu.pipeline_mode<synchronous>, transform_indices = @transform_35, window_bounds = array<i64: 1, 32>}, {pipeline_mode = #tpu.pipeline_mode<synchronous>, transform_indices = @transform_36, window_bounds = array<i64: 1, 32>}, {pipeline_mode = #tpu.pipeline_mode<synchronous>, transform_indices = @transform_37, window_bounds = array<i64: 1, 32>}, {pipeline_mode = #tpu.pipeline_mode<synchronous>, transform_indices = @transform_38, window_bounds = array<i64: 32, 64>}, {pipeline_mode = #tpu.pipeline_mode<synchronous>, transform_indices = @transform_39, window_bounds = array<i64: 1, 64>}, {pipeline_mode = #tpu.pipeline_mode<synchronous>, transform_indices = @transform_40, window_bounds = array<i64: 64, 32>}, {pipeline_mode = #tpu.pipeline_mode<synchronous>, transform_indices = @transform_41, window_bounds = array<i64: 1, 32>}, {pipeline_mode = #tpu.pipeline_mode<synchronous>, transform_indices = @transform_42, window_bounds = array<i64: 1, 32>}, {pipeline_mode = #tpu.pipeline_mode<synchronous>, transform_indices = @transform_43, window_bounds = array<i64: 1, 32>}, {pipeline_mode = #tpu.pipeline_mode<synchronous>, transform_indices = @transform_44, window_bounds = array<i64: 32, 128>}, {pipeline_mode = #tpu.pipeline_mode<synchronous>, transform_indices = @transform_45, window_bounds = array<i64: 1, 1>}]} {
    %c0 = arith.constant 0 : index
    %c0_0 = arith.constant 0 : index
    %0 = vector.load %arg9[%c0, %c0_0] : memref<1x32xf32, #tpu.memory_space<vmem>>, vector<1x32xf32>
    %c0_1 = arith.constant 0 : index
    %c0_2 = arith.constant 0 : index
    %1 = vector.load %arg10[%c0_1, %c0_2] : memref<1x32xf32, #tpu.memory_space<vmem>>, vector<1x32xf32>
    %c0_3 = arith.constant 0 : index
    %c0_4 = arith.constant 0 : index
    %2 = vector.load %arg11[%c0_3, %c0_4] : memref<32x96xf32, #tpu.memory_space<vmem>>, vector<32x96xf32>
    %c0_5 = arith.constant 0 : index
    %c0_6 = arith.constant 0 : index
    %3 = vector.load %arg12[%c0_5, %c0_6] : memref<1x96xf32, #tpu.memory_space<vmem>>, vector<1x96xf32>
    %c0_7 = arith.constant 0 : index
    %c0_8 = arith.constant 0 : index
    %c0_9 = arith.constant 0 : index
    %4 = vector.load %arg13[%c0_7, %c0_8, %c0_9] : memref<4x8x32xf32, #tpu.memory_space<vmem>>, vector<4x8x32xf32>
    %c0_10 = arith.constant 0 : index
    %c0_11 = arith.constant 0 : index
    %5 = vector.load %arg14[%c0_10, %c0_11] : memref<1x32xf32, #tpu.memory_space<vmem>>, vector<1x32xf32>
    %c0_12 = arith.constant 0 : index
    %c0_13 = arith.constant 0 : index
    %6 = vector.load %arg15[%c0_12, %c0_13] : memref<1x32xf32, #tpu.memory_space<vmem>>, vector<1x32xf32>
    %c0_14 = arith.constant 0 : index
    %c0_15 = arith.constant 0 : index
    %7 = vector.load %arg16[%c0_14, %c0_15] : memref<1x32xf32, #tpu.memory_space<vmem>>, vector<1x32xf32>
    %c0_16 = arith.constant 0 : index
    %c0_17 = arith.constant 0 : index
    %8 = vector.load %arg17[%c0_16, %c0_17] : memref<32x64xf32, #tpu.memory_space<vmem>>, vector<32x64xf32>
    %c0_18 = arith.constant 0 : index
    %c0_19 = arith.constant 0 : index
    %9 = vector.load %arg18[%c0_18, %c0_19] : memref<1x64xf32, #tpu.memory_space<vmem>>, vector<1x64xf32>
    %c0_20 = arith.constant 0 : index
    %c0_21 = arith.constant 0 : index
    %10 = vector.load %arg19[%c0_20, %c0_21] : memref<64x32xf32, #tpu.memory_space<vmem>>, vector<64x32xf32>
    %c0_22 = arith.constant 0 : index
    %c0_23 = arith.constant 0 : index
    %11 = vector.load %arg20[%c0_22, %c0_23] : memref<1x32xf32, #tpu.memory_space<vmem>>, vector<1x32xf32>
    %c0_24 = arith.constant 0 : index
    %c0_25 = arith.constant 0 : index
    %12 = vector.load %arg21[%c0_24, %c0_25] : memref<1x32xf32, #tpu.memory_space<vmem>>, vector<1x32xf32>
    %c0_26 = arith.constant 0 : index
    %c0_27 = arith.constant 0 : index
    %13 = vector.load %arg22[%c0_26, %c0_27] : memref<1x32xf32, #tpu.memory_space<vmem>>, vector<1x32xf32>
    %c0_28 = arith.constant 0 : index
    %c0_29 = arith.constant 0 : index
    %14 = vector.load %arg23[%c0_28, %c0_29] : memref<1x32xf32, #tpu.memory_space<vmem>>, vector<1x32xf32>
    %c0_30 = arith.constant 0 : index
    %c0_31 = arith.constant 0 : index
    %15 = vector.load %arg24[%c0_30, %c0_31] : memref<1x32xf32, #tpu.memory_space<vmem>>, vector<1x32xf32>
    %c0_32 = arith.constant 0 : index
    %c0_33 = arith.constant 0 : index
    %16 = vector.load %arg25[%c0_32, %c0_33] : memref<32x96xf32, #tpu.memory_space<vmem>>, vector<32x96xf32>
    %c0_34 = arith.constant 0 : index
    %c0_35 = arith.constant 0 : index
    %17 = vector.load %arg26[%c0_34, %c0_35] : memref<1x96xf32, #tpu.memory_space<vmem>>, vector<1x96xf32>
    %c0_36 = arith.constant 0 : index
    %c0_37 = arith.constant 0 : index
    %c0_38 = arith.constant 0 : index
    %18 = vector.load %arg27[%c0_36, %c0_37, %c0_38] : memref<4x8x32xf32, #tpu.memory_space<vmem>>, vector<4x8x32xf32>
    %c0_39 = arith.constant 0 : index
    %c0_40 = arith.constant 0 : index
    %19 = vector.load %arg28[%c0_39, %c0_40] : memref<1x32xf32, #tpu.memory_space<vmem>>, vector<1x32xf32>
    %c0_41 = arith.constant 0 : index
    %c0_42 = arith.constant 0 : index
    %20 = vector.load %arg29[%c0_41, %c0_42] : memref<1x32xf32, #tpu.memory_space<vmem>>, vector<1x32xf32>
    %c0_43 = arith.constant 0 : index
    %c0_44 = arith.constant 0 : index
    %21 = vector.load %arg30[%c0_43, %c0_44] : memref<1x32xf32, #tpu.memory_space<vmem>>, vector<1x32xf32>
    %c0_45 = arith.constant 0 : index
    %c0_46 = arith.constant 0 : index
    %22 = vector.load %arg31[%c0_45, %c0_46] : memref<32x32xf32, #tpu.memory_space<vmem>>, vector<32x32xf32>
    %c0_47 = arith.constant 0 : index
    %c0_48 = arith.constant 0 : index
    %23 = vector.load %arg32[%c0_47, %c0_48] : memref<1x32xf32, #tpu.memory_space<vmem>>, vector<1x32xf32>
    %c0_49 = arith.constant 0 : index
    %c0_50 = arith.constant 0 : index
    %24 = vector.load %arg33[%c0_49, %c0_50] : memref<32x64xf32, #tpu.memory_space<vmem>>, vector<32x64xf32>
    %c0_51 = arith.constant 0 : index
    %c0_52 = arith.constant 0 : index
    %25 = vector.load %arg34[%c0_51, %c0_52] : memref<1x64xf32, #tpu.memory_space<vmem>>, vector<1x64xf32>
    %c0_53 = arith.constant 0 : index
    %c0_54 = arith.constant 0 : index
    %c0_55 = arith.constant 0 : index
    %26 = vector.load %arg35[%c0_53, %c0_54, %c0_55] : memref<4x8x32xf32, #tpu.memory_space<vmem>>, vector<4x8x32xf32>
    %c0_56 = arith.constant 0 : index
    %c0_57 = arith.constant 0 : index
    %27 = vector.load %arg36[%c0_56, %c0_57] : memref<1x32xf32, #tpu.memory_space<vmem>>, vector<1x32xf32>
    %c0_58 = arith.constant 0 : index
    %c0_59 = arith.constant 0 : index
    %28 = vector.load %arg37[%c0_58, %c0_59] : memref<1x32xf32, #tpu.memory_space<vmem>>, vector<1x32xf32>
    %c0_60 = arith.constant 0 : index
    %c0_61 = arith.constant 0 : index
    %29 = vector.load %arg38[%c0_60, %c0_61] : memref<1x32xf32, #tpu.memory_space<vmem>>, vector<1x32xf32>
    %c0_62 = arith.constant 0 : index
    %c0_63 = arith.constant 0 : index
    %30 = vector.load %arg39[%c0_62, %c0_63] : memref<32x64xf32, #tpu.memory_space<vmem>>, vector<32x64xf32>
    %c0_64 = arith.constant 0 : index
    %c0_65 = arith.constant 0 : index
    %31 = vector.load %arg40[%c0_64, %c0_65] : memref<1x64xf32, #tpu.memory_space<vmem>>, vector<1x64xf32>
    %c0_66 = arith.constant 0 : index
    %c0_67 = arith.constant 0 : index
    %32 = vector.load %arg41[%c0_66, %c0_67] : memref<64x32xf32, #tpu.memory_space<vmem>>, vector<64x32xf32>
    %c0_68 = arith.constant 0 : index
    %c0_69 = arith.constant 0 : index
    %33 = vector.load %arg42[%c0_68, %c0_69] : memref<1x32xf32, #tpu.memory_space<vmem>>, vector<1x32xf32>
    %c0_70 = arith.constant 0 : index
    %c0_71 = arith.constant 0 : index
    %34 = vector.load %arg43[%c0_70, %c0_71] : memref<1x32xf32, #tpu.memory_space<vmem>>, vector<1x32xf32>
    %c0_72 = arith.constant 0 : index
    %c0_73 = arith.constant 0 : index
    %35 = vector.load %arg44[%c0_72, %c0_73] : memref<1x32xf32, #tpu.memory_space<vmem>>, vector<1x32xf32>
    %c0_74 = arith.constant 0 : index
    %c0_75 = arith.constant 0 : index
    %36 = vector.load %arg45[%c0_74, %c0_75] : memref<32x128xf32, #tpu.memory_space<vmem>>, vector<32x128xf32>
    %c0_76 = arith.constant 0 : index
    %c0_77 = arith.constant 0 : index
    %37 = vector.load %arg4[%c0_76, %c0_77] : memref<2x8xf32, #tpu.memory_space<vmem>>, vector<2x8xf32>
    %c0_78 = arith.constant 0 : index
    %c0_79 = arith.constant 0 : index
    %38 = vector.load %arg5[%c0_78, %c0_79] : memref<2x8xf32, #tpu.memory_space<vmem>>, vector<2x8xf32>
    %c0_80 = arith.constant 0 : index
    %c0_81 = arith.constant 0 : index
    %39 = vector.load %arg6[%c0_80, %c0_81] : memref<64x32xf32, #tpu.memory_space<vmem>>, vector<64x32xf32>
    %c0_82 = arith.constant 0 : index
    %c0_83 = arith.constant 0 : index
    %40 = vector.load %arg1[%c0_82, %c0_83] : memref<16x1xi32, #tpu.memory_space<vmem>>, vector<16x1xi32>
    %c0_84 = arith.constant 0 : index
    %c0_85 = arith.constant 0 : index
    %41 = vector.load %arg7[%c0_84, %c0_85] : memref<8x32xf32, #tpu.memory_space<vmem>>, vector<8x32xf32>
    %42 = tpu.iota {dimensions = array<i32: 1>} : vector<16x64xi32>
    %43 = vector.broadcast %40 : vector<16x1xi32> to vector<16x64xi32>
    %44 = arith.cmpi eq, %42, %43 : vector<16x64xi32>
    %45 = arith.extui %44 : vector<16x64xi1> to vector<16x64xi32>
    %46 = arith.sitofp %45 : vector<16x64xi32> to vector<16x64xf32>
    %cst = arith.constant dense<0.000000e+00> : vector<16x32xf32>
    %47 = tpu.matmul %46, %39, %cst {dimension_numbers = #tpu.dot_dimension_numbers<[1], [0], [0], [1], [0, 0, 1, 1], [], []>} : vector<16x64xf32>, vector<64x32xf32>, vector<16x32xf32> -> vector<16x32xf32>
    %cst_86 = arith.constant 5.65685415 : f32
    %48 = vector.broadcast %cst_86 : f32 to vector<16x32xf32>
    %49 = arith.mulf %47, %48 : vector<16x32xf32>
    %50 = tpu.concatenate %41, %41 in 0 : vector<8x32xf32>, vector<8x32xf32> -> vector<16x32xf32>
    %51 = arith.addf %49, %50 : vector<16x32xf32>
    %52 = vector.extract_strided_slice %37 {offsets = [0, 0], sizes = [1, 8], strides = [1, 1]} : vector<2x8xf32> to vector<1x8xf32>
    %cst_87 = arith.constant 1.000000e+00 : f32
    %53 = vector.broadcast %cst_87 : f32 to vector<1x8xf32>
    %54 = arith.subf %52, %53 : vector<1x8xf32>
    %cst_88 = arith.constant 1.000000e+09 : f32
    %55 = vector.broadcast %cst_88 : f32 to vector<1x8xf32>
    %56 = arith.mulf %54, %55 : vector<1x8xf32>
    %57 = vector.shape_cast %56 : vector<1x8xf32> to vector<1x1x8xf32>
    %58 = vector.extract_strided_slice %37 {offsets = [1, 0], sizes = [1, 8], strides = [1, 1]} : vector<2x8xf32> to vector<1x8xf32>
    %cst_89 = arith.constant 1.000000e+00 : f32
    %59 = vector.broadcast %cst_89 : f32 to vector<1x8xf32>
    %60 = arith.subf %58, %59 : vector<1x8xf32>
    %cst_90 = arith.constant 1.000000e+09 : f32
    %61 = vector.broadcast %cst_90 : f32 to vector<1x8xf32>
    %62 = arith.mulf %60, %61 : vector<1x8xf32>
    %63 = vector.shape_cast %62 : vector<1x8xf32> to vector<1x1x8xf32>
    %cst_91 = arith.constant dense<0.000000e+00> : vector<16xf32>
    %64 = vector.multi_reduction <add>, %51, %cst_91 [1] : vector<16x32xf32> to vector<16xf32>
    %65 = vector.shape_cast %64 : vector<16xf32> to vector<16x1xf32>
    %cst_92 = arith.constant 3.200000e+01 : f32
    %66 = vector.broadcast %cst_92 : f32 to vector<16x1xf32>
    %67 = arith.divf %65, %66 : vector<16x1xf32>
    %68 = vector.broadcast %67 : vector<16x1xf32> to vector<16x32xf32>
    %69 = arith.subf %51, %68 : vector<16x32xf32>
    %70 = arith.mulf %69, %69 : vector<16x32xf32>
    %cst_93 = arith.constant dense<0.000000e+00> : vector<16xf32>
    %71 = vector.multi_reduction <add>, %70, %cst_93 [1] : vector<16x32xf32> to vector<16xf32>
    %72 = vector.shape_cast %71 : vector<16xf32> to vector<16x1xf32>
    %cst_94 = arith.constant 3.200000e+01 : f32
    %73 = vector.broadcast %cst_94 : f32 to vector<16x1xf32>
    %74 = arith.divf %72, %73 : vector<16x1xf32>
    %75 = vector.broadcast %67 : vector<16x1xf32> to vector<16x32xf32>
    %76 = arith.subf %51, %75 : vector<16x32xf32>
    %cst_95 = arith.constant 9.99999974E-6 : f32
    %77 = vector.broadcast %cst_95 : f32 to vector<16x1xf32>
    %78 = arith.addf %74, %77 : vector<16x1xf32>
    %79 = math.rsqrt %78 : vector<16x1xf32>
    %80 = vector.broadcast %79 : vector<16x1xf32> to vector<16x32xf32>
    %81 = arith.mulf %76, %80 : vector<16x32xf32>
    %82 = vector.broadcast %0 : vector<1x32xf32> to vector<16x32xf32>
    %83 = arith.mulf %81, %82 : vector<16x32xf32>
    %84 = vector.broadcast %1 : vector<1x32xf32> to vector<16x32xf32>
    %85 = arith.addf %83, %84 : vector<16x32xf32>
    %cst_96 = arith.constant dense<0.000000e+00> : vector<16x96xf32>
    %86 = tpu.matmul %85, %2, %cst_96 {dimension_numbers = #tpu.dot_dimension_numbers<[1], [0], [0], [1], [0, 0, 1, 1], [], []>} : vector<16x32xf32>, vector<32x96xf32>, vector<16x96xf32> -> vector<16x96xf32>
    %87 = vector.broadcast %3 : vector<1x96xf32> to vector<16x96xf32>
    %88 = arith.addf %86, %87 : vector<16x96xf32>
    %89 = vector.extract_strided_slice %88 {offsets = [0, 0], sizes = [16, 32], strides = [1, 1]} : vector<16x96xf32> to vector<16x32xf32>
    %90 = vector.extract_strided_slice %88 {offsets = [0, 32], sizes = [16, 32], strides = [1, 1]} : vector<16x96xf32> to vector<16x32xf32>
    %91 = vector.extract_strided_slice %88 {offsets = [0, 64], sizes = [16, 32], strides = [1, 1]} : vector<16x96xf32> to vector<16x32xf32>
    %92 = vector.extract_strided_slice %89 {offsets = [0, 0], sizes = [8, 32], strides = [1, 1]} : vector<16x32xf32> to vector<8x32xf32>
    %93 = vector.extract_strided_slice %92 {offsets = [0, 0], sizes = [8, 8], strides = [1, 1]} : vector<8x32xf32> to vector<8x8xf32>
    %94 = vector.extract_strided_slice %92 {offsets = [0, 8], sizes = [8, 8], strides = [1, 1]} : vector<8x32xf32> to vector<8x8xf32>
    %95 = vector.extract_strided_slice %92 {offsets = [0, 16], sizes = [8, 8], strides = [1, 1]} : vector<8x32xf32> to vector<8x8xf32>
    %96 = vector.extract_strided_slice %92 {offsets = [0, 24], sizes = [8, 8], strides = [1, 1]} : vector<8x32xf32> to vector<8x8xf32>
    %97 = vector.shape_cast %93 : vector<8x8xf32> to vector<1x8x8xf32>
    %98 = vector.shape_cast %94 : vector<8x8xf32> to vector<1x8x8xf32>
    %99 = vector.shape_cast %95 : vector<8x8xf32> to vector<1x8x8xf32>
    %100 = vector.shape_cast %96 : vector<8x8xf32> to vector<1x8x8xf32>
    %101 = tpu.concatenate %97, %98, %99, %100 in 0 : vector<1x8x8xf32>, vector<1x8x8xf32>, vector<1x8x8xf32>, vector<1x8x8xf32> -> vector<4x8x8xf32>
    %102 = vector.extract_strided_slice %90 {offsets = [0, 0], sizes = [8, 32], strides = [1, 1]} : vector<16x32xf32> to vector<8x32xf32>
    %103 = vector.extract_strided_slice %102 {offsets = [0, 0], sizes = [8, 8], strides = [1, 1]} : vector<8x32xf32> to vector<8x8xf32>
    %104 = vector.extract_strided_slice %102 {offsets = [0, 8], sizes = [8, 8], strides = [1, 1]} : vector<8x32xf32> to vector<8x8xf32>
    %105 = vector.extract_strided_slice %102 {offsets = [0, 16], sizes = [8, 8], strides = [1, 1]} : vector<8x32xf32> to vector<8x8xf32>
    %106 = vector.extract_strided_slice %102 {offsets = [0, 24], sizes = [8, 8], strides = [1, 1]} : vector<8x32xf32> to vector<8x8xf32>
    %107 = vector.shape_cast %103 : vector<8x8xf32> to vector<1x8x8xf32>
    %108 = vector.shape_cast %104 : vector<8x8xf32> to vector<1x8x8xf32>
    %109 = vector.shape_cast %105 : vector<8x8xf32> to vector<1x8x8xf32>
    %110 = vector.shape_cast %106 : vector<8x8xf32> to vector<1x8x8xf32>
    %111 = tpu.concatenate %107, %108, %109, %110 in 0 : vector<1x8x8xf32>, vector<1x8x8xf32>, vector<1x8x8xf32>, vector<1x8x8xf32> -> vector<4x8x8xf32>
    %112 = vector.extract_strided_slice %91 {offsets = [0, 0], sizes = [8, 32], strides = [1, 1]} : vector<16x32xf32> to vector<8x32xf32>
    %113 = vector.extract_strided_slice %112 {offsets = [0, 0], sizes = [8, 8], strides = [1, 1]} : vector<8x32xf32> to vector<8x8xf32>
    %114 = vector.extract_strided_slice %112 {offsets = [0, 8], sizes = [8, 8], strides = [1, 1]} : vector<8x32xf32> to vector<8x8xf32>
    %115 = vector.extract_strided_slice %112 {offsets = [0, 16], sizes = [8, 8], strides = [1, 1]} : vector<8x32xf32> to vector<8x8xf32>
    %116 = vector.extract_strided_slice %112 {offsets = [0, 24], sizes = [8, 8], strides = [1, 1]} : vector<8x32xf32> to vector<8x8xf32>
    %117 = vector.shape_cast %113 : vector<8x8xf32> to vector<1x8x8xf32>
    %118 = vector.shape_cast %114 : vector<8x8xf32> to vector<1x8x8xf32>
    %119 = vector.shape_cast %115 : vector<8x8xf32> to vector<1x8x8xf32>
    %120 = vector.shape_cast %116 : vector<8x8xf32> to vector<1x8x8xf32>
    %121 = tpu.concatenate %117, %118, %119, %120 in 0 : vector<1x8x8xf32>, vector<1x8x8xf32>, vector<1x8x8xf32>, vector<1x8x8xf32> -> vector<4x8x8xf32>
    %cst_97 = arith.constant dense<0.000000e+00> : vector<4x8x8xf32>
    %122 = tpu.matmul %101, %111, %cst_97 {dimension_numbers = #tpu.dot_dimension_numbers<[2], [2], [1], [1], [0, 0, 0, 1, 1, 1], [0], [0]>} : vector<4x8x8xf32>, vector<4x8x8xf32>, vector<4x8x8xf32> -> vector<4x8x8xf32>
    %123 = vector.broadcast %57 : vector<1x1x8xf32> to vector<4x8x8xf32>
    %124 = arith.addf %122, %123 : vector<4x8x8xf32>
    %cst_98 = arith.constant dense<0xFF800000> : vector<4x8xf32>
    %125 = vector.multi_reduction <maximumf>, %124, %cst_98 [2] : vector<4x8x8xf32> to vector<4x8xf32>
    %126 = vector.shape_cast %125 : vector<4x8xf32> to vector<4x8x1xf32>
    %127 = vector.broadcast %126 : vector<4x8x1xf32> to vector<4x8x8xf32>
    %128 = arith.subf %124, %127 : vector<4x8x8xf32>
    %129 = math.exp %128 : vector<4x8x8xf32>
    %cst_99 = arith.constant dense<0.000000e+00> : vector<4x8xf32>
    %130 = vector.multi_reduction <add>, %129, %cst_99 [2] : vector<4x8x8xf32> to vector<4x8xf32>
    %131 = vector.shape_cast %130 : vector<4x8xf32> to vector<4x8x1xf32>
    %132 = tpu.reciprocal %131 {approx = true} : vector<4x8x1xf32> -> vector<4x8x1xf32>
    %133 = vector.broadcast %132 : vector<4x8x1xf32> to vector<4x8x8xf32>
    %134 = arith.mulf %129, %133 : vector<4x8x8xf32>
    %cst_100 = arith.constant dense<0.000000e+00> : vector<4x8x8xf32>
    %135 = tpu.matmul %134, %121, %cst_100 {dimension_numbers = #tpu.dot_dimension_numbers<[2], [1], [1], [2], [0, 0, 0, 1, 1, 2], [0], [0]>} : vector<4x8x8xf32>, vector<4x8x8xf32>, vector<4x8x8xf32> -> vector<4x8x8xf32>
    %cst_101 = arith.constant dense<0.000000e+00> : vector<4x8x32xf32>
    %136 = tpu.matmul %135, %4, %cst_101 {dimension_numbers = #tpu.dot_dimension_numbers<[2], [1], [1], [2], [0, 0, 0, 1, 1, 2], [0], [0]>} : vector<4x8x8xf32>, vector<4x8x32xf32>, vector<4x8x32xf32> -> vector<4x8x32xf32>
    %137 = vector.extract_strided_slice %136 {offsets = [0, 0, 0], sizes = [1, 8, 32], strides = [1, 1, 1]} : vector<4x8x32xf32> to vector<1x8x32xf32>
    %138 = vector.shape_cast %137 : vector<1x8x32xf32> to vector<8x32xf32>
    %139 = vector.extract_strided_slice %136 {offsets = [1, 0, 0], sizes = [1, 8, 32], strides = [1, 1, 1]} : vector<4x8x32xf32> to vector<1x8x32xf32>
    %140 = vector.shape_cast %139 : vector<1x8x32xf32> to vector<8x32xf32>
    %141 = arith.addf %138, %140 : vector<8x32xf32>
    %142 = vector.extract_strided_slice %136 {offsets = [2, 0, 0], sizes = [1, 8, 32], strides = [1, 1, 1]} : vector<4x8x32xf32> to vector<1x8x32xf32>
    %143 = vector.shape_cast %142 : vector<1x8x32xf32> to vector<8x32xf32>
    %144 = arith.addf %141, %143 : vector<8x32xf32>
    %145 = vector.extract_strided_slice %136 {offsets = [3, 0, 0], sizes = [1, 8, 32], strides = [1, 1, 1]} : vector<4x8x32xf32> to vector<1x8x32xf32>
    %146 = vector.shape_cast %145 : vector<1x8x32xf32> to vector<8x32xf32>
    %147 = arith.addf %144, %146 : vector<8x32xf32>
    %148 = vector.extract_strided_slice %89 {offsets = [8, 0], sizes = [8, 32], strides = [1, 1]} : vector<16x32xf32> to vector<8x32xf32>
    %149 = vector.extract_strided_slice %148 {offsets = [0, 0], sizes = [8, 8], strides = [1, 1]} : vector<8x32xf32> to vector<8x8xf32>
    %150 = vector.extract_strided_slice %148 {offsets = [0, 8], sizes = [8, 8], strides = [1, 1]} : vector<8x32xf32> to vector<8x8xf32>
    %151 = vector.extract_strided_slice %148 {offsets = [0, 16], sizes = [8, 8], strides = [1, 1]} : vector<8x32xf32> to vector<8x8xf32>
    %152 = vector.extract_strided_slice %148 {offsets = [0, 24], sizes = [8, 8], strides = [1, 1]} : vector<8x32xf32> to vector<8x8xf32>
    %153 = vector.shape_cast %149 : vector<8x8xf32> to vector<1x8x8xf32>
    %154 = vector.shape_cast %150 : vector<8x8xf32> to vector<1x8x8xf32>
    %155 = vector.shape_cast %151 : vector<8x8xf32> to vector<1x8x8xf32>
    %156 = vector.shape_cast %152 : vector<8x8xf32> to vector<1x8x8xf32>
    %157 = tpu.concatenate %153, %154, %155, %156 in 0 : vector<1x8x8xf32>, vector<1x8x8xf32>, vector<1x8x8xf32>, vector<1x8x8xf32> -> vector<4x8x8xf32>
    %158 = vector.extract_strided_slice %90 {offsets = [8, 0], sizes = [8, 32], strides = [1, 1]} : vector<16x32xf32> to vector<8x32xf32>
    %159 = vector.extract_strided_slice %158 {offsets = [0, 0], sizes = [8, 8], strides = [1, 1]} : vector<8x32xf32> to vector<8x8xf32>
    %160 = vector.extract_strided_slice %158 {offsets = [0, 8], sizes = [8, 8], strides = [1, 1]} : vector<8x32xf32> to vector<8x8xf32>
    %161 = vector.extract_strided_slice %158 {offsets = [0, 16], sizes = [8, 8], strides = [1, 1]} : vector<8x32xf32> to vector<8x8xf32>
    %162 = vector.extract_strided_slice %158 {offsets = [0, 24], sizes = [8, 8], strides = [1, 1]} : vector<8x32xf32> to vector<8x8xf32>
    %163 = vector.shape_cast %159 : vector<8x8xf32> to vector<1x8x8xf32>
    %164 = vector.shape_cast %160 : vector<8x8xf32> to vector<1x8x8xf32>
    %165 = vector.shape_cast %161 : vector<8x8xf32> to vector<1x8x8xf32>
    %166 = vector.shape_cast %162 : vector<8x8xf32> to vector<1x8x8xf32>
    %167 = tpu.concatenate %163, %164, %165, %166 in 0 : vector<1x8x8xf32>, vector<1x8x8xf32>, vector<1x8x8xf32>, vector<1x8x8xf32> -> vector<4x8x8xf32>
    %168 = vector.extract_strided_slice %91 {offsets = [8, 0], sizes = [8, 32], strides = [1, 1]} : vector<16x32xf32> to vector<8x32xf32>
    %169 = vector.extract_strided_slice %168 {offsets = [0, 0], sizes = [8, 8], strides = [1, 1]} : vector<8x32xf32> to vector<8x8xf32>
    %170 = vector.extract_strided_slice %168 {offsets = [0, 8], sizes = [8, 8], strides = [1, 1]} : vector<8x32xf32> to vector<8x8xf32>
    %171 = vector.extract_strided_slice %168 {offsets = [0, 16], sizes = [8, 8], strides = [1, 1]} : vector<8x32xf32> to vector<8x8xf32>
    %172 = vector.extract_strided_slice %168 {offsets = [0, 24], sizes = [8, 8], strides = [1, 1]} : vector<8x32xf32> to vector<8x8xf32>
    %173 = vector.shape_cast %169 : vector<8x8xf32> to vector<1x8x8xf32>
    %174 = vector.shape_cast %170 : vector<8x8xf32> to vector<1x8x8xf32>
    %175 = vector.shape_cast %171 : vector<8x8xf32> to vector<1x8x8xf32>
    %176 = vector.shape_cast %172 : vector<8x8xf32> to vector<1x8x8xf32>
    %177 = tpu.concatenate %173, %174, %175, %176 in 0 : vector<1x8x8xf32>, vector<1x8x8xf32>, vector<1x8x8xf32>, vector<1x8x8xf32> -> vector<4x8x8xf32>
    %cst_102 = arith.constant dense<0.000000e+00> : vector<4x8x8xf32>
    %178 = tpu.matmul %157, %167, %cst_102 {dimension_numbers = #tpu.dot_dimension_numbers<[2], [2], [1], [1], [0, 0, 0, 1, 1, 1], [0], [0]>} : vector<4x8x8xf32>, vector<4x8x8xf32>, vector<4x8x8xf32> -> vector<4x8x8xf32>
    %179 = vector.broadcast %63 : vector<1x1x8xf32> to vector<4x8x8xf32>
    %180 = arith.addf %178, %179 : vector<4x8x8xf32>
    %cst_103 = arith.constant dense<0xFF800000> : vector<4x8xf32>
    %181 = vector.multi_reduction <maximumf>, %180, %cst_103 [2] : vector<4x8x8xf32> to vector<4x8xf32>
    %182 = vector.shape_cast %181 : vector<4x8xf32> to vector<4x8x1xf32>
    %183 = vector.broadcast %182 : vector<4x8x1xf32> to vector<4x8x8xf32>
    %184 = arith.subf %180, %183 : vector<4x8x8xf32>
    %185 = math.exp %184 : vector<4x8x8xf32>
    %cst_104 = arith.constant dense<0.000000e+00> : vector<4x8xf32>
    %186 = vector.multi_reduction <add>, %185, %cst_104 [2] : vector<4x8x8xf32> to vector<4x8xf32>
    %187 = vector.shape_cast %186 : vector<4x8xf32> to vector<4x8x1xf32>
    %188 = tpu.reciprocal %187 {approx = true} : vector<4x8x1xf32> -> vector<4x8x1xf32>
    %189 = vector.broadcast %188 : vector<4x8x1xf32> to vector<4x8x8xf32>
    %190 = arith.mulf %185, %189 : vector<4x8x8xf32>
    %cst_105 = arith.constant dense<0.000000e+00> : vector<4x8x8xf32>
    %191 = tpu.matmul %190, %177, %cst_105 {dimension_numbers = #tpu.dot_dimension_numbers<[2], [1], [1], [2], [0, 0, 0, 1, 1, 2], [0], [0]>} : vector<4x8x8xf32>, vector<4x8x8xf32>, vector<4x8x8xf32> -> vector<4x8x8xf32>
    %cst_106 = arith.constant dense<0.000000e+00> : vector<4x8x32xf32>
    %192 = tpu.matmul %191, %4, %cst_106 {dimension_numbers = #tpu.dot_dimension_numbers<[2], [1], [1], [2], [0, 0, 0, 1, 1, 2], [0], [0]>} : vector<4x8x8xf32>, vector<4x8x32xf32>, vector<4x8x32xf32> -> vector<4x8x32xf32>
    %193 = vector.extract_strided_slice %192 {offsets = [0, 0, 0], sizes = [1, 8, 32], strides = [1, 1, 1]} : vector<4x8x32xf32> to vector<1x8x32xf32>
    %194 = vector.shape_cast %193 : vector<1x8x32xf32> to vector<8x32xf32>
    %195 = vector.extract_strided_slice %192 {offsets = [1, 0, 0], sizes = [1, 8, 32], strides = [1, 1, 1]} : vector<4x8x32xf32> to vector<1x8x32xf32>
    %196 = vector.shape_cast %195 : vector<1x8x32xf32> to vector<8x32xf32>
    %197 = arith.addf %194, %196 : vector<8x32xf32>
    %198 = vector.extract_strided_slice %192 {offsets = [2, 0, 0], sizes = [1, 8, 32], strides = [1, 1, 1]} : vector<4x8x32xf32> to vector<1x8x32xf32>
    %199 = vector.shape_cast %198 : vector<1x8x32xf32> to vector<8x32xf32>
    %200 = arith.addf %197, %199 : vector<8x32xf32>
    %201 = vector.extract_strided_slice %192 {offsets = [3, 0, 0], sizes = [1, 8, 32], strides = [1, 1, 1]} : vector<4x8x32xf32> to vector<1x8x32xf32>
    %202 = vector.shape_cast %201 : vector<1x8x32xf32> to vector<8x32xf32>
    %203 = arith.addf %200, %202 : vector<8x32xf32>
    %204 = tpu.concatenate %147, %203 in 0 : vector<8x32xf32>, vector<8x32xf32> -> vector<16x32xf32>
    %205 = arith.addf %51, %204 : vector<16x32xf32>
    %206 = vector.broadcast %5 : vector<1x32xf32> to vector<16x32xf32>
    %207 = arith.addf %205, %206 : vector<16x32xf32>
    %cst_107 = arith.constant dense<0.000000e+00> : vector<16xf32>
    %208 = vector.multi_reduction <add>, %207, %cst_107 [1] : vector<16x32xf32> to vector<16xf32>
    %209 = vector.shape_cast %208 : vector<16xf32> to vector<16x1xf32>
    %cst_108 = arith.constant 3.200000e+01 : f32
    %210 = vector.broadcast %cst_108 : f32 to vector<16x1xf32>
    %211 = arith.divf %209, %210 : vector<16x1xf32>
    %212 = vector.broadcast %211 : vector<16x1xf32> to vector<16x32xf32>
    %213 = arith.subf %207, %212 : vector<16x32xf32>
    %214 = arith.mulf %213, %213 : vector<16x32xf32>
    %cst_109 = arith.constant dense<0.000000e+00> : vector<16xf32>
    %215 = vector.multi_reduction <add>, %214, %cst_109 [1] : vector<16x32xf32> to vector<16xf32>
    %216 = vector.shape_cast %215 : vector<16xf32> to vector<16x1xf32>
    %cst_110 = arith.constant 3.200000e+01 : f32
    %217 = vector.broadcast %cst_110 : f32 to vector<16x1xf32>
    %218 = arith.divf %216, %217 : vector<16x1xf32>
    %219 = vector.broadcast %211 : vector<16x1xf32> to vector<16x32xf32>
    %220 = arith.subf %207, %219 : vector<16x32xf32>
    %cst_111 = arith.constant 9.99999974E-6 : f32
    %221 = vector.broadcast %cst_111 : f32 to vector<16x1xf32>
    %222 = arith.addf %218, %221 : vector<16x1xf32>
    %223 = math.rsqrt %222 : vector<16x1xf32>
    %224 = vector.broadcast %223 : vector<16x1xf32> to vector<16x32xf32>
    %225 = arith.mulf %220, %224 : vector<16x32xf32>
    %226 = vector.broadcast %6 : vector<1x32xf32> to vector<16x32xf32>
    %227 = arith.mulf %225, %226 : vector<16x32xf32>
    %228 = vector.broadcast %7 : vector<1x32xf32> to vector<16x32xf32>
    %229 = arith.addf %227, %228 : vector<16x32xf32>
    %cst_112 = arith.constant dense<0.000000e+00> : vector<16x64xf32>
    %230 = tpu.matmul %229, %8, %cst_112 {dimension_numbers = #tpu.dot_dimension_numbers<[1], [0], [0], [1], [0, 0, 1, 1], [], []>} : vector<16x32xf32>, vector<32x64xf32>, vector<16x64xf32> -> vector<16x64xf32>
    %231 = vector.broadcast %9 : vector<1x64xf32> to vector<16x64xf32>
    %232 = arith.addf %230, %231 : vector<16x64xf32>
    %cst_113 = arith.constant 0.000000e+00 : f32
    %233 = vector.broadcast %cst_113 : f32 to vector<16x64xf32>
    %234 = arith.maximumf %232, %233 : vector<16x64xf32>
    %cst_114 = arith.constant dense<0.000000e+00> : vector<16x32xf32>
    %235 = tpu.matmul %234, %10, %cst_114 {dimension_numbers = #tpu.dot_dimension_numbers<[1], [0], [0], [1], [0, 0, 1, 1], [], []>} : vector<16x64xf32>, vector<64x32xf32>, vector<16x32xf32> -> vector<16x32xf32>
    %236 = arith.addf %207, %235 : vector<16x32xf32>
    %237 = vector.broadcast %11 : vector<1x32xf32> to vector<16x32xf32>
    %238 = arith.addf %236, %237 : vector<16x32xf32>
    %cst_115 = arith.constant dense<0.000000e+00> : vector<16xf32>
    %239 = vector.multi_reduction <add>, %238, %cst_115 [1] : vector<16x32xf32> to vector<16xf32>
    %240 = vector.shape_cast %239 : vector<16xf32> to vector<16x1xf32>
    %cst_116 = arith.constant 3.200000e+01 : f32
    %241 = vector.broadcast %cst_116 : f32 to vector<16x1xf32>
    %242 = arith.divf %240, %241 : vector<16x1xf32>
    %243 = vector.broadcast %242 : vector<16x1xf32> to vector<16x32xf32>
    %244 = arith.subf %238, %243 : vector<16x32xf32>
    %245 = arith.mulf %244, %244 : vector<16x32xf32>
    %cst_117 = arith.constant dense<0.000000e+00> : vector<16xf32>
    %246 = vector.multi_reduction <add>, %245, %cst_117 [1] : vector<16x32xf32> to vector<16xf32>
    %247 = vector.shape_cast %246 : vector<16xf32> to vector<16x1xf32>
    %cst_118 = arith.constant 3.200000e+01 : f32
    %248 = vector.broadcast %cst_118 : f32 to vector<16x1xf32>
    %249 = arith.divf %247, %248 : vector<16x1xf32>
    %250 = vector.broadcast %242 : vector<16x1xf32> to vector<16x32xf32>
    %251 = arith.subf %238, %250 : vector<16x32xf32>
    %cst_119 = arith.constant 9.99999974E-6 : f32
    %252 = vector.broadcast %cst_119 : f32 to vector<16x1xf32>
    %253 = arith.addf %249, %252 : vector<16x1xf32>
    %254 = math.rsqrt %253 : vector<16x1xf32>
    %255 = vector.broadcast %254 : vector<16x1xf32> to vector<16x32xf32>
    %256 = arith.mulf %251, %255 : vector<16x32xf32>
    %257 = vector.broadcast %12 : vector<1x32xf32> to vector<16x32xf32>
    %258 = arith.mulf %256, %257 : vector<16x32xf32>
    %259 = vector.broadcast %13 : vector<1x32xf32> to vector<16x32xf32>
    %260 = arith.addf %258, %259 : vector<16x32xf32>
    %c0_120 = arith.constant 0 : index
    %c0_121 = arith.constant 0 : index
    %261 = vector.load %arg2[%c0_120, %c0_121] : memref<16x1xi32, #tpu.memory_space<vmem>>, vector<16x1xi32>
    %c0_122 = arith.constant 0 : index
    %c0_123 = arith.constant 0 : index
    %262 = vector.load %arg8[%c0_122, %c0_123] : memref<8x32xf32, #tpu.memory_space<vmem>>, vector<8x32xf32>
    %263 = tpu.iota {dimensions = array<i32: 1>} : vector<16x64xi32>
    %264 = vector.broadcast %261 : vector<16x1xi32> to vector<16x64xi32>
    %265 = arith.cmpi eq, %263, %264 : vector<16x64xi32>
    %266 = arith.extui %265 : vector<16x64xi1> to vector<16x64xi32>
    %267 = arith.sitofp %266 : vector<16x64xi32> to vector<16x64xf32>
    %cst_124 = arith.constant dense<0.000000e+00> : vector<16x32xf32>
    %268 = tpu.matmul %267, %39, %cst_124 {dimension_numbers = #tpu.dot_dimension_numbers<[1], [0], [0], [1], [0, 0, 1, 1], [], []>} : vector<16x64xf32>, vector<64x32xf32>, vector<16x32xf32> -> vector<16x32xf32>
    %cst_125 = arith.constant 5.65685415 : f32
    %269 = vector.broadcast %cst_125 : f32 to vector<16x32xf32>
    %270 = arith.mulf %268, %269 : vector<16x32xf32>
    %271 = tpu.concatenate %262, %262 in 0 : vector<8x32xf32>, vector<8x32xf32> -> vector<16x32xf32>
    %272 = arith.addf %270, %271 : vector<16x32xf32>
    %273 = tpu.iota {dimensions = array<i32: 0>} : vector<8x8xi32>
    %274 = tpu.iota {dimensions = array<i32: 1>} : vector<8x8xi32>
    %275 = arith.cmpi sle, %274, %273 : vector<8x8xi32>
    %cst_126 = arith.constant 0.000000e+00 : f32
    %cst_127 = arith.constant -1.000000e+09 : f32
    %276 = vector.broadcast %cst_126 : f32 to vector<8x8xf32>
    %277 = vector.broadcast %cst_127 : f32 to vector<8x8xf32>
    %278 = arith.select %275, %276, %277 : vector<8x8xi1>, vector<8x8xf32>
    %279 = vector.extract_strided_slice %38 {offsets = [0, 0], sizes = [1, 8], strides = [1, 1]} : vector<2x8xf32> to vector<1x8xf32>
    %cst_128 = arith.constant 1.000000e+00 : f32
    %280 = vector.broadcast %cst_128 : f32 to vector<1x8xf32>
    %281 = arith.subf %279, %280 : vector<1x8xf32>
    %cst_129 = arith.constant 1.000000e+09 : f32
    %282 = vector.broadcast %cst_129 : f32 to vector<1x8xf32>
    %283 = arith.mulf %281, %282 : vector<1x8xf32>
    %284 = vector.broadcast %283 : vector<1x8xf32> to vector<8x8xf32>
    %285 = arith.addf %284, %278 : vector<8x8xf32>
    %286 = vector.shape_cast %285 : vector<8x8xf32> to vector<1x8x8xf32>
    %287 = vector.extract_strided_slice %38 {offsets = [1, 0], sizes = [1, 8], strides = [1, 1]} : vector<2x8xf32> to vector<1x8xf32>
    %cst_130 = arith.constant 1.000000e+00 : f32
    %288 = vector.broadcast %cst_130 : f32 to vector<1x8xf32>
    %289 = arith.subf %287, %288 : vector<1x8xf32>
    %cst_131 = arith.constant 1.000000e+09 : f32
    %290 = vector.broadcast %cst_131 : f32 to vector<1x8xf32>
    %291 = arith.mulf %289, %290 : vector<1x8xf32>
    %292 = vector.broadcast %291 : vector<1x8xf32> to vector<8x8xf32>
    %293 = arith.addf %292, %278 : vector<8x8xf32>
    %294 = vector.shape_cast %293 : vector<8x8xf32> to vector<1x8x8xf32>
    %295 = vector.extract_strided_slice %37 {offsets = [0, 0], sizes = [1, 8], strides = [1, 1]} : vector<2x8xf32> to vector<1x8xf32>
    %cst_132 = arith.constant 1.000000e+00 : f32
    %296 = vector.broadcast %cst_132 : f32 to vector<1x8xf32>
    %297 = arith.subf %295, %296 : vector<1x8xf32>
    %cst_133 = arith.constant 1.000000e+09 : f32
    %298 = vector.broadcast %cst_133 : f32 to vector<1x8xf32>
    %299 = arith.mulf %297, %298 : vector<1x8xf32>
    %300 = vector.shape_cast %299 : vector<1x8xf32> to vector<1x1x8xf32>
    %301 = vector.extract_strided_slice %37 {offsets = [1, 0], sizes = [1, 8], strides = [1, 1]} : vector<2x8xf32> to vector<1x8xf32>
    %cst_134 = arith.constant 1.000000e+00 : f32
    %302 = vector.broadcast %cst_134 : f32 to vector<1x8xf32>
    %303 = arith.subf %301, %302 : vector<1x8xf32>
    %cst_135 = arith.constant 1.000000e+09 : f32
    %304 = vector.broadcast %cst_135 : f32 to vector<1x8xf32>
    %305 = arith.mulf %303, %304 : vector<1x8xf32>
    %306 = vector.shape_cast %305 : vector<1x8xf32> to vector<1x1x8xf32>
    %cst_136 = arith.constant dense<0.000000e+00> : vector<16xf32>
    %307 = vector.multi_reduction <add>, %272, %cst_136 [1] : vector<16x32xf32> to vector<16xf32>
    %308 = vector.shape_cast %307 : vector<16xf32> to vector<16x1xf32>
    %cst_137 = arith.constant 3.200000e+01 : f32
    %309 = vector.broadcast %cst_137 : f32 to vector<16x1xf32>
    %310 = arith.divf %308, %309 : vector<16x1xf32>
    %311 = vector.broadcast %310 : vector<16x1xf32> to vector<16x32xf32>
    %312 = arith.subf %272, %311 : vector<16x32xf32>
    %313 = arith.mulf %312, %312 : vector<16x32xf32>
    %cst_138 = arith.constant dense<0.000000e+00> : vector<16xf32>
    %314 = vector.multi_reduction <add>, %313, %cst_138 [1] : vector<16x32xf32> to vector<16xf32>
    %315 = vector.shape_cast %314 : vector<16xf32> to vector<16x1xf32>
    %cst_139 = arith.constant 3.200000e+01 : f32
    %316 = vector.broadcast %cst_139 : f32 to vector<16x1xf32>
    %317 = arith.divf %315, %316 : vector<16x1xf32>
    %318 = vector.broadcast %310 : vector<16x1xf32> to vector<16x32xf32>
    %319 = arith.subf %272, %318 : vector<16x32xf32>
    %cst_140 = arith.constant 9.99999974E-6 : f32
    %320 = vector.broadcast %cst_140 : f32 to vector<16x1xf32>
    %321 = arith.addf %317, %320 : vector<16x1xf32>
    %322 = math.rsqrt %321 : vector<16x1xf32>
    %323 = vector.broadcast %322 : vector<16x1xf32> to vector<16x32xf32>
    %324 = arith.mulf %319, %323 : vector<16x32xf32>
    %325 = vector.broadcast %14 : vector<1x32xf32> to vector<16x32xf32>
    %326 = arith.mulf %324, %325 : vector<16x32xf32>
    %327 = vector.broadcast %15 : vector<1x32xf32> to vector<16x32xf32>
    %328 = arith.addf %326, %327 : vector<16x32xf32>
    %cst_141 = arith.constant dense<0.000000e+00> : vector<16x96xf32>
    %329 = tpu.matmul %328, %16, %cst_141 {dimension_numbers = #tpu.dot_dimension_numbers<[1], [0], [0], [1], [0, 0, 1, 1], [], []>} : vector<16x32xf32>, vector<32x96xf32>, vector<16x96xf32> -> vector<16x96xf32>
    %330 = vector.broadcast %17 : vector<1x96xf32> to vector<16x96xf32>
    %331 = arith.addf %329, %330 : vector<16x96xf32>
    %332 = vector.extract_strided_slice %331 {offsets = [0, 0], sizes = [16, 32], strides = [1, 1]} : vector<16x96xf32> to vector<16x32xf32>
    %333 = vector.extract_strided_slice %331 {offsets = [0, 32], sizes = [16, 32], strides = [1, 1]} : vector<16x96xf32> to vector<16x32xf32>
    %334 = vector.extract_strided_slice %331 {offsets = [0, 64], sizes = [16, 32], strides = [1, 1]} : vector<16x96xf32> to vector<16x32xf32>
    %335 = vector.extract_strided_slice %332 {offsets = [0, 0], sizes = [8, 32], strides = [1, 1]} : vector<16x32xf32> to vector<8x32xf32>
    %336 = vector.extract_strided_slice %335 {offsets = [0, 0], sizes = [8, 8], strides = [1, 1]} : vector<8x32xf32> to vector<8x8xf32>
    %337 = vector.extract_strided_slice %335 {offsets = [0, 8], sizes = [8, 8], strides = [1, 1]} : vector<8x32xf32> to vector<8x8xf32>
    %338 = vector.extract_strided_slice %335 {offsets = [0, 16], sizes = [8, 8], strides = [1, 1]} : vector<8x32xf32> to vector<8x8xf32>
    %339 = vector.extract_strided_slice %335 {offsets = [0, 24], sizes = [8, 8], strides = [1, 1]} : vector<8x32xf32> to vector<8x8xf32>
    %340 = vector.shape_cast %336 : vector<8x8xf32> to vector<1x8x8xf32>
    %341 = vector.shape_cast %337 : vector<8x8xf32> to vector<1x8x8xf32>
    %342 = vector.shape_cast %338 : vector<8x8xf32> to vector<1x8x8xf32>
    %343 = vector.shape_cast %339 : vector<8x8xf32> to vector<1x8x8xf32>
    %344 = tpu.concatenate %340, %341, %342, %343 in 0 : vector<1x8x8xf32>, vector<1x8x8xf32>, vector<1x8x8xf32>, vector<1x8x8xf32> -> vector<4x8x8xf32>
    %345 = vector.extract_strided_slice %333 {offsets = [0, 0], sizes = [8, 32], strides = [1, 1]} : vector<16x32xf32> to vector<8x32xf32>
    %346 = vector.extract_strided_slice %345 {offsets = [0, 0], sizes = [8, 8], strides = [1, 1]} : vector<8x32xf32> to vector<8x8xf32>
    %347 = vector.extract_strided_slice %345 {offsets = [0, 8], sizes = [8, 8], strides = [1, 1]} : vector<8x32xf32> to vector<8x8xf32>
    %348 = vector.extract_strided_slice %345 {offsets = [0, 16], sizes = [8, 8], strides = [1, 1]} : vector<8x32xf32> to vector<8x8xf32>
    %349 = vector.extract_strided_slice %345 {offsets = [0, 24], sizes = [8, 8], strides = [1, 1]} : vector<8x32xf32> to vector<8x8xf32>
    %350 = vector.shape_cast %346 : vector<8x8xf32> to vector<1x8x8xf32>
    %351 = vector.shape_cast %347 : vector<8x8xf32> to vector<1x8x8xf32>
    %352 = vector.shape_cast %348 : vector<8x8xf32> to vector<1x8x8xf32>
    %353 = vector.shape_cast %349 : vector<8x8xf32> to vector<1x8x8xf32>
    %354 = tpu.concatenate %350, %351, %352, %353 in 0 : vector<1x8x8xf32>, vector<1x8x8xf32>, vector<1x8x8xf32>, vector<1x8x8xf32> -> vector<4x8x8xf32>
    %355 = vector.extract_strided_slice %334 {offsets = [0, 0], sizes = [8, 32], strides = [1, 1]} : vector<16x32xf32> to vector<8x32xf32>
    %356 = vector.extract_strided_slice %355 {offsets = [0, 0], sizes = [8, 8], strides = [1, 1]} : vector<8x32xf32> to vector<8x8xf32>
    %357 = vector.extract_strided_slice %355 {offsets = [0, 8], sizes = [8, 8], strides = [1, 1]} : vector<8x32xf32> to vector<8x8xf32>
    %358 = vector.extract_strided_slice %355 {offsets = [0, 16], sizes = [8, 8], strides = [1, 1]} : vector<8x32xf32> to vector<8x8xf32>
    %359 = vector.extract_strided_slice %355 {offsets = [0, 24], sizes = [8, 8], strides = [1, 1]} : vector<8x32xf32> to vector<8x8xf32>
    %360 = vector.shape_cast %356 : vector<8x8xf32> to vector<1x8x8xf32>
    %361 = vector.shape_cast %357 : vector<8x8xf32> to vector<1x8x8xf32>
    %362 = vector.shape_cast %358 : vector<8x8xf32> to vector<1x8x8xf32>
    %363 = vector.shape_cast %359 : vector<8x8xf32> to vector<1x8x8xf32>
    %364 = tpu.concatenate %360, %361, %362, %363 in 0 : vector<1x8x8xf32>, vector<1x8x8xf32>, vector<1x8x8xf32>, vector<1x8x8xf32> -> vector<4x8x8xf32>
    %cst_142 = arith.constant dense<0.000000e+00> : vector<4x8x8xf32>
    %365 = tpu.matmul %344, %354, %cst_142 {dimension_numbers = #tpu.dot_dimension_numbers<[2], [2], [1], [1], [0, 0, 0, 1, 1, 1], [0], [0]>} : vector<4x8x8xf32>, vector<4x8x8xf32>, vector<4x8x8xf32> -> vector<4x8x8xf32>
    %366 = vector.broadcast %286 : vector<1x8x8xf32> to vector<4x8x8xf32>
    %367 = arith.addf %365, %366 : vector<4x8x8xf32>
    %cst_143 = arith.constant dense<0xFF800000> : vector<4x8xf32>
    %368 = vector.multi_reduction <maximumf>, %367, %cst_143 [2] : vector<4x8x8xf32> to vector<4x8xf32>
    %369 = vector.shape_cast %368 : vector<4x8xf32> to vector<4x8x1xf32>
    %370 = vector.broadcast %369 : vector<4x8x1xf32> to vector<4x8x8xf32>
    %371 = arith.subf %367, %370 : vector<4x8x8xf32>
    %372 = math.exp %371 : vector<4x8x8xf32>
    %cst_144 = arith.constant dense<0.000000e+00> : vector<4x8xf32>
    %373 = vector.multi_reduction <add>, %372, %cst_144 [2] : vector<4x8x8xf32> to vector<4x8xf32>
    %374 = vector.shape_cast %373 : vector<4x8xf32> to vector<4x8x1xf32>
    %375 = tpu.reciprocal %374 {approx = true} : vector<4x8x1xf32> -> vector<4x8x1xf32>
    %376 = vector.broadcast %375 : vector<4x8x1xf32> to vector<4x8x8xf32>
    %377 = arith.mulf %372, %376 : vector<4x8x8xf32>
    %cst_145 = arith.constant dense<0.000000e+00> : vector<4x8x8xf32>
    %378 = tpu.matmul %377, %364, %cst_145 {dimension_numbers = #tpu.dot_dimension_numbers<[2], [1], [1], [2], [0, 0, 0, 1, 1, 2], [0], [0]>} : vector<4x8x8xf32>, vector<4x8x8xf32>, vector<4x8x8xf32> -> vector<4x8x8xf32>
    %cst_146 = arith.constant dense<0.000000e+00> : vector<4x8x32xf32>
    %379 = tpu.matmul %378, %18, %cst_146 {dimension_numbers = #tpu.dot_dimension_numbers<[2], [1], [1], [2], [0, 0, 0, 1, 1, 2], [0], [0]>} : vector<4x8x8xf32>, vector<4x8x32xf32>, vector<4x8x32xf32> -> vector<4x8x32xf32>
    %380 = vector.extract_strided_slice %379 {offsets = [0, 0, 0], sizes = [1, 8, 32], strides = [1, 1, 1]} : vector<4x8x32xf32> to vector<1x8x32xf32>
    %381 = vector.shape_cast %380 : vector<1x8x32xf32> to vector<8x32xf32>
    %382 = vector.extract_strided_slice %379 {offsets = [1, 0, 0], sizes = [1, 8, 32], strides = [1, 1, 1]} : vector<4x8x32xf32> to vector<1x8x32xf32>
    %383 = vector.shape_cast %382 : vector<1x8x32xf32> to vector<8x32xf32>
    %384 = arith.addf %381, %383 : vector<8x32xf32>
    %385 = vector.extract_strided_slice %379 {offsets = [2, 0, 0], sizes = [1, 8, 32], strides = [1, 1, 1]} : vector<4x8x32xf32> to vector<1x8x32xf32>
    %386 = vector.shape_cast %385 : vector<1x8x32xf32> to vector<8x32xf32>
    %387 = arith.addf %384, %386 : vector<8x32xf32>
    %388 = vector.extract_strided_slice %379 {offsets = [3, 0, 0], sizes = [1, 8, 32], strides = [1, 1, 1]} : vector<4x8x32xf32> to vector<1x8x32xf32>
    %389 = vector.shape_cast %388 : vector<1x8x32xf32> to vector<8x32xf32>
    %390 = arith.addf %387, %389 : vector<8x32xf32>
    %391 = vector.extract_strided_slice %332 {offsets = [8, 0], sizes = [8, 32], strides = [1, 1]} : vector<16x32xf32> to vector<8x32xf32>
    %392 = vector.extract_strided_slice %391 {offsets = [0, 0], sizes = [8, 8], strides = [1, 1]} : vector<8x32xf32> to vector<8x8xf32>
    %393 = vector.extract_strided_slice %391 {offsets = [0, 8], sizes = [8, 8], strides = [1, 1]} : vector<8x32xf32> to vector<8x8xf32>
    %394 = vector.extract_strided_slice %391 {offsets = [0, 16], sizes = [8, 8], strides = [1, 1]} : vector<8x32xf32> to vector<8x8xf32>
    %395 = vector.extract_strided_slice %391 {offsets = [0, 24], sizes = [8, 8], strides = [1, 1]} : vector<8x32xf32> to vector<8x8xf32>
    %396 = vector.shape_cast %392 : vector<8x8xf32> to vector<1x8x8xf32>
    %397 = vector.shape_cast %393 : vector<8x8xf32> to vector<1x8x8xf32>
    %398 = vector.shape_cast %394 : vector<8x8xf32> to vector<1x8x8xf32>
    %399 = vector.shape_cast %395 : vector<8x8xf32> to vector<1x8x8xf32>
    %400 = tpu.concatenate %396, %397, %398, %399 in 0 : vector<1x8x8xf32>, vector<1x8x8xf32>, vector<1x8x8xf32>, vector<1x8x8xf32> -> vector<4x8x8xf32>
    %401 = vector.extract_strided_slice %333 {offsets = [8, 0], sizes = [8, 32], strides = [1, 1]} : vector<16x32xf32> to vector<8x32xf32>
    %402 = vector.extract_strided_slice %401 {offsets = [0, 0], sizes = [8, 8], strides = [1, 1]} : vector<8x32xf32> to vector<8x8xf32>
    %403 = vector.extract_strided_slice %401 {offsets = [0, 8], sizes = [8, 8], strides = [1, 1]} : vector<8x32xf32> to vector<8x8xf32>
    %404 = vector.extract_strided_slice %401 {offsets = [0, 16], sizes = [8, 8], strides = [1, 1]} : vector<8x32xf32> to vector<8x8xf32>
    %405 = vector.extract_strided_slice %401 {offsets = [0, 24], sizes = [8, 8], strides = [1, 1]} : vector<8x32xf32> to vector<8x8xf32>
    %406 = vector.shape_cast %402 : vector<8x8xf32> to vector<1x8x8xf32>
    %407 = vector.shape_cast %403 : vector<8x8xf32> to vector<1x8x8xf32>
    %408 = vector.shape_cast %404 : vector<8x8xf32> to vector<1x8x8xf32>
    %409 = vector.shape_cast %405 : vector<8x8xf32> to vector<1x8x8xf32>
    %410 = tpu.concatenate %406, %407, %408, %409 in 0 : vector<1x8x8xf32>, vector<1x8x8xf32>, vector<1x8x8xf32>, vector<1x8x8xf32> -> vector<4x8x8xf32>
    %411 = vector.extract_strided_slice %334 {offsets = [8, 0], sizes = [8, 32], strides = [1, 1]} : vector<16x32xf32> to vector<8x32xf32>
    %412 = vector.extract_strided_slice %411 {offsets = [0, 0], sizes = [8, 8], strides = [1, 1]} : vector<8x32xf32> to vector<8x8xf32>
    %413 = vector.extract_strided_slice %411 {offsets = [0, 8], sizes = [8, 8], strides = [1, 1]} : vector<8x32xf32> to vector<8x8xf32>
    %414 = vector.extract_strided_slice %411 {offsets = [0, 16], sizes = [8, 8], strides = [1, 1]} : vector<8x32xf32> to vector<8x8xf32>
    %415 = vector.extract_strided_slice %411 {offsets = [0, 24], sizes = [8, 8], strides = [1, 1]} : vector<8x32xf32> to vector<8x8xf32>
    %416 = vector.shape_cast %412 : vector<8x8xf32> to vector<1x8x8xf32>
    %417 = vector.shape_cast %413 : vector<8x8xf32> to vector<1x8x8xf32>
    %418 = vector.shape_cast %414 : vector<8x8xf32> to vector<1x8x8xf32>
    %419 = vector.shape_cast %415 : vector<8x8xf32> to vector<1x8x8xf32>
    %420 = tpu.concatenate %416, %417, %418, %419 in 0 : vector<1x8x8xf32>, vector<1x8x8xf32>, vector<1x8x8xf32>, vector<1x8x8xf32> -> vector<4x8x8xf32>
    %cst_147 = arith.constant dense<0.000000e+00> : vector<4x8x8xf32>
    %421 = tpu.matmul %400, %410, %cst_147 {dimension_numbers = #tpu.dot_dimension_numbers<[2], [2], [1], [1], [0, 0, 0, 1, 1, 1], [0], [0]>} : vector<4x8x8xf32>, vector<4x8x8xf32>, vector<4x8x8xf32> -> vector<4x8x8xf32>
    %422 = vector.broadcast %294 : vector<1x8x8xf32> to vector<4x8x8xf32>
    %423 = arith.addf %421, %422 : vector<4x8x8xf32>
    %cst_148 = arith.constant dense<0xFF800000> : vector<4x8xf32>
    %424 = vector.multi_reduction <maximumf>, %423, %cst_148 [2] : vector<4x8x8xf32> to vector<4x8xf32>
    %425 = vector.shape_cast %424 : vector<4x8xf32> to vector<4x8x1xf32>
    %426 = vector.broadcast %425 : vector<4x8x1xf32> to vector<4x8x8xf32>
    %427 = arith.subf %423, %426 : vector<4x8x8xf32>
    %428 = math.exp %427 : vector<4x8x8xf32>
    %cst_149 = arith.constant dense<0.000000e+00> : vector<4x8xf32>
    %429 = vector.multi_reduction <add>, %428, %cst_149 [2] : vector<4x8x8xf32> to vector<4x8xf32>
    %430 = vector.shape_cast %429 : vector<4x8xf32> to vector<4x8x1xf32>
    %431 = tpu.reciprocal %430 {approx = true} : vector<4x8x1xf32> -> vector<4x8x1xf32>
    %432 = vector.broadcast %431 : vector<4x8x1xf32> to vector<4x8x8xf32>
    %433 = arith.mulf %428, %432 : vector<4x8x8xf32>
    %cst_150 = arith.constant dense<0.000000e+00> : vector<4x8x8xf32>
    %434 = tpu.matmul %433, %420, %cst_150 {dimension_numbers = #tpu.dot_dimension_numbers<[2], [1], [1], [2], [0, 0, 0, 1, 1, 2], [0], [0]>} : vector<4x8x8xf32>, vector<4x8x8xf32>, vector<4x8x8xf32> -> vector<4x8x8xf32>
    %cst_151 = arith.constant dense<0.000000e+00> : vector<4x8x32xf32>
    %435 = tpu.matmul %434, %18, %cst_151 {dimension_numbers = #tpu.dot_dimension_numbers<[2], [1], [1], [2], [0, 0, 0, 1, 1, 2], [0], [0]>} : vector<4x8x8xf32>, vector<4x8x32xf32>, vector<4x8x32xf32> -> vector<4x8x32xf32>
    %436 = vector.extract_strided_slice %435 {offsets = [0, 0, 0], sizes = [1, 8, 32], strides = [1, 1, 1]} : vector<4x8x32xf32> to vector<1x8x32xf32>
    %437 = vector.shape_cast %436 : vector<1x8x32xf32> to vector<8x32xf32>
    %438 = vector.extract_strided_slice %435 {offsets = [1, 0, 0], sizes = [1, 8, 32], strides = [1, 1, 1]} : vector<4x8x32xf32> to vector<1x8x32xf32>
    %439 = vector.shape_cast %438 : vector<1x8x32xf32> to vector<8x32xf32>
    %440 = arith.addf %437, %439 : vector<8x32xf32>
    %441 = vector.extract_strided_slice %435 {offsets = [2, 0, 0], sizes = [1, 8, 32], strides = [1, 1, 1]} : vector<4x8x32xf32> to vector<1x8x32xf32>
    %442 = vector.shape_cast %441 : vector<1x8x32xf32> to vector<8x32xf32>
    %443 = arith.addf %440, %442 : vector<8x32xf32>
    %444 = vector.extract_strided_slice %435 {offsets = [3, 0, 0], sizes = [1, 8, 32], strides = [1, 1, 1]} : vector<4x8x32xf32> to vector<1x8x32xf32>
    %445 = vector.shape_cast %444 : vector<1x8x32xf32> to vector<8x32xf32>
    %446 = arith.addf %443, %445 : vector<8x32xf32>
    %447 = tpu.concatenate %390, %446 in 0 : vector<8x32xf32>, vector<8x32xf32> -> vector<16x32xf32>
    %448 = arith.addf %272, %447 : vector<16x32xf32>
    %449 = vector.broadcast %19 : vector<1x32xf32> to vector<16x32xf32>
    %450 = arith.addf %448, %449 : vector<16x32xf32>
    %cst_152 = arith.constant dense<0.000000e+00> : vector<16xf32>
    %451 = vector.multi_reduction <add>, %450, %cst_152 [1] : vector<16x32xf32> to vector<16xf32>
    %452 = vector.shape_cast %451 : vector<16xf32> to vector<16x1xf32>
    %cst_153 = arith.constant 3.200000e+01 : f32
    %453 = vector.broadcast %cst_153 : f32 to vector<16x1xf32>
    %454 = arith.divf %452, %453 : vector<16x1xf32>
    %455 = vector.broadcast %454 : vector<16x1xf32> to vector<16x32xf32>
    %456 = arith.subf %450, %455 : vector<16x32xf32>
    %457 = arith.mulf %456, %456 : vector<16x32xf32>
    %cst_154 = arith.constant dense<0.000000e+00> : vector<16xf32>
    %458 = vector.multi_reduction <add>, %457, %cst_154 [1] : vector<16x32xf32> to vector<16xf32>
    %459 = vector.shape_cast %458 : vector<16xf32> to vector<16x1xf32>
    %cst_155 = arith.constant 3.200000e+01 : f32
    %460 = vector.broadcast %cst_155 : f32 to vector<16x1xf32>
    %461 = arith.divf %459, %460 : vector<16x1xf32>
    %462 = vector.broadcast %454 : vector<16x1xf32> to vector<16x32xf32>
    %463 = arith.subf %450, %462 : vector<16x32xf32>
    %cst_156 = arith.constant 9.99999974E-6 : f32
    %464 = vector.broadcast %cst_156 : f32 to vector<16x1xf32>
    %465 = arith.addf %461, %464 : vector<16x1xf32>
    %466 = math.rsqrt %465 : vector<16x1xf32>
    %467 = vector.broadcast %466 : vector<16x1xf32> to vector<16x32xf32>
    %468 = arith.mulf %463, %467 : vector<16x32xf32>
    %469 = vector.broadcast %20 : vector<1x32xf32> to vector<16x32xf32>
    %470 = arith.mulf %468, %469 : vector<16x32xf32>
    %471 = vector.broadcast %21 : vector<1x32xf32> to vector<16x32xf32>
    %472 = arith.addf %470, %471 : vector<16x32xf32>
    %cst_157 = arith.constant dense<0.000000e+00> : vector<16x32xf32>
    %473 = tpu.matmul %472, %22, %cst_157 {dimension_numbers = #tpu.dot_dimension_numbers<[1], [0], [0], [1], [0, 0, 1, 1], [], []>} : vector<16x32xf32>, vector<32x32xf32>, vector<16x32xf32> -> vector<16x32xf32>
    %474 = vector.broadcast %23 : vector<1x32xf32> to vector<16x32xf32>
    %475 = arith.addf %473, %474 : vector<16x32xf32>
    %cst_158 = arith.constant dense<0.000000e+00> : vector<16x64xf32>
    %476 = tpu.matmul %260, %24, %cst_158 {dimension_numbers = #tpu.dot_dimension_numbers<[1], [0], [0], [1], [0, 0, 1, 1], [], []>} : vector<16x32xf32>, vector<32x64xf32>, vector<16x64xf32> -> vector<16x64xf32>
    %477 = vector.broadcast %25 : vector<1x64xf32> to vector<16x64xf32>
    %478 = arith.addf %476, %477 : vector<16x64xf32>
    %479 = vector.extract_strided_slice %478 {offsets = [0, 0], sizes = [16, 32], strides = [1, 1]} : vector<16x64xf32> to vector<16x32xf32>
    %480 = vector.extract_strided_slice %478 {offsets = [0, 32], sizes = [16, 32], strides = [1, 1]} : vector<16x64xf32> to vector<16x32xf32>
    %481 = vector.extract_strided_slice %475 {offsets = [0, 0], sizes = [8, 32], strides = [1, 1]} : vector<16x32xf32> to vector<8x32xf32>
    %482 = vector.extract_strided_slice %481 {offsets = [0, 0], sizes = [8, 8], strides = [1, 1]} : vector<8x32xf32> to vector<8x8xf32>
    %483 = vector.extract_strided_slice %481 {offsets = [0, 8], sizes = [8, 8], strides = [1, 1]} : vector<8x32xf32> to vector<8x8xf32>
    %484 = vector.extract_strided_slice %481 {offsets = [0, 16], sizes = [8, 8], strides = [1, 1]} : vector<8x32xf32> to vector<8x8xf32>
    %485 = vector.extract_strided_slice %481 {offsets = [0, 24], sizes = [8, 8], strides = [1, 1]} : vector<8x32xf32> to vector<8x8xf32>
    %486 = vector.shape_cast %482 : vector<8x8xf32> to vector<1x8x8xf32>
    %487 = vector.shape_cast %483 : vector<8x8xf32> to vector<1x8x8xf32>
    %488 = vector.shape_cast %484 : vector<8x8xf32> to vector<1x8x8xf32>
    %489 = vector.shape_cast %485 : vector<8x8xf32> to vector<1x8x8xf32>
    %490 = tpu.concatenate %486, %487, %488, %489 in 0 : vector<1x8x8xf32>, vector<1x8x8xf32>, vector<1x8x8xf32>, vector<1x8x8xf32> -> vector<4x8x8xf32>
    %491 = vector.extract_strided_slice %479 {offsets = [0, 0], sizes = [8, 32], strides = [1, 1]} : vector<16x32xf32> to vector<8x32xf32>
    %492 = vector.extract_strided_slice %491 {offsets = [0, 0], sizes = [8, 8], strides = [1, 1]} : vector<8x32xf32> to vector<8x8xf32>
    %493 = vector.extract_strided_slice %491 {offsets = [0, 8], sizes = [8, 8], strides = [1, 1]} : vector<8x32xf32> to vector<8x8xf32>
    %494 = vector.extract_strided_slice %491 {offsets = [0, 16], sizes = [8, 8], strides = [1, 1]} : vector<8x32xf32> to vector<8x8xf32>
    %495 = vector.extract_strided_slice %491 {offsets = [0, 24], sizes = [8, 8], strides = [1, 1]} : vector<8x32xf32> to vector<8x8xf32>
    %496 = vector.shape_cast %492 : vector<8x8xf32> to vector<1x8x8xf32>
    %497 = vector.shape_cast %493 : vector<8x8xf32> to vector<1x8x8xf32>
    %498 = vector.shape_cast %494 : vector<8x8xf32> to vector<1x8x8xf32>
    %499 = vector.shape_cast %495 : vector<8x8xf32> to vector<1x8x8xf32>
    %500 = tpu.concatenate %496, %497, %498, %499 in 0 : vector<1x8x8xf32>, vector<1x8x8xf32>, vector<1x8x8xf32>, vector<1x8x8xf32> -> vector<4x8x8xf32>
    %501 = vector.extract_strided_slice %480 {offsets = [0, 0], sizes = [8, 32], strides = [1, 1]} : vector<16x32xf32> to vector<8x32xf32>
    %502 = vector.extract_strided_slice %501 {offsets = [0, 0], sizes = [8, 8], strides = [1, 1]} : vector<8x32xf32> to vector<8x8xf32>
    %503 = vector.extract_strided_slice %501 {offsets = [0, 8], sizes = [8, 8], strides = [1, 1]} : vector<8x32xf32> to vector<8x8xf32>
    %504 = vector.extract_strided_slice %501 {offsets = [0, 16], sizes = [8, 8], strides = [1, 1]} : vector<8x32xf32> to vector<8x8xf32>
    %505 = vector.extract_strided_slice %501 {offsets = [0, 24], sizes = [8, 8], strides = [1, 1]} : vector<8x32xf32> to vector<8x8xf32>
    %506 = vector.shape_cast %502 : vector<8x8xf32> to vector<1x8x8xf32>
    %507 = vector.shape_cast %503 : vector<8x8xf32> to vector<1x8x8xf32>
    %508 = vector.shape_cast %504 : vector<8x8xf32> to vector<1x8x8xf32>
    %509 = vector.shape_cast %505 : vector<8x8xf32> to vector<1x8x8xf32>
    %510 = tpu.concatenate %506, %507, %508, %509 in 0 : vector<1x8x8xf32>, vector<1x8x8xf32>, vector<1x8x8xf32>, vector<1x8x8xf32> -> vector<4x8x8xf32>
    %cst_159 = arith.constant dense<0.000000e+00> : vector<4x8x8xf32>
    %511 = tpu.matmul %490, %500, %cst_159 {dimension_numbers = #tpu.dot_dimension_numbers<[2], [2], [1], [1], [0, 0, 0, 1, 1, 1], [0], [0]>} : vector<4x8x8xf32>, vector<4x8x8xf32>, vector<4x8x8xf32> -> vector<4x8x8xf32>
    %512 = vector.broadcast %300 : vector<1x1x8xf32> to vector<4x8x8xf32>
    %513 = arith.addf %511, %512 : vector<4x8x8xf32>
    %cst_160 = arith.constant dense<0xFF800000> : vector<4x8xf32>
    %514 = vector.multi_reduction <maximumf>, %513, %cst_160 [2] : vector<4x8x8xf32> to vector<4x8xf32>
    %515 = vector.shape_cast %514 : vector<4x8xf32> to vector<4x8x1xf32>
    %516 = vector.broadcast %515 : vector<4x8x1xf32> to vector<4x8x8xf32>
    %517 = arith.subf %513, %516 : vector<4x8x8xf32>
    %518 = math.exp %517 : vector<4x8x8xf32>
    %cst_161 = arith.constant dense<0.000000e+00> : vector<4x8xf32>
    %519 = vector.multi_reduction <add>, %518, %cst_161 [2] : vector<4x8x8xf32> to vector<4x8xf32>
    %520 = vector.shape_cast %519 : vector<4x8xf32> to vector<4x8x1xf32>
    %521 = tpu.reciprocal %520 {approx = true} : vector<4x8x1xf32> -> vector<4x8x1xf32>
    %522 = vector.broadcast %521 : vector<4x8x1xf32> to vector<4x8x8xf32>
    %523 = arith.mulf %518, %522 : vector<4x8x8xf32>
    %cst_162 = arith.constant dense<0.000000e+00> : vector<4x8x8xf32>
    %524 = tpu.matmul %523, %510, %cst_162 {dimension_numbers = #tpu.dot_dimension_numbers<[2], [1], [1], [2], [0, 0, 0, 1, 1, 2], [0], [0]>} : vector<4x8x8xf32>, vector<4x8x8xf32>, vector<4x8x8xf32> -> vector<4x8x8xf32>
    %cst_163 = arith.constant dense<0.000000e+00> : vector<4x8x32xf32>
    %525 = tpu.matmul %524, %26, %cst_163 {dimension_numbers = #tpu.dot_dimension_numbers<[2], [1], [1], [2], [0, 0, 0, 1, 1, 2], [0], [0]>} : vector<4x8x8xf32>, vector<4x8x32xf32>, vector<4x8x32xf32> -> vector<4x8x32xf32>
    %526 = vector.extract_strided_slice %525 {offsets = [0, 0, 0], sizes = [1, 8, 32], strides = [1, 1, 1]} : vector<4x8x32xf32> to vector<1x8x32xf32>
    %527 = vector.shape_cast %526 : vector<1x8x32xf32> to vector<8x32xf32>
    %528 = vector.extract_strided_slice %525 {offsets = [1, 0, 0], sizes = [1, 8, 32], strides = [1, 1, 1]} : vector<4x8x32xf32> to vector<1x8x32xf32>
    %529 = vector.shape_cast %528 : vector<1x8x32xf32> to vector<8x32xf32>
    %530 = arith.addf %527, %529 : vector<8x32xf32>
    %531 = vector.extract_strided_slice %525 {offsets = [2, 0, 0], sizes = [1, 8, 32], strides = [1, 1, 1]} : vector<4x8x32xf32> to vector<1x8x32xf32>
    %532 = vector.shape_cast %531 : vector<1x8x32xf32> to vector<8x32xf32>
    %533 = arith.addf %530, %532 : vector<8x32xf32>
    %534 = vector.extract_strided_slice %525 {offsets = [3, 0, 0], sizes = [1, 8, 32], strides = [1, 1, 1]} : vector<4x8x32xf32> to vector<1x8x32xf32>
    %535 = vector.shape_cast %534 : vector<1x8x32xf32> to vector<8x32xf32>
    %536 = arith.addf %533, %535 : vector<8x32xf32>
    %537 = vector.extract_strided_slice %475 {offsets = [8, 0], sizes = [8, 32], strides = [1, 1]} : vector<16x32xf32> to vector<8x32xf32>
    %538 = vector.extract_strided_slice %537 {offsets = [0, 0], sizes = [8, 8], strides = [1, 1]} : vector<8x32xf32> to vector<8x8xf32>
    %539 = vector.extract_strided_slice %537 {offsets = [0, 8], sizes = [8, 8], strides = [1, 1]} : vector<8x32xf32> to vector<8x8xf32>
    %540 = vector.extract_strided_slice %537 {offsets = [0, 16], sizes = [8, 8], strides = [1, 1]} : vector<8x32xf32> to vector<8x8xf32>
    %541 = vector.extract_strided_slice %537 {offsets = [0, 24], sizes = [8, 8], strides = [1, 1]} : vector<8x32xf32> to vector<8x8xf32>
    %542 = vector.shape_cast %538 : vector<8x8xf32> to vector<1x8x8xf32>
    %543 = vector.shape_cast %539 : vector<8x8xf32> to vector<1x8x8xf32>
    %544 = vector.shape_cast %540 : vector<8x8xf32> to vector<1x8x8xf32>
    %545 = vector.shape_cast %541 : vector<8x8xf32> to vector<1x8x8xf32>
    %546 = tpu.concatenate %542, %543, %544, %545 in 0 : vector<1x8x8xf32>, vector<1x8x8xf32>, vector<1x8x8xf32>, vector<1x8x8xf32> -> vector<4x8x8xf32>
    %547 = vector.extract_strided_slice %479 {offsets = [8, 0], sizes = [8, 32], strides = [1, 1]} : vector<16x32xf32> to vector<8x32xf32>
    %548 = vector.extract_strided_slice %547 {offsets = [0, 0], sizes = [8, 8], strides = [1, 1]} : vector<8x32xf32> to vector<8x8xf32>
    %549 = vector.extract_strided_slice %547 {offsets = [0, 8], sizes = [8, 8], strides = [1, 1]} : vector<8x32xf32> to vector<8x8xf32>
    %550 = vector.extract_strided_slice %547 {offsets = [0, 16], sizes = [8, 8], strides = [1, 1]} : vector<8x32xf32> to vector<8x8xf32>
    %551 = vector.extract_strided_slice %547 {offsets = [0, 24], sizes = [8, 8], strides = [1, 1]} : vector<8x32xf32> to vector<8x8xf32>
    %552 = vector.shape_cast %548 : vector<8x8xf32> to vector<1x8x8xf32>
    %553 = vector.shape_cast %549 : vector<8x8xf32> to vector<1x8x8xf32>
    %554 = vector.shape_cast %550 : vector<8x8xf32> to vector<1x8x8xf32>
    %555 = vector.shape_cast %551 : vector<8x8xf32> to vector<1x8x8xf32>
    %556 = tpu.concatenate %552, %553, %554, %555 in 0 : vector<1x8x8xf32>, vector<1x8x8xf32>, vector<1x8x8xf32>, vector<1x8x8xf32> -> vector<4x8x8xf32>
    %557 = vector.extract_strided_slice %480 {offsets = [8, 0], sizes = [8, 32], strides = [1, 1]} : vector<16x32xf32> to vector<8x32xf32>
    %558 = vector.extract_strided_slice %557 {offsets = [0, 0], sizes = [8, 8], strides = [1, 1]} : vector<8x32xf32> to vector<8x8xf32>
    %559 = vector.extract_strided_slice %557 {offsets = [0, 8], sizes = [8, 8], strides = [1, 1]} : vector<8x32xf32> to vector<8x8xf32>
    %560 = vector.extract_strided_slice %557 {offsets = [0, 16], sizes = [8, 8], strides = [1, 1]} : vector<8x32xf32> to vector<8x8xf32>
    %561 = vector.extract_strided_slice %557 {offsets = [0, 24], sizes = [8, 8], strides = [1, 1]} : vector<8x32xf32> to vector<8x8xf32>
    %562 = vector.shape_cast %558 : vector<8x8xf32> to vector<1x8x8xf32>
    %563 = vector.shape_cast %559 : vector<8x8xf32> to vector<1x8x8xf32>
    %564 = vector.shape_cast %560 : vector<8x8xf32> to vector<1x8x8xf32>
    %565 = vector.shape_cast %561 : vector<8x8xf32> to vector<1x8x8xf32>
    %566 = tpu.concatenate %562, %563, %564, %565 in 0 : vector<1x8x8xf32>, vector<1x8x8xf32>, vector<1x8x8xf32>, vector<1x8x8xf32> -> vector<4x8x8xf32>
    %cst_164 = arith.constant dense<0.000000e+00> : vector<4x8x8xf32>
    %567 = tpu.matmul %546, %556, %cst_164 {dimension_numbers = #tpu.dot_dimension_numbers<[2], [2], [1], [1], [0, 0, 0, 1, 1, 1], [0], [0]>} : vector<4x8x8xf32>, vector<4x8x8xf32>, vector<4x8x8xf32> -> vector<4x8x8xf32>
    %568 = vector.broadcast %306 : vector<1x1x8xf32> to vector<4x8x8xf32>
    %569 = arith.addf %567, %568 : vector<4x8x8xf32>
    %cst_165 = arith.constant dense<0xFF800000> : vector<4x8xf32>
    %570 = vector.multi_reduction <maximumf>, %569, %cst_165 [2] : vector<4x8x8xf32> to vector<4x8xf32>
    %571 = vector.shape_cast %570 : vector<4x8xf32> to vector<4x8x1xf32>
    %572 = vector.broadcast %571 : vector<4x8x1xf32> to vector<4x8x8xf32>
    %573 = arith.subf %569, %572 : vector<4x8x8xf32>
    %574 = math.exp %573 : vector<4x8x8xf32>
    %cst_166 = arith.constant dense<0.000000e+00> : vector<4x8xf32>
    %575 = vector.multi_reduction <add>, %574, %cst_166 [2] : vector<4x8x8xf32> to vector<4x8xf32>
    %576 = vector.shape_cast %575 : vector<4x8xf32> to vector<4x8x1xf32>
    %577 = tpu.reciprocal %576 {approx = true} : vector<4x8x1xf32> -> vector<4x8x1xf32>
    %578 = vector.broadcast %577 : vector<4x8x1xf32> to vector<4x8x8xf32>
    %579 = arith.mulf %574, %578 : vector<4x8x8xf32>
    %cst_167 = arith.constant dense<0.000000e+00> : vector<4x8x8xf32>
    %580 = tpu.matmul %579, %566, %cst_167 {dimension_numbers = #tpu.dot_dimension_numbers<[2], [1], [1], [2], [0, 0, 0, 1, 1, 2], [0], [0]>} : vector<4x8x8xf32>, vector<4x8x8xf32>, vector<4x8x8xf32> -> vector<4x8x8xf32>
    %cst_168 = arith.constant dense<0.000000e+00> : vector<4x8x32xf32>
    %581 = tpu.matmul %580, %26, %cst_168 {dimension_numbers = #tpu.dot_dimension_numbers<[2], [1], [1], [2], [0, 0, 0, 1, 1, 2], [0], [0]>} : vector<4x8x8xf32>, vector<4x8x32xf32>, vector<4x8x32xf32> -> vector<4x8x32xf32>
    %582 = vector.extract_strided_slice %581 {offsets = [0, 0, 0], sizes = [1, 8, 32], strides = [1, 1, 1]} : vector<4x8x32xf32> to vector<1x8x32xf32>
    %583 = vector.shape_cast %582 : vector<1x8x32xf32> to vector<8x32xf32>
    %584 = vector.extract_strided_slice %581 {offsets = [1, 0, 0], sizes = [1, 8, 32], strides = [1, 1, 1]} : vector<4x8x32xf32> to vector<1x8x32xf32>
    %585 = vector.shape_cast %584 : vector<1x8x32xf32> to vector<8x32xf32>
    %586 = arith.addf %583, %585 : vector<8x32xf32>
    %587 = vector.extract_strided_slice %581 {offsets = [2, 0, 0], sizes = [1, 8, 32], strides = [1, 1, 1]} : vector<4x8x32xf32> to vector<1x8x32xf32>
    %588 = vector.shape_cast %587 : vector<1x8x32xf32> to vector<8x32xf32>
    %589 = arith.addf %586, %588 : vector<8x32xf32>
    %590 = vector.extract_strided_slice %581 {offsets = [3, 0, 0], sizes = [1, 8, 32], strides = [1, 1, 1]} : vector<4x8x32xf32> to vector<1x8x32xf32>
    %591 = vector.shape_cast %590 : vector<1x8x32xf32> to vector<8x32xf32>
    %592 = arith.addf %589, %591 : vector<8x32xf32>
    %593 = tpu.concatenate %536, %592 in 0 : vector<8x32xf32>, vector<8x32xf32> -> vector<16x32xf32>
    %594 = arith.addf %450, %593 : vector<16x32xf32>
    %595 = vector.broadcast %27 : vector<1x32xf32> to vector<16x32xf32>
    %596 = arith.addf %594, %595 : vector<16x32xf32>
    %cst_169 = arith.constant dense<0.000000e+00> : vector<16xf32>
    %597 = vector.multi_reduction <add>, %596, %cst_169 [1] : vector<16x32xf32> to vector<16xf32>
    %598 = vector.shape_cast %597 : vector<16xf32> to vector<16x1xf32>
    %cst_170 = arith.constant 3.200000e+01 : f32
    %599 = vector.broadcast %cst_170 : f32 to vector<16x1xf32>
    %600 = arith.divf %598, %599 : vector<16x1xf32>
    %601 = vector.broadcast %600 : vector<16x1xf32> to vector<16x32xf32>
    %602 = arith.subf %596, %601 : vector<16x32xf32>
    %603 = arith.mulf %602, %602 : vector<16x32xf32>
    %cst_171 = arith.constant dense<0.000000e+00> : vector<16xf32>
    %604 = vector.multi_reduction <add>, %603, %cst_171 [1] : vector<16x32xf32> to vector<16xf32>
    %605 = vector.shape_cast %604 : vector<16xf32> to vector<16x1xf32>
    %cst_172 = arith.constant 3.200000e+01 : f32
    %606 = vector.broadcast %cst_172 : f32 to vector<16x1xf32>
    %607 = arith.divf %605, %606 : vector<16x1xf32>
    %608 = vector.broadcast %600 : vector<16x1xf32> to vector<16x32xf32>
    %609 = arith.subf %596, %608 : vector<16x32xf32>
    %cst_173 = arith.constant 9.99999974E-6 : f32
    %610 = vector.broadcast %cst_173 : f32 to vector<16x1xf32>
    %611 = arith.addf %607, %610 : vector<16x1xf32>
    %612 = math.rsqrt %611 : vector<16x1xf32>
    %613 = vector.broadcast %612 : vector<16x1xf32> to vector<16x32xf32>
    %614 = arith.mulf %609, %613 : vector<16x32xf32>
    %615 = vector.broadcast %28 : vector<1x32xf32> to vector<16x32xf32>
    %616 = arith.mulf %614, %615 : vector<16x32xf32>
    %617 = vector.broadcast %29 : vector<1x32xf32> to vector<16x32xf32>
    %618 = arith.addf %616, %617 : vector<16x32xf32>
    %cst_174 = arith.constant dense<0.000000e+00> : vector<16x64xf32>
    %619 = tpu.matmul %618, %30, %cst_174 {dimension_numbers = #tpu.dot_dimension_numbers<[1], [0], [0], [1], [0, 0, 1, 1], [], []>} : vector<16x32xf32>, vector<32x64xf32>, vector<16x64xf32> -> vector<16x64xf32>
    %620 = vector.broadcast %31 : vector<1x64xf32> to vector<16x64xf32>
    %621 = arith.addf %619, %620 : vector<16x64xf32>
    %cst_175 = arith.constant 0.000000e+00 : f32
    %622 = vector.broadcast %cst_175 : f32 to vector<16x64xf32>
    %623 = arith.maximumf %621, %622 : vector<16x64xf32>
    %cst_176 = arith.constant dense<0.000000e+00> : vector<16x32xf32>
    %624 = tpu.matmul %623, %32, %cst_176 {dimension_numbers = #tpu.dot_dimension_numbers<[1], [0], [0], [1], [0, 0, 1, 1], [], []>} : vector<16x64xf32>, vector<64x32xf32>, vector<16x32xf32> -> vector<16x32xf32>
    %625 = arith.addf %596, %624 : vector<16x32xf32>
    %626 = vector.broadcast %33 : vector<1x32xf32> to vector<16x32xf32>
    %627 = arith.addf %625, %626 : vector<16x32xf32>
    %cst_177 = arith.constant dense<0.000000e+00> : vector<16xf32>
    %628 = vector.multi_reduction <add>, %627, %cst_177 [1] : vector<16x32xf32> to vector<16xf32>
    %629 = vector.shape_cast %628 : vector<16xf32> to vector<16x1xf32>
    %cst_178 = arith.constant 3.200000e+01 : f32
    %630 = vector.broadcast %cst_178 : f32 to vector<16x1xf32>
    %631 = arith.divf %629, %630 : vector<16x1xf32>
    %632 = vector.broadcast %631 : vector<16x1xf32> to vector<16x32xf32>
    %633 = arith.subf %627, %632 : vector<16x32xf32>
    %634 = arith.mulf %633, %633 : vector<16x32xf32>
    %cst_179 = arith.constant dense<0.000000e+00> : vector<16xf32>
    %635 = vector.multi_reduction <add>, %634, %cst_179 [1] : vector<16x32xf32> to vector<16xf32>
    %636 = vector.shape_cast %635 : vector<16xf32> to vector<16x1xf32>
    %cst_180 = arith.constant 3.200000e+01 : f32
    %637 = vector.broadcast %cst_180 : f32 to vector<16x1xf32>
    %638 = arith.divf %636, %637 : vector<16x1xf32>
    %639 = vector.broadcast %631 : vector<16x1xf32> to vector<16x32xf32>
    %640 = arith.subf %627, %639 : vector<16x32xf32>
    %cst_181 = arith.constant 9.99999974E-6 : f32
    %641 = vector.broadcast %cst_181 : f32 to vector<16x1xf32>
    %642 = arith.addf %638, %641 : vector<16x1xf32>
    %643 = math.rsqrt %642 : vector<16x1xf32>
    %644 = vector.broadcast %643 : vector<16x1xf32> to vector<16x32xf32>
    %645 = arith.mulf %640, %644 : vector<16x32xf32>
    %646 = vector.broadcast %34 : vector<1x32xf32> to vector<16x32xf32>
    %647 = arith.mulf %645, %646 : vector<16x32xf32>
    %648 = vector.broadcast %35 : vector<1x32xf32> to vector<16x32xf32>
    %649 = arith.addf %647, %648 : vector<16x32xf32>
    %cst_182 = arith.constant dense<0.000000e+00> : vector<16x128xf32>
    %650 = tpu.matmul %649, %36, %cst_182 {dimension_numbers = #tpu.dot_dimension_numbers<[1], [0], [0], [1], [0, 0, 1, 1], [], []>} : vector<16x32xf32>, vector<32x128xf32>, vector<16x128xf32> -> vector<16x128xf32>
    %651 = tpu.iota {dimensions = array<i32: 1>} : vector<16x128xi32>
    %c64_i32 = arith.constant 64 : i32
    %652 = vector.broadcast %c64_i32 : i32 to vector<16x128xi32>
    %653 = arith.cmpi slt, %651, %652 : vector<16x128xi32>
    %cst_183 = arith.constant -1.000000e+09 : f32
    %654 = vector.broadcast %cst_183 : f32 to vector<16x128xf32>
    %655 = arith.select %653, %650, %654 : vector<16x128xi1>, vector<16x128xf32>
    %cst_184 = arith.constant dense<0xFF800000> : vector<16xf32>
    %656 = vector.multi_reduction <maximumf>, %655, %cst_184 [1] : vector<16x128xf32> to vector<16xf32>
    %657 = vector.shape_cast %656 : vector<16xf32> to vector<16x1xf32>
    %658 = vector.broadcast %657 : vector<16x1xf32> to vector<16x128xf32>
    %659 = arith.subf %655, %658 : vector<16x128xf32>
    %660 = math.exp %659 : vector<16x128xf32>
    %cst_185 = arith.constant dense<0.000000e+00> : vector<16xf32>
    %661 = vector.multi_reduction <add>, %660, %cst_185 [1] : vector<16x128xf32> to vector<16xf32>
    %662 = vector.shape_cast %661 : vector<16xf32> to vector<16x1xf32>
    %663 = math.log %662 : vector<16x1xf32>
    %664 = vector.broadcast %663 : vector<16x1xf32> to vector<16x128xf32>
    %665 = arith.subf %659, %664 : vector<16x128xf32>
    %c0_186 = arith.constant 0 : index
    %c0_187 = arith.constant 0 : index
    %666 = vector.load %arg3[%c0_186, %c0_187] : memref<16x1xi32, #tpu.memory_space<vmem>>, vector<16x1xi32>
    %667 = tpu.iota {dimensions = array<i32: 1>} : vector<16x128xi32>
    %668 = vector.broadcast %666 : vector<16x1xi32> to vector<16x128xi32>
    %669 = arith.cmpi eq, %667, %668 : vector<16x128xi32>
    %c1_i32 = arith.constant 1 : i32
    %670 = vector.broadcast %c1_i32 : i32 to vector<16x1xi32>
    %671 = arith.cmpi ne, %666, %670 : vector<16x1xi32>
    %672 = arith.extui %671 : vector<16x1xi1> to vector<16x1xi32>
    %673 = arith.sitofp %672 : vector<16x1xi32> to vector<16x1xf32>
    %cst_188 = arith.constant 0.000000e+00 : f32
    %674 = vector.broadcast %cst_188 : f32 to vector<16x128xf32>
    %675 = arith.select %669, %665, %674 : vector<16x128xi1>, vector<16x128xf32>
    %cst_189 = arith.constant dense<0.000000e+00> : vector<16xf32>
    %676 = vector.multi_reduction <add>, %675, %cst_189 [1] : vector<16x128xf32> to vector<16xf32>
    %677 = vector.shape_cast %676 : vector<16xf32> to vector<16x1xf32>
    %678 = arith.mulf %677, %673 : vector<16x1xf32>
    %cst_190 = arith.constant dense<0.000000e+00> : vector<1xf32>
    %679 = vector.multi_reduction <add>, %678, %cst_190 [0] : vector<16x1xf32> to vector<1xf32>
    %680 = vector.shape_cast %679 : vector<1xf32> to vector<1x1xf32>
    %cst_191 = arith.constant 0.000000e+00 : f32
    %681 = vector.broadcast %cst_191 : f32 to vector<1x1xf32>
    %682 = arith.subf %681, %680 : vector<1x1xf32>
    %c0_192 = arith.constant 0 : index
    %c0_193 = arith.constant 0 : index
    %683 = vector.load %arg46[%c0_192, %c0_193] : memref<1x1xf32, #tpu.memory_space<vmem>>, vector<1x1xf32>
    tpu.vector_store %arg46[%c0_192, %c0_193], %682 {strides = array<i32>} : memref<1x1xf32, #tpu.memory_space<vmem>>, vector<1x1xf32>,
    return
  }
  func.func @transform_0(%arg0: i32) -> (i32, i32) {
    %c0_i32 = arith.constant 0 : i32
    %c0_i32_0 = arith.constant 0 : i32
    %c0_i32_1 = arith.constant 0 : i32
    return %c0_i32, %c0_i32_0 : i32, i32
  }
  func.func @transform_1(%arg0: i32) -> (i32, i32) {
    %c0_i32 = arith.constant 0 : i32
    %c0_i32_0 = arith.constant 0 : i32
    %c0_i32_1 = arith.constant 0 : i32
    return %c0_i32, %c0_i32_0 : i32, i32
  }
  func.func @transform_2(%arg0: i32) -> (i32, i32) {
    %c0_i32 = arith.constant 0 : i32
    %c0_i32_0 = arith.constant 0 : i32
    %c0_i32_1 = arith.constant 0 : i32
    return %c0_i32, %c0_i32_0 : i32, i32
  }
  func.func @transform_3(%arg0: i32) -> (i32, i32) {
    %c0_i32 = arith.constant 0 : i32
    %c0_i32_0 = arith.constant 0 : i32
    %c0_i32_1 = arith.constant 0 : i32
    return %c0_i32, %c0_i32_0 : i32, i32
  }
  func.func @transform_4(%arg0: i32) -> (i32, i32) {
    %c0_i32 = arith.constant 0 : i32
    %c0_i32_0 = arith.constant 0 : i32
    %c0_i32_1 = arith.constant 0 : i32
    return %c0_i32, %c0_i32_0 : i32, i32
  }
  func.func @transform_5(%arg0: i32) -> (i32, i32) {
    %c0_i32 = arith.constant 0 : i32
    %c0_i32_0 = arith.constant 0 : i32
    %c0_i32_1 = arith.constant 0 : i32
    return %c0_i32, %c0_i32_0 : i32, i32
  }
  func.func @transform_6(%arg0: i32) -> (i32, i32) {
    %c0_i32 = arith.constant 0 : i32
    %c0_i32_0 = arith.constant 0 : i32
    %c0_i32_1 = arith.constant 0 : i32
    return %c0_i32, %c0_i32_0 : i32, i32
  }
  func.func @transform_7(%arg0: i32) -> (i32, i32) {
    %c0_i32 = arith.constant 0 : i32
    %c0_i32_0 = arith.constant 0 : i32
    %c0_i32_1 = arith.constant 0 : i32
    return %c0_i32, %c0_i32_0 : i32, i32
  }
  func.func @transform_8(%arg0: i32) -> (i32, i32) {
    %c0_i32 = arith.constant 0 : i32
    %c0_i32_0 = arith.constant 0 : i32
    %c0_i32_1 = arith.constant 0 : i32
    return %c0_i32, %c0_i32_0 : i32, i32
  }
  func.func @transform_9(%arg0: i32) -> (i32, i32) {
    %c0_i32 = arith.constant 0 : i32
    %c0_i32_0 = arith.constant 0 : i32
    %c0_i32_1 = arith.constant 0 : i32
    return %c0_i32, %c0_i32_0 : i32, i32
  }
  func.func @transform_10(%arg0: i32) -> (i32, i32) {
    %c0_i32 = arith.constant 0 : i32
    %c0_i32_0 = arith.constant 0 : i32
    %c0_i32_1 = arith.constant 0 : i32
    return %c0_i32, %c0_i32_0 : i32, i32
  }
  func.func @transform_11(%arg0: i32) -> (i32, i32) {
    %c0_i32 = arith.constant 0 : i32
    %c0_i32_0 = arith.constant 0 : i32
    %c0_i32_1 = arith.constant 0 : i32
    return %c0_i32, %c0_i32_0 : i32, i32
  }
  func.func @transform_12(%arg0: i32) -> (i32, i32, i32) {
    %c0_i32 = arith.constant 0 : i32
    %c0_i32_0 = arith.constant 0 : i32
    %c0_i32_1 = arith.constant 0 : i32
    %c0_i32_2 = arith.constant 0 : i32
    return %c0_i32, %c0_i32_0, %c0_i32_1 : i32, i32, i32
  }
  func.func @transform_13(%arg0: i32) -> (i32, i32) {
    %c0_i32 = arith.constant 0 : i32
    %c0_i32_0 = arith.constant 0 : i32
    %c0_i32_1 = arith.constant 0 : i32
    return %c0_i32, %c0_i32_0 : i32, i32
  }
  func.func @transform_14(%arg0: i32) -> (i32, i32) {
    %c0_i32 = arith.constant 0 : i32
    %c0_i32_0 = arith.constant 0 : i32
    %c0_i32_1 = arith.constant 0 : i32
    return %c0_i32, %c0_i32_0 : i32, i32
  }
  func.func @transform_15(%arg0: i32) -> (i32, i32) {
    %c0_i32 = arith.constant 0 : i32
    %c0_i32_0 = arith.constant 0 : i32
    %c0_i32_1 = arith.constant 0 : i32
    return %c0_i32, %c0_i32_0 : i32, i32
  }
  func.func @transform_16(%arg0: i32) -> (i32, i32) {
    %c0_i32 = arith.constant 0 : i32
    %c0_i32_0 = arith.constant 0 : i32
    %c0_i32_1 = arith.constant 0 : i32
    return %c0_i32, %c0_i32_0 : i32, i32
  }
  func.func @transform_17(%arg0: i32) -> (i32, i32) {
    %c0_i32 = arith.constant 0 : i32
    %c0_i32_0 = arith.constant 0 : i32
    %c0_i32_1 = arith.constant 0 : i32
    return %c0_i32, %c0_i32_0 : i32, i32
  }
  func.func @transform_18(%arg0: i32) -> (i32, i32) {
    %c0_i32 = arith.constant 0 : i32
    %c0_i32_0 = arith.constant 0 : i32
    %c0_i32_1 = arith.constant 0 : i32
    return %c0_i32, %c0_i32_0 : i32, i32
  }
  func.func @transform_19(%arg0: i32) -> (i32, i32) {
    %c0_i32 = arith.constant 0 : i32
    %c0_i32_0 = arith.constant 0 : i32
    %c0_i32_1 = arith.constant 0 : i32
    return %c0_i32, %c0_i32_0 : i32, i32
  }
  func.func @transform_20(%arg0: i32) -> (i32, i32) {
    %c0_i32 = arith.constant 0 : i32
    %c0_i32_0 = arith.constant 0 : i32
    %c0_i32_1 = arith.constant 0 : i32
    return %c0_i32, %c0_i32_0 : i32, i32
  }
  func.func @transform_21(%arg0: i32) -> (i32, i32) {
    %c0_i32 = arith.constant 0 : i32
    %c0_i32_0 = arith.constant 0 : i32
    %c0_i32_1 = arith.constant 0 : i32
    return %c0_i32, %c0_i32_0 : i32, i32
  }
  func.func @transform_22(%arg0: i32) -> (i32, i32) {
    %c0_i32 = arith.constant 0 : i32
    %c0_i32_0 = arith.constant 0 : i32
    %c0_i32_1 = arith.constant 0 : i32
    return %c0_i32, %c0_i32_0 : i32, i32
  }
  func.func @transform_23(%arg0: i32) -> (i32, i32) {
    %c0_i32 = arith.constant 0 : i32
    %c0_i32_0 = arith.constant 0 : i32
    %c0_i32_1 = arith.constant 0 : i32
    return %c0_i32, %c0_i32_0 : i32, i32
  }
  func.func @transform_24(%arg0: i32) -> (i32, i32) {
    %c0_i32 = arith.constant 0 : i32
    %c0_i32_0 = arith.constant 0 : i32
    %c0_i32_1 = arith.constant 0 : i32
    return %c0_i32, %c0_i32_0 : i32, i32
  }
  func.func @transform_25(%arg0: i32) -> (i32, i32) {
    %c0_i32 = arith.constant 0 : i32
    %c0_i32_0 = arith.constant 0 : i32
    %c0_i32_1 = arith.constant 0 : i32
    return %c0_i32, %c0_i32_0 : i32, i32
  }
  func.func @transform_26(%arg0: i32) -> (i32, i32, i32) {
    %c0_i32 = arith.constant 0 : i32
    %c0_i32_0 = arith.constant 0 : i32
    %c0_i32_1 = arith.constant 0 : i32
    %c0_i32_2 = arith.constant 0 : i32
    return %c0_i32, %c0_i32_0, %c0_i32_1 : i32, i32, i32
  }
  func.func @transform_27(%arg0: i32) -> (i32, i32) {
    %c0_i32 = arith.constant 0 : i32
    %c0_i32_0 = arith.constant 0 : i32
    %c0_i32_1 = arith.constant 0 : i32
    return %c0_i32, %c0_i32_0 : i32, i32
  }
  func.func @transform_28(%arg0: i32) -> (i32, i32) {
    %c0_i32 = arith.constant 0 : i32
    %c0_i32_0 = arith.constant 0 : i32
    %c0_i32_1 = arith.constant 0 : i32
    return %c0_i32, %c0_i32_0 : i32, i32
  }
  func.func @transform_29(%arg0: i32) -> (i32, i32) {
    %c0_i32 = arith.constant 0 : i32
    %c0_i32_0 = arith.constant 0 : i32
    %c0_i32_1 = arith.constant 0 : i32
    return %c0_i32, %c0_i32_0 : i32, i32
  }
  func.func @transform_30(%arg0: i32) -> (i32, i32) {
    %c0_i32 = arith.constant 0 : i32
    %c0_i32_0 = arith.constant 0 : i32
    %c0_i32_1 = arith.constant 0 : i32
    return %c0_i32, %c0_i32_0 : i32, i32
  }
  func.func @transform_31(%arg0: i32) -> (i32, i32) {
    %c0_i32 = arith.constant 0 : i32
    %c0_i32_0 = arith.constant 0 : i32
    %c0_i32_1 = arith.constant 0 : i32
    return %c0_i32, %c0_i32_0 : i32, i32
  }
  func.func @transform_32(%arg0: i32) -> (i32, i32) {
    %c0_i32 = arith.constant 0 : i32
    %c0_i32_0 = arith.constant 0 : i32
    %c0_i32_1 = arith.constant 0 : i32
    return %c0_i32, %c0_i32_0 : i32, i32
  }
  func.func @transform_33(%arg0: i32) -> (i32, i32) {
    %c0_i32 = arith.constant 0 : i32
    %c0_i32_0 = arith.constant 0 : i32
    %c0_i32_1 = arith.constant 0 : i32
    return %c0_i32, %c0_i32_0 : i32, i32
  }
  func.func @transform_34(%arg0: i32) -> (i32, i32, i32) {
    %c0_i32 = arith.constant 0 : i32
    %c0_i32_0 = arith.constant 0 : i32
    %c0_i32_1 = arith.constant 0 : i32
    %c0_i32_2 = arith.constant 0 : i32
    return %c0_i32, %c0_i32_0, %c0_i32_1 : i32, i32, i32
  }
  func.func @transform_35(%arg0: i32) -> (i32, i32) {
    %c0_i32 = arith.constant 0 : i32
    %c0_i32_0 = arith.constant 0 : i32
    %c0_i32_1 = arith.constant 0 : i32
    return %c0_i32, %c0_i32_0 : i32, i32
  }
  func.func @transform_36(%arg0: i32) -> (i32, i32) {
    %c0_i32 = arith.constant 0 : i32
    %c0_i32_0 = arith.constant 0 : i32
    %c0_i32_1 = arith.constant 0 : i32
    return %c0_i32, %c0_i32_0 : i32, i32
  }
  func.func @transform_37(%arg0: i32) -> (i32, i32) {
    %c0_i32 = arith.constant 0 : i32
    %c0_i32_0 = arith.constant 0 : i32
    %c0_i32_1 = arith.constant 0 : i32
    return %c0_i32, %c0_i32_0 : i32, i32
  }
  func.func @transform_38(%arg0: i32) -> (i32, i32) {
    %c0_i32 = arith.constant 0 : i32
    %c0_i32_0 = arith.constant 0 : i32
    %c0_i32_1 = arith.constant 0 : i32
    return %c0_i32, %c0_i32_0 : i32, i32
  }
  func.func @transform_39(%arg0: i32) -> (i32, i32) {
    %c0_i32 = arith.constant 0 : i32
    %c0_i32_0 = arith.constant 0 : i32
    %c0_i32_1 = arith.constant 0 : i32
    return %c0_i32, %c0_i32_0 : i32, i32
  }
  func.func @transform_40(%arg0: i32) -> (i32, i32) {
    %c0_i32 = arith.constant 0 : i32
    %c0_i32_0 = arith.constant 0 : i32
    %c0_i32_1 = arith.constant 0 : i32
    return %c0_i32, %c0_i32_0 : i32, i32
  }
  func.func @transform_41(%arg0: i32) -> (i32, i32) {
    %c0_i32 = arith.constant 0 : i32
    %c0_i32_0 = arith.constant 0 : i32
    %c0_i32_1 = arith.constant 0 : i32
    return %c0_i32, %c0_i32_0 : i32, i32
  }
  func.func @transform_42(%arg0: i32) -> (i32, i32) {
    %c0_i32 = arith.constant 0 : i32
    %c0_i32_0 = arith.constant 0 : i32
    %c0_i32_1 = arith.constant 0 : i32
    return %c0_i32, %c0_i32_0 : i32, i32
  }
  func.func @transform_43(%arg0: i32) -> (i32, i32) {
    %c0_i32 = arith.constant 0 : i32
    %c0_i32_0 = arith.constant 0 : i32
    %c0_i32_1 = arith.constant 0 : i32
    return %c0_i32, %c0_i32_0 : i32, i32
  }
  func.func @transform_44(%arg0: i32) -> (i32, i32) {
    %c0_i32 = arith.constant 0 : i32
    %c0_i32_0 = arith.constant 0 : i32
    %c0_i32_1 = arith.constant 0 : i32
    return %c0_i32, %c0_i32_0 : i32, i32
  }
  func.func @transform_45(%arg0: i32) -> (i32, i32) {
    %c0_i32 = arith.constant 0 : i32
    %c0_i32_0 = arith.constant 0 : i32
    %c0_i32_1 = arith.constant 0 : i32
    return %c0_i32, %c0_i32_0 : i32, i32
  }
}

</mosaic_0001>

<bundles_post_ra>
// kernel: loss_forward.1
= control target key start
LH: loop header
LB: loop body
LE: loop exit
PB: predicated region body
PF: predicated region fallthrough
CT: control target
= control target key end

     0   :  { %s9385_s6 = smov 1   ;;  %s9386_s10 = smov 2   ;;  %s10631_s0 = inlined_call_operand.smem [shape: u32[46], index: -1, kind: input, shape index: {}] }
   0x1   :  { %s9472_s5 = sld [smem:[%s10631_s0]]   ;;  %s9387_s14 = smov 3  }
   0x2   :  { %s9477_s9 = sld [smem:[%s10631_s0 + %s9385_s6]]   ;;  %s9388_s18 = smov 4  }
   0x3   :  { %s9482_s13 = sld [smem:[%s10631_s0 + %s9386_s10]]   ;;  %s9389_s22 = smov 5  }
   0x4   :  { %s9487_s17 = sld [smem:[%s10631_s0 + %s9387_s14]]   ;;  %s9390_s26 = smov 6  }
   0x5   :  { %s9492_s21 = sld [smem:[%s10631_s0 + %s9388_s18]]   ;;  %s9391_s30 = smov 7  }
   0x6   :  { %s9497_s25 = sld [smem:[%s10631_s0 + %s9389_s22]]   ;;  %s9392_s4 = smov 8  }
   0x7   :  { %10647 = sst [smem:[#allocation55_spill]] %s9472_s5  ;;  %s9393_s10 = smov 9  }
   0x8   :  { %10648 = sst [smem:[#allocation56_spill]] %s9477_s9  ;;  %s9394_s15 = smov 10  }
   0x9   :  { %10649 = sst [smem:[#allocation57_spill]] %s9482_s13  ;;  %s9395_s20 = smov 11  }
   0xa   :  { %10650 = sst [smem:[#allocation58_spill]] %s9487_s17  ;;  %s9397_s1 = smov 13  }
   0xb   :  { %10651 = sst [smem:[#allocation59_spill]] %s9492_s21  ;;  %s9398_s7 = smov 14  }
   0xc   :  { %10652 = sst [smem:[#allocation60_spill]] %s9497_s25  ;;  %s9400_s22 = smov 16  }
   0xd   :  { %s9502_s29 = sld [smem:[%s10631_s0 + %s9390_s26]]   ;;  %s9396_s26 = smov 12  }
   0xe   :  { %s9507_s3 = sld [smem:[%s10631_s0 + %s9391_s30]]   ;;  %s9401_s28 = smov 17  }
   0xf   :  { %s9512_s8 = sld [smem:[%s10631_s0 + %s9392_s4]]  }
  0x10   :  { %s9517_s14 = sld [smem:[%s10631_s0 + %s9393_s10]]  }
  0x11   :  { %s9522_s19 = sld [smem:[%s10631_s0 + %s9394_s15]]   ;;  %s9399_s15 = smov 15  }
  0x12   :  { %s9527_s24 = sld [smem:[%s10631_s0 + %s9395_s20]]  }
  0x13   :  { %10653 = sst [smem:[#allocation61_spill]] %s9502_s29 }
  0x14   :  { %10654 = sst [smem:[#allocation62_spill]] %s9507_s3 }
  0x15   :  { %s9532_s30 = sld [smem:[%s10631_s0 + %s9396_s26]]  }
  0x16   :  { %s9537_s6 = sld [smem:[%s10631_s0 + %s9397_s1]]  }
  0x17   :  { %10655 = sst [smem:[#allocation63_spill]] %s9522_s19 }
  0x18   :  { %s9542_s12 = sld [smem:[%s10631_s0 + %s9398_s7]]   ;;  %s9402_s7 = smov 18  }
  0x19   :  { %s9547_s20 = sld [smem:[%s10631_s0 + %s9399_s15]]   ;;  %s9403_s15 = smov 19  }
  0x1a   :  { %s9552_s27 = sld [smem:[%s10631_s0 + %s9400_s22]]   ;;  %s9404_s22 = smov 20  }
  0x1b   :  { %10656 = sst [smem:[#allocation64_spill]] %s9532_s30 }
  0x1c   :  { %s9557_s4 = sld [smem:[%s10631_s0 + %s9401_s28]]   ;;  %s9405_s28 = smov 21  }
  0x1d   :  { %s9562_s13 = sld [smem:[%s10631_s0 + %s9402_s7]]   ;;  %s9406_s7 = smov 22  }
  0x1e   :  { %s9567_s21 = sld [smem:[%s10631_s0 + %s9403_s15]]   ;;  %s9407_s15 = smov 23  }
  0x1f   :  { %s9572_s3 = sld [smem:[%s10631_s0 + %s9404_s22]]   ;;  %s9408_s22 = smov 24  }
  0x20   :  { %10657 = sst [smem:[#allocation65_spill]] %s9552_s27 }
  0x21   :  { %s9577_s27 = sld [smem:[%s10631_s0 + %s9405_s28]]   ;;  %s9409_s28 = smov 25  }
  0x22   :  { %10658 = sst [smem:[#allocation66_spill]] %s9557_s4 }
  0x23   :  { %10659 = sst [smem:[#allocation67_spill]] %s9562_s13 }
  0x24   :  { %s9582_s13 = sld [smem:[%s10631_s0 + %s9406_s7]]   ;;  %s9410_s7 = smov 26  }
  0x25   :  { %10660 = sst [smem:[#allocation68_spill]] %s9572_s3 }
  0x26   :  { %s9587_s9 = sld [smem:[%s10631_s0 + %s9407_s15]]   ;;  %s9411_s15 = smov 27  }
  0x27   :  { %10661 = sst [smem:[#allocation69_spill]] %s9577_s27 }
  0x28   :  { %s9592_s3 = sld [smem:[%s10631_s0 + %s9408_s22]]   ;;  %s9412_s22 = smov 28  }
  0x29   :  { %s9597_s30 = sld [smem:[%s10631_s0 + %s9409_s28]]   ;;  %s9413_s28 = smov 29  }
  0x2a   :  { %s9602_s17 = sld [smem:[%s10631_s0 + %s9410_s7]]   ;;  %s9414_s7 = smov 30  }
  0x2b   :  { %s9607_s19 = sld [smem:[%s10631_s0 + %s9411_s15]]   ;;  %s9415_s15 = smov 31  }
  0x2c   :  { %10662 = sst [smem:[#allocation70_spill]] %s9587_s9 }
  0x2d   :  { %s9617_s29 = sld [smem:[%s10631_s0 + %s9413_s28]]   ;;  %s9417_s28 = smov 33  }
  0x2e   :  { %10663 = sst [smem:[#allocation71_spill]] %s9592_s3 }
  0x2f   :  { %s9612_s3 = sld [smem:[%s10631_s0 + %s9412_s22]]   ;;  %s9416_s22 = smov 32  }
  0x30   :  { %10664 = sst [smem:[#allocation72_spill]] %s9602_s17 }
  0x31   :  { %10665 = sst [smem:[#allocation73_spill]] %s9607_s19 }
  0x32   :  { %s9622_s17 = sld [smem:[%s10631_s0 + %s9414_s7]]   ;;  %s9418_s7 = smov 34  }
  0x33   :  { %10666 = sst [smem:[#allocation74_spill]] %s9617_s29 }
  0x34   :  { %s9627_s25 = sld [smem:[%s10631_s0 + %s9415_s15]]   ;;  %s9419_s15 = smov 35  }
  0x35   :  { %s9632_s5 = sld [smem:[%s10631_s0 + %s9416_s22]]   ;;  %s9420_s22 = smov 36  }
  0x36   :  { %s9637_s29 = sld [smem:[%s10631_s0 + %s9417_s28]]   ;;  %s9421_s28 = smov 37  }
  0x37   :  { %s9647_s19 = sld [smem:[%s10631_s0 + %s9419_s15]]   ;;  %s9423_s15 = smov 39  }
  0x38   :  { %10667 = sst [smem:[#allocation75_spill]] %s9622_s17 }
  0x39   :  { %s9642_s17 = sld [smem:[%s10631_s0 + %s9418_s7]]   ;;  %s9422_s7 = smov 38  }
  0x3a   :  { %s9667_s9 = sld [smem:[%s10631_s0 + %s9423_s15]]   ;;  %s9427_s15 = smov 43  }
  0x3b   :  { %10668 = sst [smem:[#allocation76_spill]] %s9632_s5 }
  0x3c   :  { %10669 = sst [smem:[#allocation77_spill]] %s9637_s29 }
  0x3d   :  { %s9652_s5 = sld [smem:[%s10631_s0 + %s9420_s22]]   ;;  %s9424_s22 = smov 40  }
  0x3e   :  { %s9657_s29 = sld [smem:[%s10631_s0 + %s9421_s28]]   ;;  %s9425_s28 = smov 41  }
  0x3f   :  { %10670 = sst [smem:[#allocation78_spill]] %s9642_s17 }
  0x40   :  { %s9662_s17 = sld [smem:[%s10631_s0 + %s9422_s7]]   ;;  %s9426_s7 = smov 42  }
  0x41   :  { %10673 = sst [smem:[#allocation81_spill]] %s9667_s9 }
  0x42   :  { %s9677_s27 = sld [smem:[%s10631_s0 + %s9425_s28]]   ;;  %s9429_s28 = smov 45  }
  0x43   :  { %10671 = sst [smem:[#allocation79_spill]] %s9652_s5 }
  0x44   :  { %s9672_s5 = sld [smem:[%s10631_s0 + %s9424_s22]]   ;;  %s9428_s22 = smov 44  }
  0x45   :  { %s9687_s9 = sld [smem:[%s10631_s0 + %s9427_s15]]  }
  0x46   :  { %10672 = sst [smem:[#allocation80_spill]] %s9662_s17 }
  0x47   :  { %s9682_s17 = sld [smem:[%s10631_s0 + %s9426_s7]]  }
  0x48   :  { %s9697_s4 = sld [smem:[%s10631_s0 + %s9429_s28]]  }
  0x4a   :  { %10674 = sst [smem:[#allocation82_spill]] %s9672_s5 }
  0x4b   :  { %s9692_s5 = sld [smem:[%s10631_s0 + %s9428_s22]]  }
  0x4c   :  { %96 = vsyncpa [#allocation3], 0 }
  0x4d   :  { %97 = vsyncpa [#allocation6], 0 }
  0x4e   :  { %98 = vsyncpa [#allocation9], 0 }
  0x4f   :  { %99 = vsyncpa [#allocation12], 0 }
  0x50   :  { %100 = vsyncpa [#allocation15], 0 }
  0x51   :  { %101 = vsyncpa [#allocation18], 0 }
  0x52   :  { %102 = vsyncpa [#allocation21], 0 }
  0x53   :  { %103 = vsyncpa [#allocation24], 0 }
  0x54   :  { %104 = vsyncpa [#allocation27], 0 }
  0x55   :  { %105 = vsyncpa [#allocation30], 0 }
  0x56   :  { %106 = vsyncpa [#allocation33], 0 }
  0x57   :  { %107 = vsyncpa [#allocation36], 0 }
  0x58   :  { %108 = vsyncpa [#allocation39], 0 }
  0x59   :  { %109 = vsyncpa [#allocation4], 0  ;;  %s9430_s7 = smov [#allocation5]   ;;  %s9431_s11 = smov [#allocation8]  }
  0x5a   :  { %s142_s10 = sshll.u32 %s9430_s7, 4  ;;  %s166_s15 = sshll.u32 %s9431_s11, 4  ;;  %s143_s10 = int_to_ptr.vmem [resolvable:$true] %s142_s10  ;;  %s167_s15 = int_to_ptr.vmem [resolvable:$true] %s166_s15 }
  0x5b   :  { %s8865_s0 = scalar_lea.vmem %s143_s10, 16  ;;  %s8869_s16 = scalar_lea.vmem %s143_s10, 32 }
  0x5c   :  { %p8866_p0 = scmp.ne.s32.totalorder %s143_s10, %s8865_s0  ;;  %p8870_p1 = scmp.lt.s32.totalorder %s143_s10, %s143_s10 }
  0x5d   :  { %p8871_p2 = scmp.lt.s32.totalorder %s8869_s16, %s8865_s0 }
  0x5f   :  { %p8872_p3 = por %p8871_p2, %p8870_p1 }
  0x61   :  { %p8873_p4 = pnand %p8872_p3, %p8866_p0 }
  0x63   :  { %8876 = shalt.err (!%p8873_p4)
}
  0x64   :  { %145 = dma.hbm_to_vmem [thread:$0]  %s9517_s14, 16, %s143_s10, [#allocation6]  }
  0x65   :  { %s8885_s18 = scalar_lea.vmem %s167_s15, 16  ;;  %s8889_s22 = scalar_lea.vmem %s167_s15, 32 }
  0x66   :  { %p8886_p5 = scmp.ne.s32.totalorder %s167_s15, %s8885_s18  ;;  %p8890_p6 = scmp.lt.s32.totalorder %s167_s15, %s167_s15 }
  0x67   :  { %p8891_p7 = scmp.lt.s32.totalorder %s8889_s22, %s8885_s18 }
  0x69   :  { %p8892_p8 = por %p8891_p7, %p8890_p6 }
  0x6b   :  { %p8893_p9 = pnand %p8892_p8, %p8886_p5 }
  0x6d   :  { %8896 = shalt.err (!%p8893_p9)
}
  0x6e   :  { %169 = dma.hbm_to_vmem [thread:$0]  %s9537_s6, 16, %s167_s15, [#allocation9]  }
  0x6f   :  { %s9432_s23 = smov [#allocation11]   ;;  %s9433_s28 = smov [#allocation14]  }
  0x70   :  { %s186_s26 = sshll.u32 %s9432_s23, 4  ;;  %s210_s1 = sshll.u32 %s9433_s28, 4  ;;  %s187_s26 = int_to_ptr.vmem [resolvable:$true] %s186_s26  ;;  %s211_s1 = int_to_ptr.vmem [resolvable:$true] %s210_s1 }
  0x71   :  { %s8905_s2 = scalar_lea.vmem %s187_s26, 16  ;;  %s8909_s7 = scalar_lea.vmem %s187_s26, 32 }
  0x72   :  { %p8906_p10 = scmp.ne.s32.totalorder %s187_s26, %s8905_s2  ;;  %p8910_p11 = scmp.lt.s32.totalorder %s187_s26, %s187_s26 }
  0x73   :  { %p8911_p12 = scmp.lt.s32.totalorder %s8909_s7, %s8905_s2 }
  0x75   :  { %p8912_p13 = por %p8911_p12, %p8910_p11 }
  0x77   :  { %p8913_p0 = pnand %p8912_p13, %p8906_p10 }
  0x79   :  { %8916 = shalt.err (!%p8913_p0)
}
  0x7a   :  { %189 = dma.hbm_to_vmem [thread:$0]  %s9547_s20, 16, %s187_s26, [#allocation12]  }
  0x7b   :  { %s8925_s14 = scalar_lea.vmem %s211_s1, 16  ;;  %s8929_s10 = scalar_lea.vmem %s211_s1, 32 }
  0x7c   :  { %p8926_p1 = scmp.ne.s32.totalorder %s211_s1, %s8925_s14  ;;  %p8930_p2 = scmp.lt.s32.totalorder %s211_s1, %s211_s1 }
  0x7d   :  { %p8931_p3 = scmp.lt.s32.totalorder %s8929_s10, %s8925_s14 }
  0x7f   :  { %p8932_p4 = por %p8931_p3, %p8930_p2 }
  0x81   :  { %p8933_p5 = pnand %p8932_p4, %p8926_p1 }
  0x83   :  { %8936 = shalt.err (!%p8933_p5)
}
  0x84   :  { %213 = dma.hbm_to_vmem [thread:$0]  %s9567_s21, 16, %s211_s1, [#allocation15]  }
  0x85   :  { %s9434_s6 = smov [#allocation17]   ;;  %s9435_s15 = smov [#allocation20]  }
  0x86   :  { %s232_s11 = sshll.u32 %s9434_s6, 4  ;;  %s254_s0 = sshll.u32 %s9435_s15, 4  ;;  %s233_s11 = int_to_ptr.vmem [resolvable:$true] %s232_s11  ;;  %s255_s0 = int_to_ptr.vmem [resolvable:$true] %s254_s0 }
  0x87   :  { %s8945_s16 = scalar_lea.vmem %s233_s11, 16  ;;  %s8949_s18 = scalar_lea.vmem %s233_s11, 32 }
  0x88   :  { %p8946_p6 = scmp.ne.s32.totalorder %s233_s11, %s8945_s16  ;;  %p8950_p7 = scmp.lt.s32.totalorder %s233_s11, %s233_s11 }
  0x89   :  { %p8951_p8 = scmp.lt.s32.totalorder %s8949_s18, %s8945_s16 }
  0x8b   :  { %p8952_p9 = por %p8951_p8, %p8950_p7 }
  0x8d   :  { %p8953_p10 = pnand %p8952_p9, %p8946_p6 }
  0x8f   :  { %8956 = shalt.err (!%p8953_p10)
}
  0x90   :  { %235 = dma.hbm_to_vmem [thread:$0]  %s9582_s13, 16, %s233_s11, [#allocation18]  }
  0x91   :  { %s8965_s20 = scalar_lea.vmem %s255_s0, 16  ;;  %s8969_s22 = scalar_lea.vmem %s255_s0, 32 }
  0x92   :  { %p8966_p11 = scmp.ne.s32.totalorder %s255_s0, %s8965_s20  ;;  %p8970_p12 = scmp.lt.s32.totalorder %s255_s0, %s255_s0 }
  0x93   :  { %p8971_p13 = scmp.lt.s32.totalorder %s8969_s22, %s8965_s20 }
  0x95   :  { %p8972_p0 = por %p8971_p13, %p8970_p12 }
  0x97   :  { %p8973_p1 = pnand %p8972_p0, %p8966_p11 }
  0x99   :  { %8976 = shalt.err (!%p8973_p1)
}
  0x9a   :  { %257 = dma.hbm_to_vmem [thread:$0]  %s9597_s30, 16, %s255_s0, [#allocation21]  }
  0x9b   :  { %s9436_s21 = smov [#allocation23]   ;;  %s9437_s26 = smov [#allocation26]  }
  0x9c   :  { %s276_s23 = sshll.u32 %s9436_s21, 4  ;;  %s298_s28 = sshll.u32 %s9437_s26, 4  ;;  %s277_s23 = int_to_ptr.vmem [resolvable:$true] %s276_s23  ;;  %s299_s28 = int_to_ptr.vmem [resolvable:$true] %s298_s28 }
  0x9d   :  { %s8985_s1 = scalar_lea.vmem %s277_s23, 16  ;;  %s8989_s2 = scalar_lea.vmem %s277_s23, 32 }
  0x9e   :  { %p8986_p2 = scmp.ne.s32.totalorder %s277_s23, %s8985_s1  ;;  %p8990_p3 = scmp.lt.s32.totalorder %s277_s23, %s277_s23 }
  0x9f   :  { %p8991_p4 = scmp.lt.s32.totalorder %s8989_s2, %s8985_s1 }
  0xa1   :  { %p8992_p5 = por %p8991_p4, %p8990_p3 }
  0xa3   :  { %p8993_p6 = pnand %p8992_p5, %p8986_p2 }
  0xa5   :  { %8996 = shalt.err (!%p8993_p6)
}
  0xa6   :  { %279 = dma.hbm_to_vmem [thread:$0]  %s9612_s3, 16, %s277_s23, [#allocation24]  }
  0xa7   :  { %s9005_s13 = scalar_lea.vmem %s299_s28, 16  ;;  %s9009_s7 = scalar_lea.vmem %s299_s28, 32 }
  0xa8   :  { %p9006_p7 = scmp.ne.s32.totalorder %s299_s28, %s9005_s13  ;;  %p9010_p8 = scmp.lt.s32.totalorder %s299_s28, %s299_s28 }
  0xa9   :  { %p9011_p9 = scmp.lt.s32.totalorder %s9009_s7, %s9005_s13 }
  0xab   :  { %p9012_p10 = por %p9011_p9, %p9010_p8 }
  0xad   :  { %p9013_p11 = pnand %p9012_p10, %p9006_p7 }
  0xaf   :  { %9016 = shalt.err (!%p9013_p11)
}
  0xb0   :  { %301 = dma.hbm_to_vmem [thread:$0]  %s9627_s25, 16, %s299_s28, [#allocation27]  }
  0xb1   :  { %s9438_s30 = smov [#allocation29]   ;;  %s9439_s10 = smov [#allocation32]  }
  0xb2   :  { %s322_s14 = sshll.u32 %s9438_s30, 4  ;;  %s342_s6 = sshll.u32 %s9439_s10, 4  ;;  %s323_s14 = int_to_ptr.vmem [resolvable:$true] %s322_s14  ;;  %s343_s6 = int_to_ptr.vmem [resolvable:$true] %s342_s6 }
  0xb3   :  { %s9025_s11 = scalar_lea.vmem %s323_s14, 16  ;;  %s9029_s15 = scalar_lea.vmem %s323_s14, 32 }
  0xb4   :  { %p9026_p12 = scmp.ne.s32.totalorder %s323_s14, %s9025_s11  ;;  %p9030_p13 = scmp.lt.s32.totalorder %s323_s14, %s323_s14 }
  0xb5   :  { %p9031_p0 = scmp.lt.s32.totalorder %s9029_s15, %s9025_s11 }
  0xb7   :  { %p9032_p1 = por %p9031_p0, %p9030_p13 }
  0xb9   :  { %p9033_p2 = pnand %p9032_p1, %p9026_p12 }
  0xbb   :  { %9036 = shalt.err (!%p9033_p2)
}
  0xbc   :  { %325 = dma.hbm_to_vmem [thread:$0]  %s9647_s19, 16, %s323_s14, [#allocation30]  }
  0xbd   :  { %s9045_s3 = scalar_lea.vmem %s343_s6, 16  ;;  %s9049_s0 = scalar_lea.vmem %s343_s6, 32 }
  0xbe   :  { %p9046_p3 = scmp.ne.s32.totalorder %s343_s6, %s9045_s3  ;;  %p9050_p4 = scmp.lt.s32.totalorder %s343_s6, %s343_s6 }
  0xbf   :  { %p9051_p5 = scmp.lt.s32.totalorder %s9049_s0, %s9045_s3 }
  0xc1   :  { %p9052_p6 = por %p9051_p5, %p9050_p4 }
  0xc3   :  { %p9053_p7 = pnand %p9052_p6, %p9046_p3 }
  0xc5   :  { %9056 = shalt.err (!%p9053_p7)
}
  0xc6   :  { %345 = dma.hbm_to_vmem [thread:$0]  %s9657_s29, 16, %s343_s6, [#allocation33]  }
  0xc7   :  { %s9440_s25 = smov [#allocation35]   ;;  %s9441_s18 = smov [#allocation2]  }
  0xc8   :  { %s366_s16 = sshll.u32 %s9440_s25, 4  ;;  %s132_s20 = sshll.u32 %s9441_s18, 4  ;;  %s367_s16 = int_to_ptr.vmem [resolvable:$true] %s366_s16  ;;  %s133_s20 = int_to_ptr.vmem [resolvable:$true] %s132_s20 }
  0xc9   :  { %s9065_s22 = scalar_lea.vmem %s367_s16, 16  ;;  %s9069_s21 = scalar_lea.vmem %s367_s16, 32 }
  0xca   :  { %p9066_p8 = scmp.ne.s32.totalorder %s367_s16, %s9065_s22  ;;  %p9070_p9 = scmp.lt.s32.totalorder %s367_s16, %s367_s16 }
  0xcb   :  { %p9071_p10 = scmp.lt.s32.totalorder %s9069_s21, %s9065_s22 }
  0xcd   :  { %p9072_p11 = por %p9071_p10, %p9070_p9 }
  0xcf   :  { %p9073_p12 = pnand %p9072_p11, %p9066_p8 }
  0xd1   :  { %9076 = shalt.err (!%p9073_p12)
}
  0xd2   :  { %369 = dma.hbm_to_vmem [thread:$0]  %s9677_s27, 16, %s367_s16, [#allocation36]  }
  0xd3   :  { %s9085_s19 = scalar_lea.vmem %s133_s20, 16  ;;  %s9089_s23 = scalar_lea.vmem %s133_s20, 32 }
  0xd4   :  { %p9086_p13 = scmp.ne.s32.totalorder %s133_s20, %s9085_s19  ;;  %p9090_p0 = scmp.lt.s32.totalorder %s133_s20, %s133_s20 }
  0xd5   :  { %p9091_p1 = scmp.lt.s32.totalorder %s9089_s23, %s9085_s19 }
  0xd7   :  { %p9092_p2 = por %p9091_p1, %p9090_p0 }
  0xd9   :  { %p9093_p3 = pnand %p9092_p2, %p9086_p13 }
  0xdb   :  { %9096 = shalt.err (!%p9093_p3)
}
  0xdc   :  { %135 = dma.hbm_to_vmem [thread:$0]  %s9512_s8, 16, %s133_s20, [#allocation3]  }
  0xdd   :  { %s9442_s29 = smov [#allocation7]   ;;  %s9443_s28 = smov [#allocation10]  }
  0xde   :  { %s154_s26 = sshll.u32 %s9442_s29, 4  ;;  %s176_s1 = sshll.u32 %s9443_s28, 4  ;;  %s155_s26 = int_to_ptr.vmem [resolvable:$true] %s154_s26  ;;  %s177_s1 = int_to_ptr.vmem [resolvable:$true] %s176_s1 }
  0xdf   :  { %s9105_s2 = scalar_lea.vmem %s155_s26, 16  ;;  %s9109_s13 = scalar_lea.vmem %s155_s26, 32 }
  0xe0   :  { %p9106_p4 = scmp.ne.s32.totalorder %s155_s26, %s9105_s2  ;;  %p9110_p5 = scmp.lt.s32.totalorder %s155_s26, %s155_s26 }
  0xe1   :  { %p9111_p6 = scmp.lt.s32.totalorder %s9109_s13, %s9105_s2 }
  0xe3   :  { %p9112_p7 = por %p9111_p6, %p9110_p5 }
  0xe5   :  { %p9113_p8 = pnand %p9112_p7, %p9106_p4 }
  0xe7   :  { %9116 = shalt.err (!%p9113_p8)
}
  0xe8   :  { %157 = dma.hbm_to_vmem [thread:$0]  %s9527_s24, 16, %s155_s26, [#allocation6]  }
  0xe9   :  { %s9125_s27 = scalar_lea.vmem %s177_s1, 16  ;;  %s9129_s7 = scalar_lea.vmem %s177_s1, 32 }
  0xea   :  { %p9126_p9 = scmp.ne.s32.totalorder %s177_s1, %s9125_s27  ;;  %p9130_p10 = scmp.lt.s32.totalorder %s177_s1, %s177_s1 }
  0xeb   :  { %p9131_p11 = scmp.lt.s32.totalorder %s9129_s7, %s9125_s27 }
  0xed   :  { %p9132_p12 = por %p9131_p11, %p9130_p10 }
  0xef   :  { %p9133_p13 = pnand %p9132_p12, %p9126_p9 }
  0xf1   :  { %9136 = shalt.err (!%p9133_p13)
}
  0xf2   :  { %179 = dma.hbm_to_vmem [thread:$0]  %s9542_s12, 16, %s177_s1, [#allocation9]  }
  0xf3   :  { %s9444_s8 = smov [#allocation13]   ;;  %s9445_s14 = smov [#allocation16]  }
  0xf4   :  { %s198_s30 = sshll.u32 %s9444_s8, 4  ;;  %s222_s10 = sshll.u32 %s9445_s14, 4  ;;  %s199_s30 = int_to_ptr.vmem [resolvable:$true] %s198_s30  ;;  %s223_s10 = int_to_ptr.vmem [resolvable:$true] %s222_s10 }
  0xf5   :  { %s9145_s6 = scalar_lea.vmem %s199_s30, 16  ;;  %s9149_s11 = scalar_lea.vmem %s199_s30, 32 }
  0xf6   :  { %p9146_p0 = scmp.ne.s32.totalorder %s199_s30, %s9145_s6  ;;  %p9150_p1 = scmp.lt.s32.totalorder %s199_s30, %s199_s30 }
  0xf7   :  { %p9151_p2 = scmp.lt.s32.totalorder %s9149_s11, %s9145_s6 }
  0xf9   :  { %p9152_p3 = por %p9151_p2, %p9150_p1 }
  0xfb   :  { %p9153_p4 = pnand %p9152_p3, %p9146_p0 }
  0xfd   :  { %9156 = shalt.err (!%p9153_p4)
}
  0xfe   :  { %s10675_s24 = sld [smem:[#allocation66_spill]]  ;;  %s9165_s15 = scalar_lea.vmem %s223_s10, 16 }
  0xff   :  { %p9166_p5 = scmp.ne.s32.totalorder %s223_s10, %s9165_s15  ;;  %s9169_s3 = scalar_lea.vmem %s223_s10, 32 }
 0x100   :  { %p9170_p6 = scmp.lt.s32.totalorder %s223_s10, %s223_s10  ;;  %p9171_p7 = scmp.lt.s32.totalorder %s9169_s3, %s9165_s15 }
 0x102   :  { %p9172_p8 = por %p9171_p7, %p9170_p6 }
 0x104   :  { %201 = dma.hbm_to_vmem [thread:$0]  %s10675_s24, 16, %s199_s30, [#allocation12]  }
 0x105   :  { %p9173_p9 = pnand %p9172_p8, %p9166_p5 }
 0x107   :  { %9176 = shalt.err (!%p9173_p9)
}
 0x108   :  { %s10676_s12 = sld [smem:[#allocation69_spill]]  ;;  %s9446_s0 = smov [#allocation19]  }
 0x109   :  { %s242_s25 = sshll.u32 %s9446_s0, 4  ;;  %s9447_s16 = smov [#allocation22]   ;;  %s243_s25 = int_to_ptr.vmem [resolvable:$true] %s242_s25 }
 0x10a   :  { %s266_s18 = sshll.u32 %s9447_s16, 4  ;;  %s9185_s20 = scalar_lea.vmem %s243_s25, 16  ;;  %s267_s18 = int_to_ptr.vmem [resolvable:$true] %s266_s18 }
 0x10b   :  { %p9186_p10 = scmp.ne.s32.totalorder %s243_s25, %s9185_s20  ;;  %s9189_s22 = scalar_lea.vmem %s243_s25, 32 }
 0x10c   :  { %p9190_p11 = scmp.lt.s32.totalorder %s243_s25, %s243_s25  ;;  %p9191_p12 = scmp.lt.s32.totalorder %s9189_s22, %s9185_s20 }
 0x10e   :  { %225 = dma.hbm_to_vmem [thread:$0]  %s10676_s12, 16, %s223_s10, [#allocation15]  }
 0x10f   :  { %p9192_p13 = por %p9191_p12, %p9190_p11 }
 0x111   :  { %p9193_p0 = pnand %p9192_p13, %p9186_p10 }
 0x113   :  { %9196 = shalt.err (!%p9193_p0)
}
 0x114   :  { %s10677_s21 = sld [smem:[#allocation70_spill]]  ;;  %s9205_s19 = scalar_lea.vmem %s267_s18, 16 }
 0x115   :  { %p9206_p1 = scmp.ne.s32.totalorder %s267_s18, %s9205_s19  ;;  %s9209_s23 = scalar_lea.vmem %s267_s18, 32 }
 0x116   :  { %p9210_p2 = scmp.lt.s32.totalorder %s267_s18, %s267_s18  ;;  %p9211_p3 = scmp.lt.s32.totalorder %s9209_s23, %s9205_s19 }
 0x118   :  { %p9212_p4 = por %p9211_p3, %p9210_p2 }
 0x11a   :  { %245 = dma.hbm_to_vmem [thread:$0]  %s10677_s21, 16, %s243_s25, [#allocation18]  }
 0x11b   :  { %p9213_p5 = pnand %p9212_p4, %p9206_p1 }
 0x11d   :  { %9216 = shalt.err (!%p9213_p5)
}
 0x11e   :  { %s10678_s29 = sld [smem:[#allocation73_spill]]  ;;  %s9448_s26 = smov [#allocation25]  }
 0x11f   :  { %s286_s28 = sshll.u32 %s9448_s26, 4  ;;  %s9449_s1 = smov [#allocation28]   ;;  %s287_s28 = int_to_ptr.vmem [resolvable:$true] %s286_s28 }
 0x120   :  { %s310_s2 = sshll.u32 %s9449_s1, 4  ;;  %s9225_s13 = scalar_lea.vmem %s287_s28, 16  ;;  %s311_s2 = int_to_ptr.vmem [resolvable:$true] %s310_s2 }
 0x121   :  { %p9226_p6 = scmp.ne.s32.totalorder %s287_s28, %s9225_s13  ;;  %s9229_s27 = scalar_lea.vmem %s287_s28, 32 }
 0x122   :  { %p9230_p7 = scmp.lt.s32.totalorder %s287_s28, %s287_s28  ;;  %p9231_p8 = scmp.lt.s32.totalorder %s9229_s27, %s9225_s13 }
 0x124   :  { %269 = dma.hbm_to_vmem [thread:$0]  %s10678_s29, 16, %s267_s18, [#allocation21]  }
 0x125   :  { %p9232_p9 = por %p9231_p8, %p9230_p7 }
 0x127   :  { %p9233_p10 = pnand %p9232_p9, %p9226_p6 }
 0x129   :  { %9236 = shalt.err (!%p9233_p10)
}
 0x12a   :  { %s10679_s7 = sld [smem:[#allocation74_spill]]  ;;  %s9245_s8 = scalar_lea.vmem %s311_s2, 16 }
 0x12b   :  { %p9246_p11 = scmp.ne.s32.totalorder %s311_s2, %s9245_s8  ;;  %s9249_s30 = scalar_lea.vmem %s311_s2, 32 }
 0x12c   :  { %p9250_p12 = scmp.lt.s32.totalorder %s311_s2, %s311_s2  ;;  %p9251_p13 = scmp.lt.s32.totalorder %s9249_s30, %s9245_s8 }
 0x12e   :  { %p9252_p0 = por %p9251_p13, %p9250_p12 }
 0x130   :  { %289 = dma.hbm_to_vmem [thread:$0]  %s10679_s7, 16, %s287_s28, [#allocation24]  }
 0x131   :  { %p9253_p1 = pnand %p9252_p0, %p9246_p11 }
 0x133   :  { %9256 = shalt.err (!%p9253_p1)
}
 0x134   :  { %s10680_s14 = sld [smem:[#allocation77_spill]]  ;;  %s9450_s10 = smov [#allocation31]  }
 0x135   :  { %s332_s6 = sshll.u32 %s9450_s10, 4  ;;  %s9451_s11 = smov [#allocation34]   ;;  %s333_s6 = int_to_ptr.vmem [resolvable:$true] %s332_s6 }
 0x136   :  { %s354_s24 = sshll.u32 %s9451_s11, 4  ;;  %s9265_s15 = scalar_lea.vmem %s333_s6, 16  ;;  %s355_s24 = int_to_ptr.vmem [resolvable:$true] %s354_s24 }
 0x137   :  { %p9266_p2 = scmp.ne.s32.totalorder %s333_s6, %s9265_s15  ;;  %s9269_s3 = scalar_lea.vmem %s333_s6, 32 }
 0x138   :  { %p9270_p3 = scmp.lt.s32.totalorder %s333_s6, %s333_s6  ;;  %p9271_p4 = scmp.lt.s32.totalorder %s9269_s3, %s9265_s15 }
 0x13a   :  { %313 = dma.hbm_to_vmem [thread:$0]  %s10680_s14, 16, %s311_s2, [#allocation27]  }
 0x13b   :  { %p9272_p5 = por %p9271_p4, %p9270_p3 }
 0x13d   :  { %p9273_p6 = pnand %p9272_p5, %p9266_p2 }
 0x13f   :  { %9276 = shalt.err (!%p9273_p6)
}
 0x140   :  { %s10681_s12 = sld [smem:[#allocation79_spill]]  ;;  %s9285_s0 = scalar_lea.vmem %s355_s24, 16 }
 0x141   :  { %p9286_p7 = scmp.ne.s32.totalorder %s355_s24, %s9285_s0  ;;  %s9289_s25 = scalar_lea.vmem %s355_s24, 32 }
 0x142   :  { %p9290_p8 = scmp.lt.s32.totalorder %s355_s24, %s355_s24  ;;  %p9291_p9 = scmp.lt.s32.totalorder %s9289_s25, %s9285_s0 }
 0x144   :  { %p9292_p10 = por %p9291_p9, %p9290_p8 }
 0x146   :  { %335 = dma.hbm_to_vmem [thread:$0]  %s10681_s12, 16, %s333_s6, [#allocation30]  }
 0x147   :  { %p9293_p11 = pnand %p9292_p10, %p9286_p7 }
 0x149   :  { %9296 = shalt.err (!%p9293_p11)
}
 0x14a   :  { %s10682_s16 = sld [smem:[#allocation81_spill]]  ;;  %s9452_s18 = smov [#allocation37]  }
 0x14b   :  { %s376_s20 = sshll.u32 %s9452_s18, 4  ;;  %s9453_s22 = smov [#allocation38]   ;;  %s377_s20 = int_to_ptr.vmem [resolvable:$true] %s376_s20 }
 0x14c   :  { %s386_s21 = sshll.u32 %s9453_s22, 4  ;;  %s9305_s19 = scalar_lea.vmem %s377_s20, 16  ;;  %s387_s21 = int_to_ptr.vmem [resolvable:$true] %s386_s21 }
 0x14d   :  { %p9306_p12 = scmp.ne.s32.totalorder %s377_s20, %s9305_s19  ;;  %s9309_s23 = scalar_lea.vmem %s377_s20, 32 }
 0x14e   :  { %p9310_p13 = scmp.lt.s32.totalorder %s377_s20, %s377_s20  ;;  %p9311_p0 = scmp.lt.s32.totalorder %s9309_s23, %s9305_s19 }
 0x150   :  { %357 = dma.hbm_to_vmem [thread:$0]  %s10682_s16, 16, %s355_s24, [#allocation33]  }
 0x151   :  { %p9312_p1 = por %p9311_p0, %p9310_p13 }
 0x153   :  { %p9313_p2 = pnand %p9312_p1, %p9306_p12 }
 0x155   :  { %9316 = shalt.err (!%p9313_p2)
}
 0x156   :  { %379 = dma.hbm_to_vmem [thread:$0]  %s9682_s17, 16, %s377_s20, [#allocation36]  }
 0x157   :  { %s9325_s29 = scalar_lea.vmem %s387_s21, 16  ;;  %s9329_s26 = scalar_lea.vmem %s387_s21, 32 }
 0x158   :  { %p9326_p3 = scmp.ne.s32.totalorder %s387_s21, %s9325_s29  ;;  %p9330_p4 = scmp.lt.s32.totalorder %s387_s21, %s387_s21 }
 0x159   :  { %p9331_p5 = scmp.lt.s32.totalorder %s9329_s26, %s9325_s29 }
 0x15b   :  { %p9332_p6 = por %p9331_p5, %p9330_p4 }
 0x15d   :  { %p9333_p7 = pnand %p9332_p6, %p9326_p3 }
 0x15f   :  { %9336 = shalt.err (!%p9333_p7)
}
 0x160   :  { %389 = dma.hbm_to_vmem [thread:$0]  %s9687_s9, 16, %s387_s21, [#allocation39]  }
 0x161   :  { %9357 = dma.done.wait [#allocation3], 16  }
 0x162   :  { %9358 = vsyncadd [#allocation3], 4294967280 }
 0x163   :  { %9359 = dma.done.wait [#allocation6], 32  }
 0x164   :  { %9360 = vsyncadd [#allocation6], 4294967264 }
 0x165   :  { %9361 = dma.done.wait [#allocation9], 32  }
 0x166   :  { %9362 = vsyncadd [#allocation9], 4294967264 }
 0x167   :  { %9363 = dma.done.wait [#allocation12], 32  }
 0x168   :  { %9364 = vsyncadd [#allocation12], 4294967264 }
 0x169   :  { %9365 = dma.done.wait [#allocation15], 32  }
 0x16a   :  { %9366 = vsyncadd [#allocation15], 4294967264 }
 0x16b   :  { %9367 = dma.done.wait [#allocation18], 32  }
 0x16c   :  { %9368 = vsyncadd [#allocation18], 4294967264 }
 0x16d   :  { %9369 = dma.done.wait [#allocation21], 32  }
 0x16e   :  { %9370 = vsyncadd [#allocation21], 4294967264 }
 0x16f   :  { %9371 = dma.done.wait [#allocation24], 32  }
 0x170   :  { %9372 = vsyncadd [#allocation24], 4294967264 }
 0x171   :  { %9373 = dma.done.wait [#allocation27], 32  }
 0x172   :  { %9374 = vsyncadd [#allocation27], 4294967264 }
 0x173   :  { %9375 = dma.done.wait [#allocation30], 32  }
 0x174   :  { %9376 = vsyncadd [#allocation30], 4294967264 }
 0x175   :  { %9377 = dma.done.wait [#allocation33], 32  }
 0x176   :  { %9378 = vsyncadd [#allocation33], 4294967264 }
 0x177   :  { %9379 = dma.done.wait [#allocation36], 32  }
 0x178   :  { %9380 = vsyncadd [#allocation36], 4294967264 }
 0x179   :  { %9381 = dma.done.wait [#allocation39], 16  }
 0x17a   :  { %9382 = vsyncadd [#allocation39], 4294967280  ;;  %s10683_s9 = sld [smem:[#allocation55_spill]]  ;;  %v9454_v0 = vmov 0   ;;  %v9455_v11 = vmov 0.0   ;;  %v558_v12 = vlaneseq  ;;  %vm572_vm0 = vcmask 523264  }
 0x17b   :  { %s10684_s17 = sld [smem:[#allocation60_spill]]  ;;  %8723 = vset.pattern.permute.xlu0 %v9454_v0  ;;  %8724 = vset.pattern.permute.xlu1 %v9454_v0  ;;  %vm660_vm3 = vcmask 261120   ;;  %v7759_v48 = vld [vmem:[#allocation2] ss:$0 sm:$0xff]  ;;  %v7760_v50 = vld [vmem:[#allocation5] ss:$0 sm:$0xff] }
 0x17c   :  { %s10685_s28 = sld [smem:[#allocation61_spill]]  ;;  %v9767_v13 = vand.u32 127, %v558_v12  ;;  %v7761_v57 = vld [vmem:[#allocation7] ss:$0 sm:$0xff]  ;;  %s9456_s2 = smov 120   ;;  %vm9457_vm4 = vmmov 0  }
 0x17d   :  { %s10686_s1 = sld [smem:[#allocation63_spill]]  ;;  %s9458_s13 = smov 112   ;;  %vm804_vm5 = vcmask 64512   ;;  %vm7669_vm14 = vcmask 7168   ;;  %vm7680_vm15 = vcmask 0  }
 0x17e   :  { %s9459_s27 = smov 104   ;;  %s9460_s7 = smov 96   ;;  %vm7622_vm9 = vcmp.lt.s32.totalorder %v9767_v13, 64 }
 0x17f   :  { %s10687_s8 = sld [smem:[#allocation58_spill]]  ;;  %s9461_s30 = smov 64  }
 0x180   :  { %v555_v1 = vld [vmem:[%s10683_s9] sm:$0xff]  ;;  %v556_v4 = vld [vmem:[%s10683_s9 + $0x8] sm:$0xff]  ;;  %s10688_s14 = sld [smem:[#allocation64_spill]]  ;;  %s9463_s21 = smov [#allocation40]  }
 0x181   :  { %v9725_v2 = vld [vmem:[%s10684_s17 + $0x38] sm:$0xff]  ;;  %561 = vperm.xlu0 %8723, %v555_v1   ;;  %v9729_v3 = vld [vmem:[%s10684_s17 + $0x30] sm:$0xff]  ;;  %v9734_v5 = vld [vmem:[%s10684_s17 + $0x28] sm:$0xff]  ;;  %s10689_s10 = sld [smem:[#allocation56_spill]]  ;;  %s7688_s19 = sshll.u32 %s9463_s21, 4  ;;  %s7689_s19 = int_to_ptr.vmem [resolvable:$true] %s7688_s19 }
 0x182   :  { %8131 = vmatprep.subr.mxu0 %v9725_v2  ;;  %v9739_v6 = vld [vmem:[%s10684_s17 + $0x20] sm:$0xff]  ;;  %v9744_v7 = vld [vmem:[%s10684_s17 + $0x18] sm:$0xff]  ;;  %v9749_v8 = vld [vmem:[%s10684_s17 + $0x10] sm:$0xff]  ;;  %s10690_s6 = sld [smem:[#allocation65_spill]]  ;;  %s9337_s23 = scalar_lea.vmem %s7689_s19, 16 }
 0x183   :  { %8132 = vmatpush3.msra.mxu0 %v9725_v2  ;;  %v9754_v9 = vld [vmem:[%s10684_s17 + $0x8] sm:$0xff]  ;;  %v9759_v10 = vld [vmem:[%s10684_s17] sm:$0xff]  ;;  %v469_v37 = vld [vmem:[%s10686_s1 + $0x18] sm:$0xff]  ;;  %s10691_s11 = sld [smem:[#allocation67_spill]]  ;;  %p9338_p8 = scmp.ne.s32.totalorder %s7689_s19, %s9337_s23 }
 0x184   :  { %8133 = vmatprep.subr.mxu0 %v9729_v3  ;;  %v557_v22 = vld [vmem:[%s10685_s28] sm:$0xff]  ;;  %v468_v38 = vld [vmem:[%s10686_s1 + $0x10] sm:$0xff]  ;;  %8150 = vmatprep.subr.mxu1 %v469_v37  ;;  %v467_v39 = vld [vmem:[%s10686_s1 + $0x8] sm:$0xff]  ;;  %s10692_s24 = sld [smem:[#allocation62_spill]]  ;;  %s9341_s29 = scalar_lea.vmem %s7689_s19, 32 }
 0x185   :  { %8134 = vmatpush3.msra.mxu0 %v9729_v3  ;;  %564 = vperm.xlu0 %8723, %v556_v4   ;;  %v466_v40 = vld [vmem:[%s10686_s1] sm:$0xff]  ;;  %s10693_s15 = sld [smem:[#allocation71_spill]]  ;;  %p9342_p9 = scmp.lt.s32.totalorder %s7689_s19, %s7689_s19 }
 0x186   :  { %8135 = vmatprep.subr.mxu0 %v9734_v5  ;;  %8151 = vmatpush3.msra.mxu1 %v469_v37  ;;  %s10694_s3 = sld [smem:[#allocation59_spill]]  ;;  %p9343_p10 = scmp.lt.s32.totalorder %s9341_s29, %s9337_s23 }
 0x187   :  { %8136 = vmatpush3.msra.mxu0 %v9734_v5  ;;  %8152 = vmatprep.subr.mxu1 %v468_v38  ;;  %s10695_s12 = sld [smem:[#allocation72_spill]] }
 0x188   :  { %8137 = vmatprep.subr.mxu0 %v9739_v6  ;;  %8153 = vmatpush3.msra.mxu1 %v468_v38  ;;  %s10696_s0 = sld [smem:[#allocation68_spill]]  ;;  %p9344_p11 = por %p9343_p10, %p9342_p9 }
 0x189   :  { %8138 = vmatpush3.msra.mxu0 %v9739_v6  ;;  %8154 = vmatprep.subr.mxu1 %v467_v39  ;;  %s10697_s25 = sld [smem:[#allocation76_spill]] }
 0x18a   :  { %8139 = vmatprep.subr.mxu0 %v9744_v7  ;;  %8155 = vmatpush3.msra.mxu1 %v467_v39  ;;  %s10698_s16 = sld [smem:[#allocation75_spill]]  ;;  %p9345_p12 = pnand %p9344_p11, %p9338_p8 }
 0x18b   :  { %8140 = vmatpush3.msra.mxu0 %v9744_v7  ;;  %8156 = vmatprep.subr.mxu1 %v466_v40  ;;  %s10699_s18 = sld [smem:[#allocation78_spill]] }
 0x18c   :  { %8141 = vmatprep.subr.mxu0 %v9749_v8  ;;  %8157 = vmatpush3.msra.mxu1 %v466_v40  ;;  %s10700_s20 = sld [smem:[#allocation80_spill]] }
 0x18d   :  { %8142 = vmatpush3.msra.mxu0 %v9749_v8  ;;  %8161 = vmatprep.subr.mxu1 %v9455_v11  ;;  %s10701_s22 = sld [smem:[#allocation82_spill]] }
 0x18e   :  { %8143 = vmatprep.subr.mxu0 %v9754_v9 }
 0x18f   :  { %8144 = vmatpush3.msra.mxu0 %v9754_v9 }
 0x190   :  { %8145 = vmatprep.subr.mxu0 %v9759_v10 }
 0x191   :  { %8146 = vmatpush3.msra.mxu0 %v9759_v10 }
 0x192   :  { %8171 = vmatprep.subr.mxu0 %v9455_v11 }
 0x1fc   :  { %v562_v14 = vpop.permute.xlu0 %561 }
 0x1fd   :  { %vm566_vm1 = vcmp.eq.s32.totalorder %v9767_v13, %v562_v14 }
 0x1fe   :  { %v7754_v15 = vsel %vm566_vm1, 1.0, %v9455_v11 }
 0x1ff   :  { %8147 = vmatprep.mubr.msk.f32.mxu0 %vm572_vm0, %v7754_v15 }
 0x200   :  { %v565_v16 = vpop.permute.xlu0 %564 }
 0x201   :  { %vm567_vm2 = vcmp.eq.s32.totalorder %v9767_v13, %v565_v16  ;;  %v545_v16 = vld [vmem:[%s10687_s8] sm:$0x3] }
 0x202   :  { %v7755_v17 = vsel %vm567_vm2, 1.0, %v9455_v11 }
 0x203   :  { %8148 = vmatmul.mubr.msk.f32.vlgmr.msra.gmra.mxu0 %vm572_vm0, %v7755_v17  ;;  %v9845_v17 = vshrl.u32 %v558_v12, 7 }
 0x204   :  { %8173 = vmatprep.mubr.msk.f32.mxu0 %vm9457_vm4, %v9455_v11 }
 0x205   :  { %vm3084_vm8 = vcmp.le.s32.totalorder %v9767_v13, %v9845_v17 }
 0x2c3   :  { %v8149_v18 = vpop.f32.mrf.mxu0 }
 0x2c4   :  { %v655_v20 = vmul.f32 5.656854, %v8149_v18  ;;  %v7758_v18 = vadd.f32 -1.0, %v545_v16 }
 0x2c5   :  { %v645_v19 = vpop.f32.mrf.mxu0 }
 0x2c6   :  { %v654_v21 = vmul.f32 5.656854, %v645_v19  ;;  %v9778_v24 = vadd.f32 %v655_v20, %v557_v22  ;;  %v9847_v19 = vmul.f32 1e+09, %v7758_v18  ;;  %v800_v20 = vsub.s32 0, %v9845_v17 }
 0x2c8   :  { %v9776_v23 = vadd.f32 %v654_v21, %v557_v22  ;;  %v664_v26 = vsel %vm660_vm3, %v9778_v24, 0.0  ;;  %v9853_v21 = vrot.slane %v9847_v19, %v800_v20 }
 0x2ca   :  { %v661_v25 = vsel %vm660_vm3, %v9776_v23, 0.0 }
 0x2cb   :  { %662 = vadd.xlane.f32.xlu1 %v661_v25 }
 0x2cf   :  { %665 = vadd.xlane.f32.xlu1 %v664_v26 }
 0x354   :  { %v663_v27 = vpop.xlane.xlu1 %662 }
 0x355   :  { %v668_v28 = vmul.f32 0.03125, %v663_v27 }
 0x357   :  { %v670_v29 = vsub.f32 %v9776_v23, %v668_v28 }
 0x358   :  { %v666_v30 = vpop.xlane.xlu1 %665 }
 0x359   :  { %v669_v31 = vmul.f32 0.03125, %v666_v30  ;;  %v672_v32 = vmul.f32 %v670_v29, %v670_v29 }
 0x35b   :  { %v671_v33 = vsub.f32 %v9778_v24, %v669_v31  ;;  %v674_v34 = vsel %vm660_vm3, %v672_v32, 0.0 }
 0x35c   :  { %675 = vadd.xlane.f32.xlu0 %v674_v34 }
 0x35d   :  { %v673_v35 = vmul.f32 %v671_v33, %v671_v33 }
 0x35f   :  { %v677_v36 = vsel %vm660_vm3, %v673_v35, 0.0 }
 0x360   :  { %678 = vadd.xlane.f32.xlu1 %v677_v36 }
 0x3e5   :  { %v676_v41 = vpop.xlane.xlu0 %675 }
 0x3e6   :  { %v680_v42 = vmul.f32 0.03125, %v676_v41 }
 0x3e8   :  { %v682_v43 = vadd.f32 1e-05, %v680_v42 }
 0x3e9   :  { %v679_v44 = vpop.xlane.xlu1 %678 }
 0x3ea   :  { %8725 = vrsqrt.f32 %v682_v43  ;;  %v681_v45 = vmul.f32 0.03125, %v679_v44 }
 0x3ec   :  { %v683_v46 = vadd.f32 1e-05, %v681_v45 }
 0x3ee   :  { %8727 = vrsqrt.f32 %v683_v46 }
 0x3f7   :  { %v8726_v47 = vpop.eup %8725 }
 0x3f8   :  { %v686_v49 = vmul.f32 %v8726_v47, %v670_v29 }
 0x3fa   :  { %v694_v51 = vmul.f32 %v7759_v48, %v686_v49 }
 0x3fb   :  { %v8728_v52 = vpop.eup %8727 }
 0x3fc   :  { %v687_v53 = vmul.f32 %v8728_v52, %v671_v33  ;;  %v702_v54 = vadd.f32 %v7760_v50, %v694_v51 }
 0x3fe   :  { %v695_v55 = vmul.f32 %v7759_v48, %v687_v53  ;;  %8158 = vmatprep.mubr.msk.f32.mxu1 %vm660_vm3, %v702_v54 }
 0x400   :  { %v703_v56 = vadd.f32 %v7760_v50, %v695_v55 }
 0x402   :  { %8159 = vmatmul.mubr.msk.f32.vlgmr.msra.gmra.mxu1 %vm660_vm3, %v703_v56 }
 0x403   :  { %8163 = vmatprep.mubr.msk.f32.mxu1 %vm9457_vm4, %v9455_v11 }
 0x4c2   :  { %v8160_v58 = vpop.f32.mrf.mxu1 }
 0x4c3   :  { %v9795_v59 = vadd.f32 %v8160_v58, %v7761_v57 }
 0x4c4   :  { %v782_v60 = vpop.f32.mrf.mxu1 }
 0x4c5   :  { %v9797_v61 = vadd.f32 %v7761_v57, %v782_v60 }
 0x4c7   :  { %792 = vrot.lane.b32.xlu1 %v9797_v61, %s9456_s2 }
 0x4cb   :  { %794 = vrot.lane.b32.xlu1 %v9797_v61, %s9458_s13 }
 0x4cf   :  { %796 = vrot.lane.b32.xlu1 %v9797_v61, %s9459_s27 }
 0x4d3   :  { %802 = vrot.lane.b32.xlu1 %v9797_v61, %s9460_s7 }
 0x539   :  { %v793_v62 = vpop.permute.xlu1 %792 }
 0x53a   :  { %879 = vrot.lane.b32.xlu0 %v793_v62, %s9460_s7 }
 0x53d   :  { %v9812_v63 = vpop.permute.xlu1 %794 }
 0x53e   :  { %955 = vrot.lane.b32.xlu1 %v9812_v63, %s9460_s7 }
 0x541   :  { %v9816_v0 = vpop.permute.xlu1 %796 }
 0x542   :  { %1031 = vrot.lane.b32.xlu1 %v9816_v0, %s9460_s7 }
 0x545   :  { %v803_v1 = vpop.permute.xlu1 %802 }
 0x546   :  { %8162 = vmatpush3.xpose.msk.msra.mxu1 %vm804_vm5, %v803_v1 }
 0x547   :  { %8166 = vmatprep.subr.mxu1 %v9455_v11 }
 0x549   :  { %8164 = vmatmul.mubr.msk.f32.vlgmr.msra.gmra.mxu1 %vm804_vm5, %v9797_v61 }
 0x54a   :  { %8168 = vmatprep.mubr.msk.f32.mxu1 %vm9457_vm4, %v9455_v11 }
 0x5ac   :  { %v880_v4 = vpop.permute.xlu0 %879 }
 0x5ad   :  { %8167 = vmatpush3.xpose.msk.msra.mxu1 %vm804_vm5, %v880_v4 }
 0x5ae   :  { %8176 = vmatprep.subr.mxu1 %v9455_v11 }
 0x5b0   :  { %8169 = vmatmul.mubr.msk.f32.vlgmr.msra.gmra.mxu1 %vm804_vm5, %v793_v62  ;;  %v956_v14 = vpop.permute.xlu1 %955 }
 0x5b1   :  { %8172 = vmatpush3.xpose.msk.msra.mxu0 %vm804_vm5, %v956_v14  ;;  %8178 = vmatprep.mubr.msk.f32.mxu1 %vm9457_vm4, %v9455_v11 }
 0x5b2   :  { %8181 = vmatprep.subr.mxu0 %v9455_v11 }
 0x5b4   :  { %8174 = vmatmul.mubr.msk.f32.vlgmr.msra.gmra.mxu0 %vm804_vm5, %v9812_v63  ;;  %v1032_v15 = vpop.permute.xlu1 %1031 }
 0x5b5   :  { %8177 = vmatpush3.xpose.msk.msra.mxu1 %vm804_vm5, %v1032_v15  ;;  %8183 = vmatprep.mubr.msk.f32.mxu0 %vm9457_vm4, %v9455_v11 }
 0x5b6   :  { %8186 = vmatprep.subr.mxu1 %v9455_v11 }
 0x5b8   :  { %8179 = vmatmul.mubr.msk.f32.vlgmr.msra.gmra.mxu1 %vm804_vm5, %v9816_v0 }
 0x5b9   :  { %8188 = vmatprep.mubr.msk.f32.mxu1 %vm9457_vm4, %v9455_v11 }
 0x609   :  { %v875_v22 = vpop.f32.mrf.mxu1 }
 0x60a   :  { %v876_v25 = vadd.f32 %v875_v22, %v9853_v21 }
 0x60b   :  { %v8165_v26 = vpop.f32.mrf.mxu1 }
 0x60c   :  { %v1107_v27 = vsel %vm804_vm5, %v876_v25, -inf }
 0x60d   :  { %1108 = vmax.xlane.f32.xlu1 %v1107_v27 }
 0x670   :  { %v951_v28 = vpop.f32.mrf.mxu1 }
 0x671   :  { %v952_v12 = vadd.f32 %v951_v28, %v9853_v21 }
 0x672   :  { %v8170_v29 = vpop.f32.mrf.mxu1 }
 0x673   :  { %v1110_v30 = vsel %vm804_vm5, %v952_v12, -inf }
 0x674   :  { %1111 = vmax.xlane.f32.xlu0 %v1110_v30  ;;  %v1027_v31 = vpop.f32.mrf.mxu0 }
 0x675   :  { %v1028_v32 = vadd.f32 %v1027_v31, %v9853_v21 }
 0x676   :  { %v8175_v33 = vpop.f32.mrf.mxu0 }
 0x677   :  { %v1113_v34 = vsel %vm804_vm5, %v1028_v32, -inf  ;;  %v9921_v33 = vld [vmem:[%s10688_s14 + $0x10] sm:$0xff] }
 0x678   :  { %1114 = vmax.xlane.f32.xlu1 %v1113_v34  ;;  %v1103_v35 = vpop.f32.mrf.mxu1 }
 0x679   :  { %v1104_v36 = vadd.f32 %v1103_v35, %v9853_v21 }
 0x67a   :  { %v8180_v37 = vpop.f32.mrf.mxu1 }
 0x67b   :  { %v1116_v38 = vsel %vm804_vm5, %v1104_v36, -inf }
 0x67c   :  { %1117 = vmax.xlane.f32.xlu1 %v1116_v38 }
 0x68a   :  { %1151 = vrot.lane.b32.xlu0 %v9797_v61, %s9461_s30 }
 0x68d   :  { %1227 = vrot.lane.b32.xlu1 %v793_v62, %s9461_s30 }
 0x696   :  { %v1109_v39 = vpop.xlane.xlu1 %1108 }
 0x697   :  { %v1119_v40 = vsub.f32 %v876_v25, %v1109_v39 }
 0x699   :  { %v1123_v41 = vmul.f32 1.442695, %v1119_v40 }
 0x69b   :  { %8729 = vpow2.f32 %v1123_v41 }
 0x6a8   :  { %v8730_v42 = vpop.eup %8729 }
 0x6a9   :  { %v1131_v43 = vsel %vm804_vm5, %v8730_v42, 0.0 }
 0x6aa   :  { %1132 = vadd.xlane.f32.xlu0 %v1131_v43 }
 0x6fd   :  { %v1112_v44 = vpop.xlane.xlu0 %1111 }
 0x6fe   :  { %v1120_v45 = vsub.f32 %v952_v12, %v1112_v44  ;;  %v9900_v12 = vld [vmem:[%s10688_s14] sm:$0xff] }
 0x700   :  { %v1125_v46 = vmul.f32 1.442695, %v1120_v45 }
 0x701   :  { %v1152_v47 = vpop.permute.xlu0 %1151  ;;  %v1115_v48 = vpop.xlane.xlu1 %1114 }
 0x702   :  { %8731 = vpow2.f32 %v1125_v46  ;;  %v1121_v49 = vsub.f32 %v1028_v32, %v1115_v48  ;;  %8182 = vmatpush3.msra.mxu0 %v1152_v47  ;;  %v9916_v32 = vld [vmem:[%s10688_s14 + $0x8] sm:$0xff] }
 0x703   :  { %8191 = vmatprep.subr.mxu0 %v9455_v11 }
 0x704   :  { %v1127_v50 = vmul.f32 1.442695, %v1121_v49 }
 0x705   :  { %v1118_v51 = vpop.xlane.xlu1 %1117 }
 0x706   :  { %8733 = vpow2.f32 %v1127_v50  ;;  %v1122_v52 = vsub.f32 %v1104_v36, %v1118_v51  ;;  %v9929_v36 = vld [vmem:[%s10688_s14 + $0x18] sm:$0xff]  ;;  %v1759_v50 = vsub.s32 1, %v9845_v17 }
 0x708   :  { %v1129_v53 = vmul.f32 1.442695, %v1122_v52 }
 0x709   :  { %v1228_v54 = vpop.permute.xlu1 %1227 }
 0x70a   :  { %8735 = vpow2.f32 %v1129_v53  ;;  %8187 = vmatpush3.msra.mxu1 %v1228_v54 }
 0x70b   :  { %8196 = vmatprep.subr.mxu1 %v9455_v11 }
 0x70f   :  { %v8732_v55 = vpop.eup %8731 }
 0x710   :  { %v1134_v56 = vsel %vm804_vm5, %v8732_v55, 0.0 }
 0x711   :  { %1135 = vadd.xlane.f32.xlu1 %v1134_v56 }
 0x713   :  { %v8734_v57 = vpop.eup %8733 }
 0x714   :  { %v1137_v58 = vsel %vm804_vm5, %v8734_v57, 0.0 }
 0x715   :  { %1138 = vadd.xlane.f32.xlu0 %v1137_v58 }
 0x717   :  { %v8736_v60 = vpop.eup %8735 }
 0x718   :  { %v1140_v61 = vsel %vm804_vm5, %v8736_v60, 0.0 }
 0x719   :  { %1141 = vadd.xlane.f32.xlu1 %v1140_v61 }
 0x72a   :  { %1303 = vrot.lane.b32.xlu1 %v9812_v63, %s9461_s30 }
 0x72b   :  { %1379 = vrot.lane.b32.xlu0 %v9816_v0, %s9461_s30 }
 0x72e   :  { %1751 = vrot.lane.b32.xlu1 %v9795_v59, %s9456_s2 }
 0x72f   :  { %1753 = vrot.lane.b32.xlu0 %v9795_v59, %s9458_s13 }
 0x732   :  { %1755 = vrot.lane.b32.xlu1 %v9795_v59, %s9459_s27 }
 0x733   :  { %v1133_v62 = vpop.xlane.xlu0 %1132  ;;  %1761 = vrot.lane.b32.xlu0 %v9795_v59, %s9460_s7 }
 0x734   :  { %8737 = vrcp.f32 %v1133_v62 }
 0x741   :  { %v8738_v1 = vpop.eup %8737 }
 0x742   :  { %v1147_v4 = vmul.f32 %v8738_v1, %v8730_v42 }
 0x744   :  { %8184 = vmatmul.mubr.msk.f32.vlgmr.msra.gmra.mxu0 %vm804_vm5, %v1147_v4 }
 0x745   :  { %8193 = vmatprep.mubr.msk.f32.mxu0 %vm9457_vm4, %v9455_v11 }
 0x79a   :  { %v1136_v63 = vpop.xlane.xlu1 %1135 }
 0x79b   :  { %8739 = vrcp.f32 %v1136_v63 }
 0x79e   :  { %v1139_v0 = vpop.xlane.xlu0 %1138 }
 0x79f   :  { %8741 = vrcp.f32 %v1139_v0 }
 0x7a2   :  { %v1380_v14 = vpop.permute.xlu0 %1379  ;;  %v1142_v15 = vpop.xlane.xlu1 %1141 }
 0x7a3   :  { %8743 = vrcp.f32 %v1142_v15 }
 0x7a6   :  { %v9887_v16 = vpop.permute.xlu0 %1753  ;;  %v1304_v18 = vpop.permute.xlu1 %1303 }
 0x7a7   :  { %1913 = vrot.lane.b32.xlu0 %v9887_v16, %s9460_s7  ;;  %8192 = vmatpush3.msra.mxu0 %v1304_v18 }
 0x7a8   :  { %v8740_v22 = vpop.eup %8739  ;;  %8201 = vmatprep.subr.mxu0 %v9455_v11 }
 0x7a9   :  { %v1148_v25 = vmul.f32 %v8740_v22, %v8732_v55  ;;  %v9970_v55 = vrot.slane %v9847_v19, %v1759_v50 }
 0x7aa   :  { %v9892_v26 = vpop.permute.xlu1 %1751  ;;  %v1762_v40 = vpop.permute.xlu0 %1761 }
 0x7ab   :  { %8189 = vmatmul.mubr.msk.f32.vlgmr.msra.gmra.mxu1 %vm804_vm5, %v1148_v25  ;;  %1837 = vrot.lane.b32.xlu1 %v9892_v26, %s9460_s7 }
 0x7ac   :  { %v8742_v27 = vpop.eup %8741  ;;  %8197 = vmatpush3.msra.mxu1 %v1380_v14  ;;  %8198 = vmatprep.mubr.msk.f32.mxu1 %vm9457_vm4, %v9455_v11 }
 0x7ad   :  { %v1149_v28 = vmul.f32 %v8742_v27, %v8734_v57  ;;  %8206 = vmatprep.subr.mxu1 %v9455_v11 }
 0x7ae   :  { %v9903_v29 = vpop.permute.xlu1 %1755 }
 0x7af   :  { %8194 = vmatmul.mubr.msk.f32.vlgmr.msra.gmra.mxu0 %vm804_vm5, %v1149_v28  ;;  %1989 = vrot.lane.b32.xlu1 %v9903_v29, %s9460_s7 }
 0x7b0   :  { %v8744_v30 = vpop.eup %8743  ;;  %8202 = vmatpush3.msra.mxu0 %v9900_v12  ;;  %8203 = vmatprep.mubr.msk.f32.mxu0 %vm9457_vm4, %v9455_v11 }
 0x7b1   :  { %v1150_v31 = vmul.f32 %v8744_v30, %v8736_v60  ;;  %8211 = vmatprep.subr.mxu0 %v9455_v11 }
 0x7b3   :  { %8199 = vmatmul.mubr.msk.f32.vlgmr.msra.gmra.mxu1 %vm804_vm5, %v1150_v31 }
 0x7b4   :  { %8208 = vmatprep.mubr.msk.f32.mxu1 %vm9457_vm4, %v9455_v11  ;;  %8207 = vmatpush3.msra.mxu1 %v9916_v32 }
 0x7b5   :  { %8216 = vmatprep.subr.mxu1 %v9455_v11 }
 0x804   :  { %v1223_v34 = vpop.f32.mrf.mxu0 }
 0x805   :  { %8204 = vmatmul.mubr.msk.f32.vlgmr.msra.gmra.mxu0 %vm804_vm5, %v1223_v34 }
 0x806   :  { %v8185_v35 = vpop.f32.mrf.mxu0  ;;  %8212 = vmatpush3.msra.mxu0 %v9921_v33  ;;  %8213 = vmatprep.mubr.msk.f32.mxu0 %vm9457_vm4, %v9455_v11 }
 0x807   :  { %8221 = vmatprep.subr.mxu0 %v9455_v11 }
 0x819   :  { %v1914_v44 = vpop.permute.xlu0 %1913 }
 0x81d   :  { %v1838_v42 = vpop.permute.xlu1 %1837 }
 0x821   :  { %v1990_v46 = vpop.permute.xlu1 %1989 }
 0x86b   :  { %v1299_v37 = vpop.f32.mrf.mxu1 }
 0x86c   :  { %8209 = vmatmul.mubr.msk.f32.vlgmr.msra.gmra.mxu1 %vm804_vm5, %v1299_v37 }
 0x86d   :  { %v8190_v38 = vpop.f32.mrf.mxu1  ;;  %8217 = vmatpush3.msra.mxu1 %v9929_v36  ;;  %8218 = vmatprep.mubr.msk.f32.mxu1 %vm9457_vm4, %v9455_v11 }
 0x86e   :  { %8226 = vmatprep.subr.mxu1 %v9455_v11 }
 0x86f   :  { %v1375_v39 = vpop.f32.mrf.mxu0 }
 0x870   :  { %8214 = vmatmul.mubr.msk.f32.vlgmr.msra.gmra.mxu0 %vm804_vm5, %v1375_v39 }
 0x871   :  { %8222 = vmatpush3.xpose.msk.msra.mxu0 %vm804_vm5, %v1762_v40  ;;  %v8195_v41 = vpop.f32.mrf.mxu0  ;;  %8223 = vmatprep.mubr.msk.f32.mxu0 %vm9457_vm4, %v9455_v11 }
 0x872   :  { %8231 = vmatprep.subr.mxu0 %v9455_v11 }
 0x873   :  { %v1451_v43 = vpop.f32.mrf.mxu1 }
 0x874   :  { %8219 = vmatmul.mubr.msk.f32.vlgmr.msra.gmra.mxu1 %vm804_vm5, %v1451_v43  ;;  %8224 = vmatmul.mubr.msk.f32.vlgmr.msra.gmra.mxu0 %vm804_vm5, %v9795_v59 }
 0x875   :  { %8227 = vmatpush3.xpose.msk.msra.mxu1 %vm804_vm5, %v1838_v42  ;;  %8232 = vmatpush3.xpose.msk.msra.mxu0 %vm804_vm5, %v1914_v44  ;;  %v8200_v45 = vpop.f32.mrf.mxu1 }
 0x876   :  { %8228 = vmatprep.mubr.msk.f32.mxu1 %vm9457_vm4, %v9455_v11  ;;  %8233 = vmatprep.mubr.msk.f32.mxu0 %vm9457_vm4, %v9455_v11 }
 0x877   :  { %8236 = vmatprep.subr.mxu1 %v9455_v11  ;;  %8241 = vmatprep.subr.mxu0 %v9455_v11 }
 0x878   :  { %8229 = vmatmul.mubr.msk.f32.vlgmr.msra.gmra.mxu1 %vm804_vm5, %v9892_v26  ;;  %8234 = vmatmul.mubr.msk.f32.vlgmr.msra.gmra.mxu0 %vm804_vm5, %v9887_v16 }
 0x879   :  { %8237 = vmatpush3.xpose.msk.msra.mxu1 %vm804_vm5, %v1990_v46  ;;  %8238 = vmatprep.mubr.msk.f32.mxu1 %vm9457_vm4, %v9455_v11 }
 0x87a   :  { %8246 = vmatprep.subr.mxu1 %v9455_v11  ;;  %8243 = vmatprep.mubr.msk.f32.mxu0 %vm9457_vm4, %v9455_v11 }
 0x87c   :  { %8239 = vmatmul.mubr.msk.f32.vlgmr.msra.gmra.mxu1 %vm804_vm5, %v9903_v29 }
 0x87d   :  { %8248 = vmatprep.mubr.msk.f32.mxu1 %vm9457_vm4, %v9455_v11 }
 0x8c5   :  { %v1524_v47 = vpop.f32.mrf.mxu0 }
 0x8c7   :  { %v8205_v48 = vpop.f32.mrf.mxu0 }
 0x92c   :  { %v1597_v49 = vpop.f32.mrf.mxu1 }
 0x92d   :  { %v1747_v52 = vadd.f32 %v1597_v49, %v1524_v47 }
 0x92e   :  { %v8210_v51 = vpop.f32.mrf.mxu1 }
 0x930   :  { %v1670_v53 = vpop.f32.mrf.mxu0 }
 0x931   :  { %v1748_v54 = vadd.f32 %v1747_v52, %v1670_v53 }
 0x932   :  { %v8215_v56 = vpop.f32.mrf.mxu0 }
 0x934   :  { %v1743_v57 = vpop.f32.mrf.mxu1  ;;  %v1833_v58 = vpop.f32.mrf.mxu0 }
 0x935   :  { %v1749_v60 = vadd.f32 %v1748_v54, %v1743_v57  ;;  %v1834_v61 = vadd.f32 %v1833_v58, %v9970_v55  ;;  %v9994_v58 = vld [vmem:[#allocation8] ss:$0 sm:$0xff] }
 0x936   :  { %v8220_v62 = vpop.f32.mrf.mxu1  ;;  %v8225_v1 = vpop.f32.mrf.mxu0 }
 0x937   :  { %v2065_v4 = vsel %vm804_vm5, %v1834_v61, -inf  ;;  %v2708_v57 = vadd.f32 %v1749_v60, %v9776_v23 }
 0x938   :  { %2066 = vmax.xlane.f32.xlu0 %v2065_v4  ;;  %v1909_v63 = vpop.f32.mrf.mxu1  ;;  %v1985_v0 = vpop.f32.mrf.mxu0 }
 0x939   :  { %v1910_v14 = vadd.f32 %v1909_v63, %v9970_v55  ;;  %v1986_v15 = vadd.f32 %v1985_v0, %v9970_v55 }
 0x93a   :  { %v8230_v18 = vpop.f32.mrf.mxu1  ;;  %v8235_v19 = vpop.f32.mrf.mxu0 }
 0x93b   :  { %v2071_v22 = vsel %vm804_vm5, %v1986_v15, -inf  ;;  %v2068_v25 = vsel %vm804_vm5, %v1910_v14, -inf }
 0x93c   :  { %2072 = vmax.xlane.f32.xlu0 %v2071_v22  ;;  %2069 = vmax.xlane.f32.xlu1 %v2068_v25  ;;  %v2061_v27 = vpop.f32.mrf.mxu1 }
 0x93d   :  { %v2062_v28 = vadd.f32 %v2061_v27, %v9970_v55 }
 0x93e   :  { %v8240_v30 = vpop.f32.mrf.mxu1 }
 0x93f   :  { %v2074_v31 = vsel %vm804_vm5, %v2062_v28, -inf }
 0x940   :  { %2075 = vmax.xlane.f32.xlu0 %v2074_v31 }
 0x94d   :  { %2109 = vrot.lane.b32.xlu1 %v9795_v59, %s9461_s30 }
 0x9c1   :  { %v2067_v34 = vpop.xlane.xlu0 %2066 }
 0x9c2   :  { %v2077_v35 = vsub.f32 %v1834_v61, %v2067_v34  ;;  %v9997_v61 = vadd.f32 %v9994_v58, %v2708_v57 }
 0x9c4   :  { %v2081_v37 = vmul.f32 1.442695, %v2077_v35  ;;  %v2718_v62 = vsel %vm660_vm3, %v9997_v61, 0.0 }
 0x9c5   :  { %v2073_v38 = vpop.xlane.xlu0 %2072  ;;  %v2070_v39 = vpop.xlane.xlu1 %2069 }
 0x9c6   :  { %8745 = vpow2.f32 %v2081_v37  ;;  %v2079_v40 = vsub.f32 %v1986_v15, %v2073_v38  ;;  %v2078_v41 = vsub.f32 %v1910_v14, %v2070_v39 }
 0x9c8   :  { %v2085_v42 = vmul.f32 1.442695, %v2079_v40  ;;  %v2083_v43 = vmul.f32 1.442695, %v2078_v41 }
 0x9c9   :  { %v2076_v44 = vpop.xlane.xlu0 %2075  ;;  %v2110_v45 = vpop.permute.xlu1 %2109 }
 0x9ca   :  { %8747 = vpow2.f32 %v2085_v42  ;;  %v2080_v46 = vsub.f32 %v2062_v28, %v2076_v44  ;;  %8242 = vmatpush3.msra.mxu0 %v2110_v45  ;;  %v10032_v45 = vld [vmem:[#allocation10] ss:$0 sm:$0xff] }
 0x9cb   :  { %8749 = vpow2.f32 %v2083_v43  ;;  %8251 = vmatprep.subr.mxu0 %v9455_v11 }
 0x9cc   :  { %v2087_v47 = vmul.f32 1.442695, %v2080_v46 }
 0x9ce   :  { %8751 = vpow2.f32 %v2087_v47  ;;  %v10034_v47 = vld [vmem:[#allocation11] ss:$0 sm:$0xff] }
 0x9d3   :  { %v8746_v59 = vpop.eup %8745 }
 0x9d4   :  { %v2089_v48 = vsel %vm804_vm5, %v8746_v59, 0.0 }
 0x9d5   :  { %2090 = vadd.xlane.f32.xlu1 %v2089_v48 }
 0x9d7   :  { %v8748_v49 = vpop.eup %8747 }
 0x9d8   :  { %v8750_v51 = vpop.eup %8749  ;;  %v2095_v52 = vsel %vm804_vm5, %v8748_v49, 0.0 }
 0x9d9   :  { %2096 = vadd.xlane.f32.xlu1 %v2095_v52  ;;  %v2092_v53 = vsel %vm804_vm5, %v8750_v51, 0.0 }
 0x9da   :  { %2093 = vadd.xlane.f32.xlu0 %v2092_v53 }
 0x9db   :  { %v8752_v54 = vpop.eup %8751 }
 0x9dc   :  { %v2098_v56 = vsel %vm804_vm5, %v8752_v54, 0.0 }
 0x9de   :  { %2099 = vadd.xlane.f32.xlu0 %v2098_v56 }
 0x9ea   :  { %2261 = vrot.lane.b32.xlu1 %v9887_v16, %s9461_s30 }
 0x9ee   :  { %2337 = vrot.lane.b32.xlu1 %v9903_v29, %s9461_s30 }
 0x9f4   :  { %2185 = vrot.lane.b32.xlu0 %v9892_v26, %s9461_s30 }
 0xa13   :  { %2719 = vadd.xlane.f32.xlu0 %v2718_v62 }
 0xa5e   :  { %v2091_v1 = vpop.xlane.xlu1 %2090 }
 0xa5f   :  { %8753 = vrcp.f32 %v2091_v1 }
 0xa62   :  { %v2097_v16 = vpop.xlane.xlu1 %2096 }
 0xa63   :  { %v2094_v4 = vpop.xlane.xlu0 %2093  ;;  %8755 = vrcp.f32 %v2097_v16 }
 0xa64   :  { %8757 = vrcp.f32 %v2094_v4 }
 0xa66   :  { %v2262_v60 = vpop.permute.xlu1 %2261 }
 0xa67   :  { %v2100_v29 = vpop.xlane.xlu0 %2099 }
 0xa68   :  { %8759 = vrcp.f32 %v2100_v29 }
 0xa6a   :  { %v2338_v19 = vpop.permute.xlu1 %2337 }
 0xa6b   :  { %v2186_v26 = vpop.permute.xlu0 %2185 }
 0xa6c   :  { %v8754_v63 = vpop.eup %8753  ;;  %8247 = vmatpush3.msra.mxu1 %v2186_v26 }
 0xa6d   :  { %v2105_v23 = vmul.f32 %v8754_v63, %v8746_v59  ;;  %8256 = vmatprep.subr.mxu1 %v9455_v11  ;;  %v2982_v63 = vld [vmem:[%s10689_s10] sm:$0xff] }
 0xa6f   :  { %8244 = vmatmul.mubr.msk.f32.vlgmr.msra.gmra.mxu0 %vm804_vm5, %v2105_v23 }
 0xa70   :  { %v8756_v0 = vpop.eup %8755  ;;  %8252 = vmatpush3.msra.mxu0 %v2262_v60  ;;  %8253 = vmatprep.mubr.msk.f32.mxu0 %vm9457_vm4, %v9455_v11 }
 0xa71   :  { %v8758_v14 = vpop.eup %8757  ;;  %v2107_v15 = vmul.f32 %v8756_v0, %v8748_v49  ;;  %8261 = vmatprep.subr.mxu0 %v9455_v11 }
 0xa72   :  { %v2106_v18 = vmul.f32 %v8758_v14, %v8750_v51 }
 0xa73   :  { %8254 = vmatmul.mubr.msk.f32.vlgmr.msra.gmra.mxu0 %vm804_vm5, %v2107_v15 }
 0xa74   :  { %8249 = vmatmul.mubr.msk.f32.vlgmr.msra.gmra.mxu1 %vm804_vm5, %v2106_v18  ;;  %8262 = vmatpush3.msra.mxu0 %v9900_v12  ;;  %v480_v18 = vld [vmem:[%s10690_s6 + $0x10] sm:$0xff] }
 0xa75   :  { %v8760_v22 = vpop.eup %8759  ;;  %8257 = vmatpush3.msra.mxu1 %v2338_v19  ;;  %8258 = vmatprep.mubr.msk.f32.mxu1 %vm9457_vm4, %v9455_v11  ;;  %v479_v19 = vld [vmem:[%s10690_s6 + $0x8] sm:$0xff] }
 0xa76   :  { %v2108_v25 = vmul.f32 %v8760_v22, %v8752_v54  ;;  %8263 = vmatprep.mubr.msk.f32.mxu0 %vm9457_vm4, %v9455_v11  ;;  %8266 = vmatprep.subr.mxu1 %v9455_v11  ;;  %v478_v22 = vld [vmem:[%s10690_s6] sm:$0xff] }
 0xa77   :  { %8271 = vmatprep.subr.mxu0 %v9455_v11 }
 0xa78   :  { %8259 = vmatmul.mubr.msk.f32.vlgmr.msra.gmra.mxu1 %vm804_vm5, %v2108_v25  ;;  %v490_v25 = vld [vmem:[%s10691_s11 + $0x38] sm:$0xff] }
 0xa79   :  { %8267 = vmatpush3.msra.mxu1 %v9916_v32  ;;  %8268 = vmatprep.mubr.msk.f32.mxu1 %vm9457_vm4, %v9455_v11 }
 0xa7a   :  { %8276 = vmatprep.subr.mxu1 %v9455_v11 }
 0xa9c   :  { %v2720_v12 = vpop.xlane.xlu0 %2719 }
 0xa9d   :  { %v2724_v27 = vmul.f32 0.03125, %v2720_v12  ;;  %v489_v12 = vld [vmem:[%s10691_s11 + $0x30] sm:$0xff] }
 0xa9f   :  { %v2726_v28 = vsub.f32 %v9997_v61, %v2724_v27  ;;  %v488_v27 = vld [vmem:[%s10691_s11 + $0x28] sm:$0xff] }
 0xaa1   :  { %v2728_v30 = vmul.f32 %v2726_v28, %v2726_v28 }
 0xaa3   :  { %v2730_v31 = vsel %vm660_vm3, %v2728_v30, 0.0 }
 0xaa4   :  { %2731 = vadd.xlane.f32.xlu0 %v2730_v31 }
 0xb2d   :  { %v2732_v34 = vpop.xlane.xlu0 %2731 }
 0xb2e   :  { %v2736_v35 = vmul.f32 0.03125, %v2732_v34 }
 0xb2f   :  { %v2181_v37 = vpop.f32.mrf.mxu0 }
 0xb30   :  { %v2738_v38 = vadd.f32 1e-05, %v2736_v35  ;;  %8264 = vmatmul.mubr.msk.f32.vlgmr.msra.gmra.mxu0 %vm804_vm5, %v2181_v37 }
 0xb31   :  { %v8245_v32 = vpop.f32.mrf.mxu0  ;;  %8272 = vmatpush3.msra.mxu0 %v9921_v33  ;;  %8273 = vmatprep.mubr.msk.f32.mxu0 %vm9457_vm4, %v9455_v11 }
 0xb32   :  { %8761 = vrsqrt.f32 %v2738_v38 }
 0xb33   :  { %v2333_v39 = vpop.f32.mrf.mxu0 }
 0xb34   :  { %v2257_v40 = vpop.f32.mrf.mxu1  ;;  %8274 = vmatmul.mubr.msk.f32.vlgmr.msra.gmra.mxu0 %vm804_vm5, %v2333_v39 }
 0xb35   :  { %8269 = vmatmul.mubr.msk.f32.vlgmr.msra.gmra.mxu1 %vm804_vm5, %v2257_v40  ;;  %v8255_v41 = vpop.f32.mrf.mxu0 }
 0xb36   :  { %v8250_v42 = vpop.f32.mrf.mxu1  ;;  %8277 = vmatpush3.msra.mxu1 %v9929_v36  ;;  %8278 = vmatprep.mubr.msk.f32.mxu1 %vm9457_vm4, %v9455_v11 }
 0xb37   :  { %8292 = vmatprep.subr.mxu1 %v490_v25 }
 0xb38   :  { %v2409_v43 = vpop.f32.mrf.mxu1 }
 0xb39   :  { %8279 = vmatmul.mubr.msk.f32.vlgmr.msra.gmra.mxu1 %vm804_vm5, %v2409_v43 }
 0xb3a   :  { %v8260_v33 = vpop.f32.mrf.mxu1  ;;  %8293 = vmatpush3.msra.mxu1 %v490_v25 }
 0xb3b   :  { %8294 = vmatprep.subr.mxu1 %v489_v12 }
 0xb3c   :  { %8295 = vmatpush3.msra.mxu1 %v489_v12  ;;  %v7812_v12 = vld [vmem:[#allocation17] ss:$0 sm:$0xff] }
 0xb3d   :  { %8296 = vmatprep.subr.mxu1 %v488_v27 }
 0xb3e   :  { %8297 = vmatpush3.msra.mxu1 %v488_v27 }
 0xb3f   :  { %v8762_v44 = vpop.eup %8761 }
 0xb40   :  { %v2742_v46 = vmul.f32 %v8762_v44, %v2726_v28  ;;  %v487_v28 = vld [vmem:[%s10691_s11 + $0x20] sm:$0xff] }
 0xb41   :  { %8298 = vmatprep.subr.mxu1 %v487_v28 }
 0xb42   :  { %v2750_v59 = vmul.f32 %v10032_v45, %v2742_v46  ;;  %8299 = vmatpush3.msra.mxu1 %v487_v28 }
 0xb44   :  { %v2758_v48 = vadd.f32 %v10034_v47, %v2750_v59 }
 0xb46   :  { %8289 = vmatprep.mubr.msk.f32.mxu0 %vm660_vm3, %v2758_v48 }
 0xbf0   :  { %v2482_v36 = vpop.f32.mrf.mxu0 }
 0xbf2   :  { %v8265_v49 = vpop.f32.mrf.mxu0 }
 0xbf4   :  { %v2628_v51 = vpop.f32.mrf.mxu0 }
 0xbf5   :  { %v2555_v52 = vpop.f32.mrf.mxu1 }
 0xbf6   :  { %v2705_v53 = vadd.f32 %v2555_v52, %v2482_v36  ;;  %v8275_v54 = vpop.f32.mrf.mxu0 }
 0xbf7   :  { %v8270_v56 = vpop.f32.mrf.mxu1 }
 0xbf8   :  { %v2706_v57 = vadd.f32 %v2705_v53, %v2628_v51 }
 0xbf9   :  { %v2701_v62 = vpop.f32.mrf.mxu1 }
 0xbfa   :  { %v2707_v1 = vadd.f32 %v2706_v57, %v2701_v62 }
 0xbfb   :  { %v8280_v16 = vpop.f32.mrf.mxu1 }
 0xbfc   :  { %v2709_v4 = vadd.f32 %v2707_v1, %v9778_v24  ;;  %v2983_v24 = vld [vmem:[%s10689_s10 + $0x8] sm:$0xff] }
 0xbfe   :  { %v10041_v29 = vadd.f32 %v9994_v58, %v2709_v4  ;;  %v481_v58 = vld [vmem:[%s10690_s6 + $0x18] sm:$0xff] }
 0xbff   :  { %8281 = vmatprep.subr.mxu0 %v481_v58 }
 0xc00   :  { %v2721_v26 = vsel %vm660_vm3, %v10041_v29, 0.0  ;;  %8282 = vmatpush3.msra.mxu0 %v481_v58 }
 0xc01   :  { %2722 = vadd.xlane.f32.xlu1 %v2721_v26  ;;  %8283 = vmatprep.subr.mxu0 %v480_v18 }
 0xc02   :  { %8284 = vmatpush3.msra.mxu0 %v480_v18 }
 0xc03   :  { %8285 = vmatprep.subr.mxu0 %v479_v19 }
 0xc04   :  { %8286 = vmatpush3.msra.mxu0 %v479_v19 }
 0xc05   :  { %8287 = vmatprep.subr.mxu0 %v478_v22 }
 0xc06   :  { %8288 = vmatpush3.msra.mxu0 %v478_v22 }
 0xc07   :  { %8311 = vmatprep.subr.mxu0 %v9725_v2 }
 0xc12   :  { %2986 = vperm.xlu1 %8724, %v2982_v63  }
 0xc8a   :  { %v2723_v23 = vpop.xlane.xlu1 %2722 }
 0xc8b   :  { %v2725_v60 = vmul.f32 0.03125, %v2723_v23  ;;  %v499_v23 = vld [vmem:[%s10693_s15 + $0x18] sm:$0xff] }
 0xc8d   :  { %v2727_v0 = vsub.f32 %v10041_v29, %v2725_v60  ;;  %v498_v60 = vld [vmem:[%s10693_s15 + $0x10] sm:$0xff] }
 0xc8e   :  { %v2987_v35 = vpop.permute.xlu1 %2986 }
 0xc8f   :  { %v2729_v14 = vmul.f32 %v2727_v0, %v2727_v0  ;;  %vm2991_vm6 = vcmp.eq.s32.totalorder %v9767_v13, %v2987_v35 }
 0xc90   :  { %v7807_v40 = vsel %vm2991_vm6, 1.0, %v9455_v11 }
 0xc91   :  { %v2733_v15 = vsel %vm660_vm3, %v2729_v14, 0.0  ;;  %v496_v14 = vld [vmem:[%s10693_s15] sm:$0xff] }
 0xc92   :  { %2734 = vadd.xlane.f32.xlu0 %v2733_v15 }
 0xca8   :  { %2989 = vperm.xlu0 %8723, %v2983_v24  }
 0xd1b   :  { %v2735_v30 = vpop.xlane.xlu0 %2734 }
 0xd1c   :  { %v2737_v31 = vmul.f32 0.03125, %v2735_v30 }
 0xd1e   :  { %v2739_v34 = vadd.f32 1e-05, %v2737_v31 }
 0xd20   :  { %8763 = vrsqrt.f32 %v2739_v34  ;;  %v7813_v34 = vld [vmem:[#allocation19] ss:$0 sm:$0xff] }
 0xd23   :  { %v2990_v41 = vpop.permute.xlu0 %2989 }
 0xd24   :  { %vm2992_vm7 = vcmp.eq.s32.totalorder %v9767_v13, %v2990_v41 }
 0xd2d   :  { %v8764_v37 = vpop.eup %8763 }
 0xd2e   :  { %v2743_v38 = vmul.f32 %v8764_v37, %v2727_v0  ;;  %v497_v0 = vld [vmem:[%s10693_s15 + $0x8] sm:$0xff] }
 0xd30   :  { %v2751_v32 = vmul.f32 %v10032_v45, %v2743_v38  ;;  %v2984_v45 = vld [vmem:[%s10692_s24] sm:$0xff] }
 0xd32   :  { %v2759_v39 = vadd.f32 %v10034_v47, %v2751_v32 }
 0xd34   :  { %8290 = vmatmul.mubr.msk.f32.vlgmr.msra.gmra.mxu0 %vm660_vm3, %v2759_v39 }
 0xd35   :  { %8312 = vmatpush3.msra.mxu0 %v9725_v2  ;;  %8327 = vmatprep.mubr.msk.f32.mxu0 %vm572_vm0, %v7807_v40  ;;  %v7808_v2 = vsel %vm2992_vm7, 1.0, %v9455_v11  ;;  %v7814_v40 = vld [vmem:[#allocation20] ss:$0 sm:$0xff] }
 0xd36   :  { %8313 = vmatprep.subr.mxu0 %v9729_v3 }
 0xd37   :  { %8314 = vmatpush3.msra.mxu0 %v9729_v3  ;;  %v486_v3 = vld [vmem:[%s10691_s11 + $0x18] sm:$0xff] }
 0xd38   :  { %8315 = vmatprep.subr.mxu0 %v9734_v5  ;;  %8300 = vmatprep.subr.mxu1 %v486_v3 }
 0xd39   :  { %8316 = vmatpush3.msra.mxu0 %v9734_v5  ;;  %8301 = vmatpush3.msra.mxu1 %v486_v3  ;;  %v485_v5 = vld [vmem:[%s10691_s11 + $0x10] sm:$0xff] }
 0xd3a   :  { %8317 = vmatprep.subr.mxu0 %v9739_v6  ;;  %8302 = vmatprep.subr.mxu1 %v485_v5 }
 0xd3b   :  { %8318 = vmatpush3.msra.mxu0 %v9739_v6  ;;  %8303 = vmatpush3.msra.mxu1 %v485_v5  ;;  %v484_v6 = vld [vmem:[%s10691_s11 + $0x8] sm:$0xff] }
 0xd3c   :  { %8319 = vmatprep.subr.mxu0 %v9744_v7  ;;  %8304 = vmatprep.subr.mxu1 %v484_v6 }
 0xd3d   :  { %8320 = vmatpush3.msra.mxu0 %v9744_v7  ;;  %v483_v7 = vld [vmem:[%s10691_s11] sm:$0xff]  ;;  %8305 = vmatpush3.msra.mxu1 %v484_v6 }
 0xd3e   :  { %8321 = vmatprep.subr.mxu0 %v9749_v8  ;;  %8306 = vmatprep.subr.mxu1 %v483_v7 }
 0xd3f   :  { %8322 = vmatpush3.msra.mxu0 %v9749_v8  ;;  %8307 = vmatpush3.msra.mxu1 %v483_v7  ;;  %v7799_v8 = vld [vmem:[#allocation13] ss:$0 sm:$0xff] }
 0xd40   :  { %8323 = vmatprep.subr.mxu0 %v9754_v9  ;;  %8330 = vmatprep.subr.mxu1 %v499_v23 }
 0xd41   :  { %8324 = vmatpush3.msra.mxu0 %v9754_v9 }
 0xd42   :  { %8325 = vmatprep.subr.mxu0 %v9759_v10 }
 0xd43   :  { %8326 = vmatpush3.msra.mxu0 %v9759_v10 }
 0xd44   :  { %8328 = vmatmul.mubr.msk.f32.vlgmr.msra.gmra.mxu0 %vm572_vm0, %v7808_v2  ;;  %8341 = vmatprep.subr.mxu0 %v9455_v11 }
 0xd45   :  { %8343 = vmatprep.mubr.msk.f32.mxu0 %vm9457_vm4, %v9455_v11 }
 0xdf4   :  { %v8291_v9 = vpop.f32.mrf.mxu0 }
 0xdf5   :  { %v2844_v10 = vadd.f32 %v8291_v9, %v7799_v8 }
 0xdf6   :  { %v2838_v42 = vpop.f32.mrf.mxu0 }
 0xdf7   :  { %v2839_v43 = vadd.f32 %v7799_v8, %v2838_v42  ;;  %v2848_v44 = vmax.f32 %v2844_v10, 0.0 }
 0xdf9   :  { %v2847_v33 = vmax.f32 %v2839_v43, 0.0 }
 0xdfb   :  { %8308 = vmatprep.mubr.msk.f32.mxu1 %vm572_vm0, %v2847_v33  ;;  %v546_v33 = vld [vmem:[%s10694_s3] sm:$0x3] }
 0xdfc   :  { %8309 = vmatmul.mubr.msk.f32.vlgmr.msra.gmra.mxu1 %vm572_vm0, %v2848_v44  ;;  %v7811_v44 = vadd.f32 -1.0, %v546_v33 }
 0xdfd   :  { %8331 = vmatpush3.msra.mxu1 %v499_v23 }
 0xdfe   :  { %8332 = vmatprep.subr.mxu1 %v498_v60 }
 0xdff   :  { %8333 = vmatpush3.msra.mxu1 %v498_v60 }
 0xe00   :  { %8334 = vmatprep.subr.mxu1 %v497_v0 }
 0xe01   :  { %8335 = vmatpush3.msra.mxu1 %v497_v0 }
 0xe02   :  { %8336 = vmatprep.subr.mxu1 %v496_v14 }
 0xe03   :  { %8337 = vmatpush3.msra.mxu1 %v496_v14 }
 0xe04   :  { %v8329_v46 = vpop.f32.mrf.mxu0  ;;  %8346 = vmatprep.subr.mxu1 %v9455_v11 }
 0xe05   :  { %v3079_v47 = vmul.f32 5.656854, %v8329_v46 }
 0xe06   :  { %v3069_v59 = vpop.f32.mrf.mxu0 }
 0xe07   :  { %v10092_v48 = vadd.f32 %v3079_v47, %v2984_v45  ;;  %v3078_v36 = vmul.f32 5.656854, %v3069_v59  ;;  %v9462_v47 = vmov -1e+09  }
 0xe08   :  { %v10162_v59 = vsel %vm3084_vm8, 0.0, %v9462_v47 }
 0xe09   :  { %v10094_v49 = vadd.f32 %v3078_v36, %v2984_v45  ;;  %v3101_v51 = vsel %vm660_vm3, %v10092_v48, 0.0  ;;  %v10155_v45 = vmul.f32 1e+09, %v7811_v44 }
 0xe0a   :  { %3102 = vadd.xlane.f32.xlu0 %v3101_v51 }
 0xe0b   :  { %v3098_v52 = vsel %vm660_vm3, %v10094_v49, 0.0  ;;  %v3091_v46 = vrot.slane %v10155_v45, %v800_v20 }
 0xe0c   :  { %3099 = vadd.xlane.f32.xlu1 %v3098_v52 }
 0xe0d   :  { %v3092_v36 = vadd.f32 %v3091_v46, %v10162_v59 }
 0xe93   :  { %v3103_v53 = vpop.xlane.xlu0 %3102 }
 0xe94   :  { %v3105_v54 = vmul.f32 0.03125, %v3103_v53 }
 0xe95   :  { %v3100_v56 = vpop.xlane.xlu1 %3099 }
 0xe96   :  { %v3107_v57 = vsub.f32 %v10092_v48, %v3105_v54  ;;  %v3104_v62 = vmul.f32 0.03125, %v3100_v56 }
 0xe98   :  { %v3106_v1 = vsub.f32 %v10094_v49, %v3104_v62  ;;  %v3109_v16 = vmul.f32 %v3107_v57, %v3107_v57 }
 0xe9a   :  { %v3113_v4 = vsel %vm660_vm3, %v3109_v16, 0.0  ;;  %v3108_v26 = vmul.f32 %v3106_v1, %v3106_v1 }
 0xe9b   :  { %3114 = vadd.xlane.f32.xlu0 %v3113_v4 }
 0xe9c   :  { %v3110_v63 = vsel %vm660_vm3, %v3108_v26, 0.0 }
 0xe9d   :  { %3111 = vadd.xlane.f32.xlu1 %v3110_v63 }
 0xebc   :  { %v10113_v32 = vpop.f32.mrf.mxu1 }
 0xebe   :  { %v10115_v39 = vpop.f32.mrf.mxu1 }
 0xf24   :  { %v3115_v15 = vpop.xlane.xlu0 %3114 }
 0xf25   :  { %v3117_v24 = vmul.f32 0.03125, %v3115_v15 }
 0xf26   :  { %v3112_v58 = vpop.xlane.xlu1 %3111 }
 0xf27   :  { %v3119_v18 = vadd.f32 1e-05, %v3117_v24  ;;  %v3116_v19 = vmul.f32 0.03125, %v3112_v58 }
 0xf29   :  { %8765 = vrsqrt.f32 %v3119_v18  ;;  %v3118_v22 = vadd.f32 1e-05, %v3116_v19 }
 0xf2b   :  { %8767 = vrsqrt.f32 %v3118_v22 }
 0xf36   :  { %v8766_v25 = vpop.eup %8765 }
 0xf37   :  { %v3123_v27 = vmul.f32 %v8766_v25, %v3107_v57 }
 0xf38   :  { %v8768_v28 = vpop.eup %8767 }
 0xf39   :  { %v3122_v30 = vmul.f32 %v8768_v28, %v3106_v1  ;;  %v3131_v31 = vmul.f32 %v7812_v12, %v3123_v27 }
 0xf3b   :  { %v3130_v35 = vmul.f32 %v7812_v12, %v3122_v30  ;;  %v3139_v38 = vadd.f32 %v7813_v34, %v3131_v31 }
 0xf3d   :  { %v3138_v37 = vadd.f32 %v7813_v34, %v3130_v35 }
 0xf3f   :  { %8338 = vmatprep.mubr.msk.f32.mxu1 %vm660_vm3, %v3138_v37 }
 0xf40   :  { %8339 = vmatmul.mubr.msk.f32.vlgmr.msra.gmra.mxu1 %vm660_vm3, %v3139_v38 }
 0xf41   :  { %8348 = vmatprep.mubr.msk.f32.mxu1 %vm9457_vm4, %v9455_v11 }
0x1000   :  { %v8340_v41 = vpop.f32.mrf.mxu1 }
0x1001   :  { %v10117_v2 = vadd.f32 %v8340_v41, %v7814_v40 }
0x1002   :  { %v3218_v3 = vpop.f32.mrf.mxu1 }
0x1003   :  { %v3219_v5 = vadd.f32 %v7814_v40, %v3218_v3 }
0x1005   :  { %3230 = vrot.lane.b32.xlu0 %v3219_v5, %s9458_s13  ;;  %3228 = vrot.lane.b32.xlu1 %v3219_v5, %s9456_s2 }
0x1009   :  { %3232 = vrot.lane.b32.xlu1 %v3219_v5, %s9459_s27 }
0x100d   :  { %3234 = vrot.lane.b32.xlu1 %v3219_v5, %s9460_s7 }
0x1077   :  { %v10123_v6 = vpop.permute.xlu0 %3230  ;;  %v3229_v7 = vpop.permute.xlu1 %3228 }
0x1078   :  { %3386 = vrot.lane.b32.xlu1 %v10123_v6, %s9460_s7  ;;  %3310 = vrot.lane.b32.xlu0 %v3229_v7, %s9460_s7 }
0x107b   :  { %v10128_v8 = vpop.permute.xlu1 %3232 }
0x107c   :  { %3462 = vrot.lane.b32.xlu0 %v10128_v8, %s9460_s7 }
0x107f   :  { %v3235_v9 = vpop.permute.xlu1 %3234 }
0x1080   :  { %8342 = vmatpush3.xpose.msk.msra.mxu0 %vm804_vm5, %v3235_v9 }
0x1081   :  { %8351 = vmatprep.subr.mxu0 %v9455_v11 }
0x1083   :  { %8344 = vmatmul.mubr.msk.f32.vlgmr.msra.gmra.mxu0 %vm804_vm5, %v3219_v5 }
0x1084   :  { %8353 = vmatprep.mubr.msk.f32.mxu0 %vm9457_vm4, %v9455_v11 }
0x10ea   :  { %v3311_v10 = vpop.permute.xlu0 %3310  ;;  %v3387_v42 = vpop.permute.xlu1 %3386 }
0x10eb   :  { %8347 = vmatpush3.xpose.msk.msra.mxu1 %vm804_vm5, %v3311_v10  ;;  %8352 = vmatpush3.xpose.msk.msra.mxu0 %vm804_vm5, %v3387_v42 }
0x10ec   :  { %8356 = vmatprep.subr.mxu1 %v9455_v11  ;;  %8361 = vmatprep.subr.mxu0 %v9455_v11 }
0x10ee   :  { %8349 = vmatmul.mubr.msk.f32.vlgmr.msra.gmra.mxu1 %vm804_vm5, %v3229_v7  ;;  %v3463_v43 = vpop.permute.xlu0 %3462  ;;  %8354 = vmatmul.mubr.msk.f32.vlgmr.msra.gmra.mxu0 %vm804_vm5, %v10123_v6 }
0x10ef   :  { %8357 = vmatpush3.xpose.msk.msra.mxu1 %vm804_vm5, %v3463_v43  ;;  %8358 = vmatprep.mubr.msk.f32.mxu1 %vm9457_vm4, %v9455_v11 }
0x10f0   :  { %8366 = vmatprep.subr.mxu1 %v9455_v11  ;;  %8363 = vmatprep.mubr.msk.f32.mxu0 %vm9457_vm4, %v9455_v11 }
0x10f2   :  { %8359 = vmatmul.mubr.msk.f32.vlgmr.msra.gmra.mxu1 %vm804_vm5, %v10128_v8 }
0x10f3   :  { %8368 = vmatprep.mubr.msk.f32.mxu1 %vm9457_vm4, %v9455_v11 }
0x1143   :  { %v3306_v51 = vpop.f32.mrf.mxu0 }
0x1144   :  { %v3307_v52 = vadd.f32 %v3306_v51, %v3092_v36 }
0x1145   :  { %v8345_v53 = vpop.f32.mrf.mxu0 }
0x1146   :  { %v3538_v54 = vsel %vm804_vm5, %v3307_v52, -inf }
0x1147   :  { %3539 = vmax.xlane.f32.xlu1 %v3538_v54 }
0x11ae   :  { %v3382_v56 = vpop.f32.mrf.mxu1  ;;  %v3458_v57 = vpop.f32.mrf.mxu0 }
0x11af   :  { %v3383_v62 = vadd.f32 %v3382_v56, %v3092_v36  ;;  %v3459_v4 = vadd.f32 %v3458_v57, %v3092_v36  ;;  %v10209_v57 = vld [vmem:[%s10695_s12] sm:$0xff] }
0x11b0   :  { %v8350_v1 = vpop.f32.mrf.mxu1  ;;  %v8355_v16 = vpop.f32.mrf.mxu0 }
0x11b1   :  { %v3541_v26 = vsel %vm804_vm5, %v3383_v62, -inf  ;;  %v3544_v0 = vsel %vm804_vm5, %v3459_v4, -inf  ;;  %v10221_v1 = vld [vmem:[%s10695_s12 + $0x8] sm:$0xff]  ;;  %v10226_v16 = vld [vmem:[%s10695_s12 + $0x10] sm:$0xff] }
0x11b2   :  { %3542 = vmax.xlane.f32.xlu0 %v3541_v26  ;;  %v3534_v20 = vpop.f32.mrf.mxu1 }
0x11b3   :  { %v3535_v63 = vadd.f32 %v3534_v20, %v3092_v36  ;;  %v10234_v20 = vld [vmem:[%s10695_s12 + $0x18] sm:$0xff] }
0x11b4   :  { %v8360_v23 = vpop.f32.mrf.mxu1 }
0x11b5   :  { %v3547_v60 = vsel %vm804_vm5, %v3535_v63, -inf }
0x11b6   :  { %3548 = vmax.xlane.f32.xlu1 %v3547_v60  ;;  %3545 = vmax.xlane.f32.xlu0 %v3544_v0 }
0x11c7   :  { %3658 = vrot.lane.b32.xlu1 %v3229_v7, %s9461_s30 }
0x11cc   :  { %3582 = vrot.lane.b32.xlu0 %v3219_v5, %s9461_s30 }
0x11d0   :  { %v3540_v14 = vpop.xlane.xlu1 %3539 }
0x11d1   :  { %v3550_v15 = vsub.f32 %v3307_v52, %v3540_v14 }
0x11d3   :  { %v3554_v24 = vmul.f32 1.442695, %v3550_v15 }
0x11d5   :  { %8769 = vpow2.f32 %v3554_v24 }
0x11e2   :  { %v8770_v58 = vpop.eup %8769 }
0x11e3   :  { %v3562_v18 = vsel %vm804_vm5, %v8770_v58, 0.0 }
0x11eb   :  { %3563 = vadd.xlane.f32.xlu0 %v3562_v18 }
0x123b   :  { %v3543_v19 = vpop.xlane.xlu0 %3542 }
0x123c   :  { %v3551_v22 = vsub.f32 %v3383_v62, %v3543_v19 }
0x123e   :  { %v3556_v25 = vmul.f32 1.442695, %v3551_v22 }
0x123f   :  { %v3546_v12 = vpop.xlane.xlu0 %3545  ;;  %v3549_v27 = vpop.xlane.xlu1 %3548 }
0x1240   :  { %8771 = vpow2.f32 %v3556_v25  ;;  %v3552_v28 = vsub.f32 %v3459_v4, %v3546_v12  ;;  %v3553_v30 = vsub.f32 %v3535_v63, %v3549_v27  ;;  %v3096_v27 = vrot.slane %v10155_v45, %v1759_v50 }
0x1242   :  { %v3558_v31 = vmul.f32 1.442695, %v3552_v28  ;;  %v3560_v34 = vmul.f32 1.442695, %v3553_v30 }
0x1243   :  { %v3583_v35 = vpop.permute.xlu0 %3582  ;;  %v3659_v37 = vpop.permute.xlu1 %3658 }
0x1244   :  { %8773 = vpow2.f32 %v3558_v31  ;;  %8362 = vmatpush3.msra.mxu0 %v3583_v35  ;;  %8367 = vmatpush3.msra.mxu1 %v3659_v37  ;;  %v3097_v37 = vadd.f32 %v3096_v27, %v10162_v59  ;;  %v2931_v27 = vadd.f32 %v10113_v32, %v10041_v29 }
0x1245   :  { %8775 = vpow2.f32 %v3560_v34  ;;  %8371 = vmatprep.subr.mxu0 %v9455_v11  ;;  %8376 = vmatprep.subr.mxu1 %v9455_v11 }
0x124d   :  { %v8772_v38 = vpop.eup %8771 }
0x124e   :  { %v3565_v40 = vsel %vm804_vm5, %v8772_v38, 0.0 }
0x124f   :  { %3566 = vadd.xlane.f32.xlu1 %v3565_v40 }
0x1251   :  { %v8774_v41 = vpop.eup %8773 }
0x1252   :  { %v8776_v3 = vpop.eup %8775  ;;  %v3568_v5 = vsel %vm804_vm5, %v8774_v41, 0.0 }
0x1253   :  { %3569 = vadd.xlane.f32.xlu0 %v3568_v5  ;;  %v3571_v7 = vsel %vm804_vm5, %v8776_v3, 0.0 }
0x1254   :  { %3572 = vadd.xlane.f32.xlu1 %v3571_v7 }
0x1265   :  { %3734 = vrot.lane.b32.xlu1 %v10123_v6, %s9461_s30 }
0x1269   :  { %4182 = vrot.lane.b32.xlu1 %v10117_v2, %s9456_s2  ;;  %3810 = vrot.lane.b32.xlu0 %v10128_v8, %s9461_s30 }
0x126d   :  { %4186 = vrot.lane.b32.xlu1 %v10117_v2, %s9459_s27  ;;  %4184 = vrot.lane.b32.xlu0 %v10117_v2, %s9458_s13 }
0x1271   :  { %4188 = vrot.lane.b32.xlu0 %v10117_v2, %s9460_s7 }
0x1274   :  { %v3564_v9 = vpop.xlane.xlu0 %3563 }
0x1275   :  { %8777 = vrcp.f32 %v3564_v9 }
0x1282   :  { %v8778_v10 = vpop.eup %8777 }
0x1283   :  { %v3578_v42 = vmul.f32 %v8778_v10, %v8770_v58 }
0x1285   :  { %8364 = vmatmul.mubr.msk.f32.vlgmr.msra.gmra.mxu0 %vm804_vm5, %v3578_v42 }
0x1286   :  { %8373 = vmatprep.mubr.msk.f32.mxu0 %vm9457_vm4, %v9455_v11 }
0x12d8   :  { %v3567_v6 = vpop.xlane.xlu1 %3566 }
0x12d9   :  { %8779 = vrcp.f32 %v3567_v6 }
0x12dc   :  { %v3570_v8 = vpop.xlane.xlu0 %3569 }
0x12dd   :  { %8781 = vrcp.f32 %v3570_v8  ;;  %v3573_v43 = vpop.xlane.xlu1 %3572 }
0x12de   :  { %8783 = vrcp.f32 %v3573_v43 }
0x12e0   :  { %v3811_v33 = vpop.permute.xlu0 %3810 }
0x12e1   :  { %v3735_v44 = vpop.permute.xlu1 %3734 }
0x12e2   :  { %8372 = vmatpush3.msra.mxu0 %v3735_v44 }
0x12e3   :  { %8381 = vmatprep.subr.mxu0 %v9455_v11 }
0x12e4   :  { %v10193_v46 = vpop.permute.xlu0 %4184 }
0x12e5   :  { %v10195_v47 = vpop.permute.xlu1 %4182  ;;  %4340 = vrot.lane.b32.xlu0 %v10193_v46, %s9460_s7 }
0x12e6   :  { %v8780_v36 = vpop.eup %8779  ;;  %4264 = vrot.lane.b32.xlu1 %v10195_v47, %s9460_s7 }
0x12e7   :  { %v3579_v51 = vmul.f32 %v8780_v36, %v8772_v38 }
0x12e8   :  { %v4189_v14 = vpop.permute.xlu0 %4188 }
0x12e9   :  { %v10201_v52 = vpop.permute.xlu1 %4186  ;;  %8369 = vmatmul.mubr.msk.f32.vlgmr.msra.gmra.mxu1 %vm804_vm5, %v3579_v51 }
0x12ea   :  { %v8782_v53 = vpop.eup %8781  ;;  %8377 = vmatpush3.msra.mxu1 %v3811_v33  ;;  %4416 = vrot.lane.b32.xlu1 %v10201_v52, %s9460_s7 }
0x12eb   :  { %v8784_v54 = vpop.eup %8783  ;;  %8378 = vmatprep.mubr.msk.f32.mxu1 %vm9457_vm4, %v9455_v11  ;;  %v3580_v56 = vmul.f32 %v8782_v53, %v8774_v41  ;;  %8386 = vmatprep.subr.mxu1 %v9455_v11 }
0x12ec   :  { %v3581_v62 = vmul.f32 %v8784_v54, %v8776_v3 }
0x12ed   :  { %8374 = vmatmul.mubr.msk.f32.vlgmr.msra.gmra.mxu0 %vm804_vm5, %v3580_v56 }
0x12ee   :  { %8379 = vmatmul.mubr.msk.f32.vlgmr.msra.gmra.mxu1 %vm804_vm5, %v3581_v62  ;;  %8382 = vmatpush3.msra.mxu0 %v10209_v57 }
0x12ef   :  { %8383 = vmatprep.mubr.msk.f32.mxu0 %vm9457_vm4, %v9455_v11  ;;  %8388 = vmatprep.mubr.msk.f32.mxu1 %vm9457_vm4, %v9455_v11 }
0x12f0   :  { %8391 = vmatprep.subr.mxu0 %v9455_v11  ;;  %8387 = vmatpush3.msra.mxu1 %v10221_v1 }
0x12f1   :  { %8396 = vmatprep.subr.mxu1 %v9455_v11 }
0x1345   :  { %v3654_v4 = vpop.f32.mrf.mxu0 }
0x1346   :  { %8384 = vmatmul.mubr.msk.f32.vlgmr.msra.gmra.mxu0 %vm804_vm5, %v3654_v4 }
0x1347   :  { %v8365_v26 = vpop.f32.mrf.mxu0  ;;  %8392 = vmatpush3.msra.mxu0 %v10226_v16  ;;  %8393 = vmatprep.mubr.msk.f32.mxu0 %vm9457_vm4, %v9455_v11 }
0x1348   :  { %8401 = vmatprep.subr.mxu0 %v9455_v11 }
0x1357   :  { %v4341_v18 = vpop.permute.xlu0 %4340 }
0x1358   :  { %v4265_v60 = vpop.permute.xlu1 %4264 }
0x135c   :  { %v4417_v19 = vpop.permute.xlu1 %4416 }
0x13a9   :  { %v3730_v63 = vpop.f32.mrf.mxu1 }
0x13aa   :  { %8389 = vmatmul.mubr.msk.f32.vlgmr.msra.gmra.mxu1 %vm804_vm5, %v3730_v63 }
0x13ab   :  { %v8370_v23 = vpop.f32.mrf.mxu1  ;;  %8397 = vmatpush3.msra.mxu1 %v10234_v20  ;;  %8398 = vmatprep.mubr.msk.f32.mxu1 %vm9457_vm4, %v9455_v11 }
0x13ac   :  { %8406 = vmatprep.subr.mxu1 %v9455_v11 }
0x13ad   :  { %v3806_v0 = vpop.f32.mrf.mxu0 }
0x13ae   :  { %v3882_v15 = vpop.f32.mrf.mxu1  ;;  %8394 = vmatmul.mubr.msk.f32.vlgmr.msra.gmra.mxu0 %vm804_vm5, %v3806_v0 }
0x13af   :  { %8399 = vmatmul.mubr.msk.f32.vlgmr.msra.gmra.mxu1 %vm804_vm5, %v3882_v15  ;;  %8402 = vmatpush3.xpose.msk.msra.mxu0 %vm804_vm5, %v4189_v14  ;;  %v8375_v24 = vpop.f32.mrf.mxu0 }
0x13b0   :  { %8407 = vmatpush3.xpose.msk.msra.mxu1 %vm804_vm5, %v4265_v60  ;;  %v8380_v58 = vpop.f32.mrf.mxu1  ;;  %8403 = vmatprep.mubr.msk.f32.mxu0 %vm9457_vm4, %v9455_v11 }
0x13b1   :  { %8408 = vmatprep.mubr.msk.f32.mxu1 %vm9457_vm4, %v9455_v11  ;;  %8411 = vmatprep.subr.mxu0 %v9455_v11 }
0x13b2   :  { %8416 = vmatprep.subr.mxu1 %v9455_v11  ;;  %8404 = vmatmul.mubr.msk.f32.vlgmr.msra.gmra.mxu0 %vm804_vm5, %v10117_v2 }
0x13b3   :  { %8409 = vmatmul.mubr.msk.f32.vlgmr.msra.gmra.mxu1 %vm804_vm5, %v10195_v47  ;;  %8412 = vmatpush3.xpose.msk.msra.mxu0 %vm804_vm5, %v4341_v18 }
0x13b4   :  { %8417 = vmatpush3.xpose.msk.msra.mxu1 %vm804_vm5, %v4417_v19  ;;  %8413 = vmatprep.mubr.msk.f32.mxu0 %vm9457_vm4, %v9455_v11 }
0x13b5   :  { %8418 = vmatprep.mubr.msk.f32.mxu1 %vm9457_vm4, %v9455_v11  ;;  %8421 = vmatprep.subr.mxu0 %v9455_v11 }
0x13b6   :  { %8414 = vmatmul.mubr.msk.f32.vlgmr.msra.gmra.mxu0 %vm804_vm5, %v10193_v46  ;;  %8426 = vmatprep.subr.mxu1 %v9455_v11 }
0x13b7   :  { %8419 = vmatmul.mubr.msk.f32.vlgmr.msra.gmra.mxu1 %vm804_vm5, %v10201_v52  ;;  %8423 = vmatprep.mubr.msk.f32.mxu0 %vm9457_vm4, %v9455_v11 }
0x13b8   :  { %8428 = vmatprep.mubr.msk.f32.mxu1 %vm9457_vm4, %v9455_v11 }
0x1406   :  { %v3955_v22 = vpop.f32.mrf.mxu0 }
0x1408   :  { %v8385_v25 = vpop.f32.mrf.mxu0 }
0x146a   :  { %v4028_v12 = vpop.f32.mrf.mxu1 }
0x146b   :  { %v4178_v30 = vadd.f32 %v4028_v12, %v3955_v22 }
0x146c   :  { %v8390_v28 = vpop.f32.mrf.mxu1 }
0x146d   :  { %v2930_v28 = vadd.f32 %v10115_v39, %v9997_v61 }
0x146e   :  { %v4101_v31 = vpop.f32.mrf.mxu0 }
0x146f   :  { %v4179_v34 = vadd.f32 %v4178_v30, %v4101_v31  ;;  %v4174_v35 = vpop.f32.mrf.mxu1  ;;  %v7804_v30 = vld [vmem:[#allocation14] ss:$0 sm:$0xff] }
0x1470   :  { %v8395_v38 = vpop.f32.mrf.mxu0  ;;  %v10296_v31 = vadd.f32 %v7804_v30, %v2931_v27 }
0x1471   :  { %v4180_v40 = vadd.f32 %v4179_v34, %v4174_v35  ;;  %v8400_v41 = vpop.f32.mrf.mxu1  ;;  %v2938_v35 = vadd.f32 %v7804_v30, %v2930_v28  ;;  %v10344_v28 = vld [vmem:[#allocation25] ss:$0 sm:$0xff] }
0x1472   :  { %v4260_v3 = vpop.f32.mrf.mxu0 }
0x1473   :  { %v4261_v5 = vadd.f32 %v4260_v3, %v3097_v37  ;;  %v4336_v7 = vpop.f32.mrf.mxu1  ;;  %v5135_v34 = vadd.f32 %v4180_v40, %v10094_v49 }
0x1474   :  { %v4337_v9 = vadd.f32 %v4336_v7, %v3097_v37  ;;  %v8405_v10 = vpop.f32.mrf.mxu0 }
0x1475   :  { %v8410_v42 = vpop.f32.mrf.mxu1  ;;  %v4492_v17 = vsel %vm804_vm5, %v4261_v5, -inf }
0x1476   :  { %4493 = vmax.xlane.f32.xlu0 %v4492_v17  ;;  %v4412_v50 = vpop.f32.mrf.mxu0  ;;  %v4495_v45 = vsel %vm804_vm5, %v4337_v9, -inf }
0x1477   :  { %v4413_v6 = vadd.f32 %v4412_v50, %v3097_v37  ;;  %4496 = vmax.xlane.f32.xlu1 %v4495_v45  ;;  %v4488_v8 = vpop.f32.mrf.mxu1 }
0x1478   :  { %v8415_v43 = vpop.f32.mrf.mxu0  ;;  %v4489_v59 = vadd.f32 %v4488_v8, %v3097_v37  ;;  %v10299_v37 = vld [vmem:[#allocation22] ss:$0 sm:$0xff] }
0x1479   :  { %v8420_v33 = vpop.f32.mrf.mxu1  ;;  %v4498_v44 = vsel %vm804_vm5, %v4413_v6, -inf }
0x147a   :  { %4499 = vmax.xlane.f32.xlu0 %v4498_v44  ;;  %v4501_v36 = vsel %vm804_vm5, %v4489_v59, -inf }
0x147e   :  { %4502 = vmax.xlane.f32.xlu0 %v4501_v36 }
0x1488   :  { %4536 = vrot.lane.b32.xlu1 %v10117_v2, %s9461_s30 }
0x14ff   :  { %v4494_v51 = vpop.xlane.xlu0 %4493 }
0x1500   :  { %v4504_v53 = vsub.f32 %v4261_v5, %v4494_v51  ;;  %v4497_v54 = vpop.xlane.xlu1 %4496 }
0x1501   :  { %v4505_v56 = vsub.f32 %v4337_v9, %v4497_v54 }
0x1502   :  { %v4508_v62 = vmul.f32 1.442695, %v4504_v53 }
0x1503   :  { %v4510_v4 = vmul.f32 1.442695, %v4505_v56  ;;  %v4500_v26 = vpop.xlane.xlu0 %4499 }
0x1504   :  { %8785 = vpow2.f32 %v4508_v62  ;;  %v4506_v63 = vsub.f32 %v4413_v6, %v4500_v26  ;;  %v4537_v23 = vpop.permute.xlu1 %4536 }
0x1505   :  { %8787 = vpow2.f32 %v4510_v4  ;;  %8422 = vmatpush3.msra.mxu0 %v4537_v23 }
0x1506   :  { %v4512_v60 = vmul.f32 1.442695, %v4506_v63  ;;  %8431 = vmatprep.subr.mxu0 %v9455_v11 }
0x1507   :  { %v4503_v0 = vpop.xlane.xlu0 %4502 }
0x1508   :  { %8789 = vpow2.f32 %v4512_v60  ;;  %v4507_v14 = vsub.f32 %v4489_v59, %v4503_v0 }
0x150a   :  { %v4514_v15 = vmul.f32 1.442695, %v4507_v14 }
0x150c   :  { %8791 = vpow2.f32 %v4514_v15 }
0x1511   :  { %v8786_v2 = vpop.eup %8785 }
0x1512   :  { %v8788_v24 = vpop.eup %8787  ;;  %v4516_v58 = vsel %vm804_vm5, %v8786_v2, 0.0 }
0x1513   :  { %4517 = vadd.xlane.f32.xlu1 %v4516_v58  ;;  %v4519_v18 = vsel %vm804_vm5, %v8788_v24, 0.0  ;;  %v7805_v58 = vld [vmem:[%s10696_s0] ss:$0 sm:$0xff] }
0x1514   :  { %4520 = vadd.xlane.f32.xlu0 %v4519_v18 }
0x1515   :  { %v8790_v19 = vpop.eup %8789 }
0x1516   :  { %v4522_v22 = vsel %vm804_vm5, %v8790_v19, 0.0 }
0x1517   :  { %4523 = vadd.xlane.f32.xlu1 %v4522_v22 }
0x1519   :  { %v8792_v25 = vpop.eup %8791 }
0x151a   :  { %v4525_v12 = vsel %vm804_vm5, %v8792_v25, 0.0 }
0x151b   :  { %4526 = vadd.xlane.f32.xlu0 %v4525_v12 }
0x1528   :  { %4688 = vrot.lane.b32.xlu1 %v10193_v46, %s9461_s30  ;;  %v10302_v46 = vadd.f32 %v10299_v37, %v5135_v34 }
0x152a   :  { %v5145_v61 = vsel %vm660_vm3, %v10302_v46, 0.0 }
0x152c   :  { %4764 = vrot.lane.b32.xlu1 %v10201_v52, %s9461_s30  ;;  %v2940_v52 = vsel %vm660_vm3, %v2938_v35, 0.0 }
0x1531   :  { %4612 = vrot.lane.b32.xlu0 %v10195_v47, %s9461_s30  ;;  %v2943_v47 = vsel %vm660_vm3, %v10296_v31, 0.0 }
0x1550   :  { %2944 = vadd.xlane.f32.xlu1 %v2943_v47  ;;  %2941 = vadd.xlane.f32.xlu0 %v2940_v52 }
0x1554   :  { %5146 = vadd.xlane.f32.xlu0 %v5145_v61 }
0x159c   :  { %v4518_v29 = vpop.xlane.xlu1 %4517 }
0x159d   :  { %v4521_v32 = vpop.xlane.xlu0 %4520  ;;  %8793 = vrcp.f32 %v4518_v29 }
0x159e   :  { %8795 = vrcp.f32 %v4521_v32 }
0x15a0   :  { %v4524_v49 = vpop.xlane.xlu1 %4523 }
0x15a1   :  { %8797 = vrcp.f32 %v4524_v49 }
0x15a4   :  { %v4527_v39 = vpop.xlane.xlu0 %4526  ;;  %v4689_v38 = vpop.permute.xlu1 %4688 }
0x15a5   :  { %8799 = vrcp.f32 %v4527_v39 }
0x15a8   :  { %v4613_v40 = vpop.permute.xlu0 %4612  ;;  %v4765_v10 = vpop.permute.xlu1 %4764 }
0x15a9   :  { %8427 = vmatpush3.msra.mxu1 %v4613_v40 }
0x15aa   :  { %v8794_v41 = vpop.eup %8793  ;;  %8436 = vmatprep.subr.mxu1 %v9455_v11 }
0x15ab   :  { %v8796_v3 = vpop.eup %8795  ;;  %v4532_v5 = vmul.f32 %v8794_v41, %v8786_v2 }
0x15ac   :  { %v4533_v7 = vmul.f32 %v8796_v3, %v8788_v24 }
0x15ad   :  { %8424 = vmatmul.mubr.msk.f32.vlgmr.msra.gmra.mxu0 %vm804_vm5, %v4532_v5 }
0x15ae   :  { %v8798_v9 = vpop.eup %8797  ;;  %8429 = vmatmul.mubr.msk.f32.vlgmr.msra.gmra.mxu1 %vm804_vm5, %v4533_v7  ;;  %8432 = vmatpush3.msra.mxu0 %v4689_v38 }
0x15af   :  { %8437 = vmatpush3.msra.mxu1 %v4765_v10  ;;  %8433 = vmatprep.mubr.msk.f32.mxu0 %vm9457_vm4, %v9455_v11  ;;  %v4534_v42 = vmul.f32 %v8798_v9, %v8790_v19  ;;  %v7806_v19 = vld [vmem:[#allocation16] ss:$0 sm:$0xff] }
0x15b0   :  { %8438 = vmatprep.mubr.msk.f32.mxu1 %vm9457_vm4, %v9455_v11  ;;  %8441 = vmatprep.subr.mxu0 %v9455_v11 }
0x15b1   :  { %8434 = vmatmul.mubr.msk.f32.vlgmr.msra.gmra.mxu0 %vm804_vm5, %v4534_v42  ;;  %8446 = vmatprep.subr.mxu1 %v9455_v11 }
0x15b2   :  { %v8800_v17 = vpop.eup %8799  ;;  %8442 = vmatpush3.msra.mxu0 %v10209_v57  ;;  %8443 = vmatprep.mubr.msk.f32.mxu0 %vm9457_vm4, %v9455_v11 }
0x15b3   :  { %v4535_v50 = vmul.f32 %v8800_v17, %v8792_v25  ;;  %8451 = vmatprep.subr.mxu0 %v9455_v11 }
0x15b5   :  { %8439 = vmatmul.mubr.msk.f32.vlgmr.msra.gmra.mxu1 %vm804_vm5, %v4535_v50  ;;  %v516_v50 = vld [vmem:[%s10697_s25 + $0x18] sm:$0xff] }
0x15b6   :  { %8447 = vmatpush3.msra.mxu1 %v10221_v1  ;;  %8448 = vmatprep.mubr.msk.f32.mxu1 %vm9457_vm4, %v9455_v11 }
0x15b7   :  { %8456 = vmatprep.subr.mxu1 %v9455_v11 }
0x15d9   :  { %v2942_v45 = vpop.xlane.xlu0 %2941  ;;  %v2945_v1 = vpop.xlane.xlu1 %2944 }
0x15da   :  { %v2946_v6 = vmul.f32 0.03125, %v2942_v45  ;;  %v2947_v39 = vmul.f32 0.03125, %v2945_v1  ;;  %v515_v45 = vld [vmem:[%s10697_s25 + $0x10] sm:$0xff] }
0x15dc   :  { %v2948_v8 = vsub.f32 %v2938_v35, %v2946_v6  ;;  %v2949_v5 = vsub.f32 %v10296_v31, %v2947_v39  ;;  %v514_v6 = vld [vmem:[%s10697_s25 + $0x8] sm:$0xff]  ;;  %v513_v31 = vld [vmem:[%s10697_s25] sm:$0xff] }
0x15dd   :  { %v5147_v43 = vpop.xlane.xlu0 %5146 }
0x15de   :  { %v5151_v57 = vmul.f32 0.03125, %v5147_v43  ;;  %v2950_v59 = vmul.f32 %v2948_v8, %v2948_v8  ;;  %v2951_v42 = vmul.f32 %v2949_v5, %v2949_v5 }
0x15e0   :  { %v5153_v33 = vsub.f32 %v10302_v46, %v5151_v57  ;;  %v2952_v44 = vsel %vm660_vm3, %v2950_v59, 0.0  ;;  %v2955_v17 = vsel %vm660_vm3, %v2951_v42, 0.0 }
0x15e1   :  { %2953 = vadd.xlane.f32.xlu1 %v2952_v44 }
0x15e2   :  { %v5155_v36 = vmul.f32 %v5153_v33, %v5153_v33 }
0x15e4   :  { %v5157_v51 = vsel %vm660_vm3, %v5155_v36, 0.0 }
0x15e5   :  { %5158 = vadd.xlane.f32.xlu1 %v5157_v51 }
0x166a   :  { %v2954_v53 = vpop.xlane.xlu1 %2953 }
0x166b   :  { %v2958_v54 = vmul.f32 0.03125, %v2954_v53 }
0x166d   :  { %v2960_v56 = vadd.f32 1e-05, %v2958_v54  ;;  %v4608_v62 = vpop.f32.mrf.mxu0  ;;  %v511_v54 = vld [vmem:[%s10698_s16 + $0x18] sm:$0xff] }
0x166e   :  { %v4684_v4 = vpop.f32.mrf.mxu1  ;;  %8444 = vmatmul.mubr.msk.f32.vlgmr.msra.gmra.mxu0 %vm804_vm5, %v4608_v62  ;;  %v5159_v26 = vpop.xlane.xlu1 %5158  ;;  %v509_v62 = vld [vmem:[%s10698_s16 + $0x8] sm:$0xff] }
0x166f   :  { %8801 = vrsqrt.f32 %v2960_v56  ;;  %8449 = vmatmul.mubr.msk.f32.vlgmr.msra.gmra.mxu1 %vm804_vm5, %v4684_v4  ;;  %v5163_v63 = vmul.f32 0.03125, %v5159_v26  ;;  %v8425_v23 = vpop.f32.mrf.mxu0  ;;  %8452 = vmatpush3.msra.mxu0 %v10226_v16  ;;  %v510_v56 = vld [vmem:[%s10698_s16 + $0x10] sm:$0xff]  ;;  %v508_v4 = vld [vmem:[%s10698_s16] sm:$0xff] }
0x1670   :  { %v8430_v60 = vpop.f32.mrf.mxu1  ;;  %8453 = vmatprep.mubr.msk.f32.mxu0 %vm9457_vm4, %v9455_v11  ;;  %8457 = vmatpush3.msra.mxu1 %v10234_v20  ;;  %v10342_v20 = vld [vmem:[#allocation23] ss:$0 sm:$0xff] }
0x1671   :  { %v5165_v0 = vadd.f32 1e-05, %v5163_v63  ;;  %v4760_v14 = vpop.f32.mrf.mxu0  ;;  %8458 = vmatprep.mubr.msk.f32.mxu1 %vm9457_vm4, %v9455_v11  ;;  %8472 = vmatprep.subr.mxu1 %v516_v50 }
0x1672   :  { %8454 = vmatmul.mubr.msk.f32.vlgmr.msra.gmra.mxu0 %vm804_vm5, %v4760_v14  ;;  %8461 = vmatprep.subr.mxu0 %v511_v54 }
0x1673   :  { %8803 = vrsqrt.f32 %v5165_v0  ;;  %v8435_v15 = vpop.f32.mrf.mxu0  ;;  %8462 = vmatpush3.msra.mxu0 %v511_v54 }
0x1674   :  { %8463 = vmatprep.subr.mxu0 %v510_v56 }
0x1675   :  { %v4836_v2 = vpop.f32.mrf.mxu1  ;;  %8464 = vmatpush3.msra.mxu0 %v510_v56 }
0x1676   :  { %8459 = vmatmul.mubr.msk.f32.vlgmr.msra.gmra.mxu1 %vm804_vm5, %v4836_v2  ;;  %8465 = vmatprep.subr.mxu0 %v509_v62  ;;  %v7855_v2 = vld [vmem:[#allocation28] ss:$0 sm:$0xff] }
0x1677   :  { %v8440_v24 = vpop.f32.mrf.mxu1  ;;  %8473 = vmatpush3.msra.mxu1 %v516_v50  ;;  %8466 = vmatpush3.msra.mxu0 %v509_v62 }
0x1678   :  { %8474 = vmatprep.subr.mxu1 %v515_v45  ;;  %8467 = vmatprep.subr.mxu0 %v508_v4 }
0x1679   :  { %8475 = vmatpush3.msra.mxu1 %v515_v45  ;;  %8468 = vmatpush3.msra.mxu0 %v508_v4 }
0x167a   :  { %8476 = vmatprep.subr.mxu1 %v514_v6  ;;  %8483 = vmatprep.subr.mxu0 %v9455_v11 }
0x167b   :  { %8477 = vmatpush3.msra.mxu1 %v514_v6 }
0x167c   :  { %v8802_v16 = vpop.eup %8801  ;;  %8478 = vmatprep.subr.mxu1 %v513_v31 }
0x167d   :  { %v2964_v18 = vmul.f32 %v8802_v16, %v2948_v8  ;;  %8479 = vmatpush3.msra.mxu1 %v513_v31 }
0x167e   :  { %8488 = vmatprep.subr.mxu1 %v9455_v11 }
0x167f   :  { %v2972_v22 = vmul.f32 %v7805_v58, %v2964_v18 }
0x1680   :  { %v8804_v25 = vpop.eup %8803 }
0x1681   :  { %v2980_v12 = vadd.f32 %v7806_v19, %v2972_v22  ;;  %v5169_v27 = vmul.f32 %v8804_v25, %v5153_v33  ;;  %v7852_v22 = vld [vmem:[#allocation26] ss:$0 sm:$0xff] }
0x1683   :  { %8480 = vmatprep.mubr.msk.f32.mxu1 %vm660_vm3, %v2980_v12  ;;  %v5177_v30 = vmul.f32 %v10342_v20, %v5169_v27 }
0x1685   :  { %v5185_v34 = vadd.f32 %v10344_v28, %v5177_v30 }
0x1687   :  { %8469 = vmatprep.mubr.msk.f32.mxu0 %vm660_vm3, %v5185_v34 }
0x172e   :  { %v4909_v35 = vpop.f32.mrf.mxu0 }
0x172f   :  { %v4982_v47 = vpop.f32.mrf.mxu1 }
0x1730   :  { %v8445_v52 = vpop.f32.mrf.mxu0  ;;  %v5132_v32 = vadd.f32 %v4982_v47, %v4909_v35 }
0x1731   :  { %v8450_v61 = vpop.f32.mrf.mxu1 }
0x1732   :  { %v5055_v29 = vpop.f32.mrf.mxu0 }
0x1733   :  { %v5133_v38 = vadd.f32 %v5132_v32, %v5055_v29 }
0x1734   :  { %v8455_v49 = vpop.f32.mrf.mxu0 }
0x1736   :  { %v5128_v40 = vpop.f32.mrf.mxu1 }
0x1737   :  { %v5134_v41 = vadd.f32 %v5133_v38, %v5128_v40 }
0x1738   :  { %v8460_v3 = vpop.f32.mrf.mxu1 }
0x1739   :  { %v5136_v7 = vadd.f32 %v5134_v41, %v10092_v48 }
0x173b   :  { %v10353_v9 = vadd.f32 %v10299_v37, %v5136_v7 }
0x173d   :  { %v5148_v10 = vsel %vm660_vm3, %v10353_v9, 0.0 }
0x173e   :  { %5149 = vadd.xlane.f32.xlu0 %v5148_v10 }
0x1742   :  { %2956 = vadd.xlane.f32.xlu0 %v2955_v17 }
0x17c7   :  { %v5150_v48 = vpop.xlane.xlu0 %5149 }
0x17c8   :  { %v5152_v37 = vmul.f32 0.03125, %v5150_v48 }
0x17ca   :  { %v5154_v8 = vsub.f32 %v10353_v9, %v5152_v37 }
0x17cb   :  { %v2957_v43 = vpop.xlane.xlu0 %2956 }
0x17cc   :  { %v2959_v57 = vmul.f32 0.03125, %v2957_v43  ;;  %v5156_v59 = vmul.f32 %v5154_v8, %v5154_v8 }
0x17ce   :  { %v2961_v33 = vadd.f32 1e-05, %v2959_v57  ;;  %v5160_v44 = vsel %vm660_vm3, %v5156_v59, 0.0 }
0x17cf   :  { %5161 = vadd.xlane.f32.xlu0 %v5160_v44 }
0x17d0   :  { %8805 = vrsqrt.f32 %v2961_v33 }
0x17dd   :  { %v8806_v36 = vpop.eup %8805 }
0x17de   :  { %v2965_v51 = vmul.f32 %v8806_v36, %v2949_v5 }
0x17e0   :  { %v2973_v1 = vmul.f32 %v7805_v58, %v2965_v51 }
0x17e2   :  { %v2981_v53 = vadd.f32 %v7806_v19, %v2973_v1 }
0x17e4   :  { %8481 = vmatmul.mubr.msk.f32.vlgmr.msra.gmra.mxu1 %vm660_vm3, %v2981_v53 }
0x17e5   :  { %8490 = vmatprep.mubr.msk.f32.mxu1 %vm9457_vm4, %v9455_v11 }
0x1858   :  { %v5162_v26 = vpop.xlane.xlu0 %5161 }
0x1859   :  { %v5164_v63 = vmul.f32 0.03125, %v5162_v26 }
0x185b   :  { %v5166_v23 = vadd.f32 1e-05, %v5164_v63 }
0x185d   :  { %8807 = vrsqrt.f32 %v5166_v23 }
0x186a   :  { %v8808_v60 = vpop.eup %8807 }
0x186b   :  { %v5170_v0 = vmul.f32 %v8808_v60, %v5154_v8 }
0x186d   :  { %v5178_v14 = vmul.f32 %v10342_v20, %v5170_v0 }
0x186f   :  { %v5186_v15 = vadd.f32 %v10344_v28, %v5178_v14 }
0x1871   :  { %8470 = vmatmul.mubr.msk.f32.vlgmr.msra.gmra.mxu0 %vm660_vm3, %v5186_v15 }
0x1872   :  { %8485 = vmatprep.mubr.msk.f32.mxu0 %vm9457_vm4, %v9455_v11 }
0x18a4   :  { %v8482_v24 = vpop.f32.mrf.mxu1 }
0x18a5   :  { %v10378_v16 = vadd.f32 %v8482_v24, %v7855_v2 }
0x18a6   :  { %v5352_v58 = vpop.f32.mrf.mxu1 }
0x18a7   :  { %v5353_v18 = vadd.f32 %v7855_v2, %v5352_v58 }
0x18a9   :  { %5371 = vrot.lane.b32.xlu0 %v5353_v18, %s9458_s13  ;;  %5369 = vrot.lane.b32.xlu1 %v5353_v18, %s9456_s2 }
0x18aa   :  { %8484 = vmatpush3.xpose.msk.msra.mxu0 %vm804_vm5, %v5353_v18 }
0x18ab   :  { %8493 = vmatprep.subr.mxu0 %v9455_v11 }
0x18ad   :  { %5373 = vrot.lane.b32.xlu1 %v5353_v18, %s9459_s27 }
0x191b   :  { %v10385_v19 = vpop.permute.xlu1 %5369  ;;  %v10394_v28 = vpop.permute.xlu0 %5371 }
0x191c   :  { %8489 = vmatpush3.xpose.msk.msra.mxu1 %vm804_vm5, %v10385_v19 }
0x191d   :  { %8498 = vmatprep.subr.mxu1 %v9455_v11 }
0x191f   :  { %v10403_v30 = vpop.permute.xlu1 %5373 }
0x1931   :  { %v8471_v25 = vpop.f32.mrf.mxu0 }
0x1932   :  { %v10390_v20 = vadd.f32 %v8471_v25, %v7852_v22  ;;  %v10455_v25 = vld [vmem:[%s10699_s18] sm:$0xff] }
0x1933   :  { %v5265_v12 = vpop.f32.mrf.mxu0 }
0x1934   :  { %v5266_v27 = vadd.f32 %v7852_v22, %v5265_v12 }
0x1936   :  { %5364 = vrot.lane.b32.xlu0 %v5266_v27, %s9458_s13  ;;  %5362 = vrot.lane.b32.xlu1 %v5266_v27, %s9456_s2 }
0x1937   :  { %8486 = vmatmul.mubr.msk.f32.vlgmr.msra.gmra.mxu0 %vm804_vm5, %v5266_v27 }
0x1938   :  { %8494 = vmatpush3.xpose.msk.msra.mxu0 %vm804_vm5, %v10394_v28  ;;  %8495 = vmatprep.mubr.msk.f32.mxu0 %vm9457_vm4, %v9455_v11 }
0x1939   :  { %8503 = vmatprep.subr.mxu0 %v9455_v11 }
0x193a   :  { %5366 = vrot.lane.b32.xlu1 %v5266_v27, %s9459_s27 }
0x19a8   :  { %v5363_v34 = vpop.permute.xlu1 %5362  ;;  %v5365_v35 = vpop.permute.xlu0 %5364 }
0x19a9   :  { %8491 = vmatmul.mubr.msk.f32.vlgmr.msra.gmra.mxu1 %vm804_vm5, %v5363_v34  ;;  %8496 = vmatmul.mubr.msk.f32.vlgmr.msra.gmra.mxu0 %vm804_vm5, %v5365_v35  ;;  %v10475_v34 = vld [vmem:[%s10699_s18 + $0x10] sm:$0xff] }
0x19aa   :  { %8499 = vmatpush3.xpose.msk.msra.mxu1 %vm804_vm5, %v10403_v30  ;;  %8500 = vmatprep.mubr.msk.f32.mxu1 %vm9457_vm4, %v9455_v11 }
0x19ab   :  { %8505 = vmatprep.mubr.msk.f32.mxu0 %vm9457_vm4, %v9455_v11  ;;  %8508 = vmatprep.subr.mxu1 %v9455_v11 }
0x19ac   :  { %v5367_v47 = vpop.permute.xlu1 %5366 }
0x19ad   :  { %8501 = vmatmul.mubr.msk.f32.vlgmr.msra.gmra.mxu1 %vm804_vm5, %v5367_v47 }
0x19ae   :  { %8510 = vmatprep.mubr.msk.f32.mxu1 %vm9457_vm4, %v9455_v11 }
0x19f7   :  { %v5445_v52 = vpop.f32.mrf.mxu0 }
0x19f8   :  { %v5446_v61 = vadd.f32 %v5445_v52, %v9853_v21 }
0x19f9   :  { %v8487_v29 = vpop.f32.mrf.mxu0 }
0x19fa   :  { %v5671_v32 = vsel %vm804_vm5, %v5446_v61, -inf }
0x19fb   :  { %5672 = vmax.xlane.f32.xlu0 %v5671_v32 }
0x1a69   :  { %v5519_v49 = vpop.f32.mrf.mxu1  ;;  %v5593_v39 = vpop.f32.mrf.mxu0 }
0x1a6a   :  { %v5520_v38 = vadd.f32 %v5519_v49, %v9853_v21  ;;  %v5594_v40 = vadd.f32 %v5593_v39, %v9853_v21 }
0x1a6b   :  { %v8492_v41 = vpop.f32.mrf.mxu1  ;;  %v8497_v3 = vpop.f32.mrf.mxu0 }
0x1a6c   :  { %v5674_v5 = vsel %vm804_vm5, %v5520_v38, -inf  ;;  %v5677_v7 = vsel %vm804_vm5, %v5594_v40, -inf }
0x1a6d   :  { %5675 = vmax.xlane.f32.xlu1 %v5674_v5  ;;  %v5667_v10 = vpop.f32.mrf.mxu1  ;;  %5678 = vmax.xlane.f32.xlu0 %v5677_v7 }
0x1a6e   :  { %v5668_v42 = vadd.f32 %v5667_v10, %v9853_v21 }
0x1a6f   :  { %v8502_v17 = vpop.f32.mrf.mxu1 }
0x1a70   :  { %v5680_v50 = vsel %vm804_vm5, %v5668_v42, -inf }
0x1a71   :  { %5681 = vmax.xlane.f32.xlu0 %v5680_v50 }
0x1a7e   :  { %5715 = vrot.lane.b32.xlu1 %v5353_v18, %s9460_s7 }
0x1a84   :  { %v5673_v45 = vpop.xlane.xlu0 %5672 }
0x1a85   :  { %v5683_v6 = vsub.f32 %v5446_v61, %v5673_v45  ;;  %v10485_v61 = vld [vmem:[%s10699_s18 + $0x18] sm:$0xff] }
0x1a87   :  { %v5687_v31 = vmul.f32 1.442695, %v5683_v6 }
0x1a89   :  { %8809 = vpow2.f32 %v5687_v31 }
0x1a96   :  { %v8810_v48 = vpop.eup %8809 }
0x1a97   :  { %v5695_v37 = vsel %vm804_vm5, %v8810_v48, 0.0 }
0x1aa2   :  { %5696 = vadd.xlane.f32.xlu1 %v5695_v37 }
0x1af6   :  { %v5676_v8 = vpop.xlane.xlu1 %5675  ;;  %v5679_v43 = vpop.xlane.xlu0 %5678 }
0x1af7   :  { %v5684_v57 = vsub.f32 %v5520_v38, %v5676_v8  ;;  %v5685_v59 = vsub.f32 %v5594_v40, %v5679_v43 }
0x1af9   :  { %v5689_v33 = vmul.f32 1.442695, %v5684_v57  ;;  %v5691_v21 = vmul.f32 1.442695, %v5685_v59 }
0x1afa   :  { %v5716_v44 = vpop.permute.xlu1 %5715  ;;  %v5682_v36 = vpop.xlane.xlu0 %5681 }
0x1afb   :  { %8811 = vpow2.f32 %v5689_v33  ;;  %v5686_v51 = vsub.f32 %v5668_v42, %v5682_v36  ;;  %8504 = vmatpush3.msra.mxu0 %v5716_v44 }
0x1afc   :  { %8813 = vpow2.f32 %v5691_v21  ;;  %8513 = vmatprep.subr.mxu0 %v9455_v11 }
0x1afd   :  { %v5693_v1 = vmul.f32 1.442695, %v5686_v51 }
0x1aff   :  { %8815 = vpow2.f32 %v5693_v1 }
0x1b08   :  { %v8812_v53 = vpop.eup %8811 }
0x1b09   :  { %v8814_v54 = vpop.eup %8813  ;;  %v5698_v56 = vsel %vm804_vm5, %v8812_v53, 0.0 }
0x1b0a   :  { %5699 = vadd.xlane.f32.xlu0 %v5698_v56  ;;  %v5701_v62 = vsel %vm804_vm5, %v8814_v54, 0.0 }
0x1b0b   :  { %5702 = vadd.xlane.f32.xlu1 %v5701_v62 }
0x1b0c   :  { %v8816_v4 = vpop.eup %8815 }
0x1b0d   :  { %v5704_v26 = vsel %vm804_vm5, %v8816_v4, 0.0 }
0x1b0e   :  { %5705 = vadd.xlane.f32.xlu0 %v5704_v26 }
0x1b1c   :  { %5867 = vrot.lane.b32.xlu1 %v10394_v28, %s9460_s7 }
0x1b20   :  { %5943 = vrot.lane.b32.xlu1 %v10403_v30, %s9460_s7  ;;  %v10463_v30 = vld [vmem:[%s10699_s18 + $0x8] sm:$0xff] }
0x1b24   :  { %6324 = vrot.lane.b32.xlu1 %v10378_v16, %s9458_s13  ;;  %5791 = vrot.lane.b32.xlu0 %v10385_v19, %s9460_s7 }
0x1b28   :  { %6326 = vrot.lane.b32.xlu1 %v10378_v16, %s9459_s27  ;;  %6322 = vrot.lane.b32.xlu0 %v10378_v16, %s9456_s2 }
0x1b2b   :  { %v5697_v63 = vpop.xlane.xlu1 %5696 }
0x1b2c   :  { %8817 = vrcp.f32 %v5697_v63  ;;  %6319 = vrot.lane.b32.xlu1 %v10390_v20, %s9459_s27  ;;  %6315 = vrot.lane.b32.xlu0 %v10390_v20, %s9456_s2 }
0x1b30   :  { %6317 = vrot.lane.b32.xlu0 %v10390_v20, %s9458_s13 }
0x1b39   :  { %v8818_v23 = vpop.eup %8817 }
0x1b3a   :  { %v5711_v60 = vmul.f32 %v8818_v23, %v8810_v48 }
0x1b3c   :  { %8506 = vmatmul.mubr.msk.f32.vlgmr.msra.gmra.mxu0 %vm804_vm5, %v5711_v60 }
0x1b3d   :  { %8515 = vmatprep.mubr.msk.f32.mxu0 %vm9457_vm4, %v9455_v11 }
0x1b93   :  { %v5700_v0 = vpop.xlane.xlu0 %5699 }
0x1b94   :  { %v5703_v14 = vpop.xlane.xlu1 %5702  ;;  %8819 = vrcp.f32 %v5700_v0 }
0x1b95   :  { %8821 = vrcp.f32 %v5703_v14 }
0x1b97   :  { %v5706_v15 = vpop.xlane.xlu0 %5705 }
0x1b98   :  { %v5868_v2 = vpop.permute.xlu1 %5867  ;;  %8823 = vrcp.f32 %v5706_v15 }
0x1b99   :  { %8514 = vmatpush3.msra.mxu0 %v5868_v2 }
0x1b9a   :  { %8523 = vmatprep.subr.mxu0 %v9455_v11 }
0x1b9b   :  { %v5792_v24 = vpop.permute.xlu0 %5791 }
0x1b9c   :  { %8509 = vmatpush3.msra.mxu1 %v5792_v24  ;;  %v5944_v12 = vpop.permute.xlu1 %5943 }
0x1b9d   :  { %8518 = vmatprep.subr.mxu1 %v9455_v11 }
0x1b9f   :  { %v10482_v52 = vpop.permute.xlu0 %6322 }
0x1ba0   :  { %v10487_v29 = vpop.permute.xlu1 %6324 }
0x1ba1   :  { %v8820_v58 = vpop.eup %8819 }
0x1ba2   :  { %v8822_v18 = vpop.eup %8821  ;;  %v5712_v19 = vmul.f32 %v8820_v58, %v8812_v53 }
0x1ba3   :  { %v5713_v22 = vmul.f32 %v8822_v18, %v8814_v54  ;;  %v6316_v38 = vpop.permute.xlu0 %6315 }
0x1ba4   :  { %8511 = vmatmul.mubr.msk.f32.vlgmr.msra.gmra.mxu1 %vm804_vm5, %v5712_v19  ;;  %v10501_v3 = vpop.permute.xlu1 %6326 }
0x1ba5   :  { %v8824_v27 = vpop.eup %8823  ;;  %8516 = vmatmul.mubr.msk.f32.vlgmr.msra.gmra.mxu0 %vm804_vm5, %v5713_v22  ;;  %8519 = vmatpush3.msra.mxu1 %v5944_v12 }
0x1ba6   :  { %8520 = vmatprep.mubr.msk.f32.mxu1 %vm9457_vm4, %v9455_v11  ;;  %v5714_v28 = vmul.f32 %v8824_v27, %v8816_v4  ;;  %8524 = vmatpush3.msra.mxu0 %v10455_v25 }
0x1ba7   :  { %8525 = vmatprep.mubr.msk.f32.mxu0 %vm9457_vm4, %v9455_v11  ;;  %8528 = vmatprep.subr.mxu1 %v9455_v11  ;;  %v6318_v7 = vpop.permute.xlu0 %6317 }
0x1ba8   :  { %8521 = vmatmul.mubr.msk.f32.vlgmr.msra.gmra.mxu1 %vm804_vm5, %v5714_v28  ;;  %8533 = vmatprep.subr.mxu0 %v9455_v11 }
0x1ba9   :  { %8529 = vmatpush3.msra.mxu1 %v10463_v30  ;;  %8530 = vmatprep.mubr.msk.f32.mxu1 %vm9457_vm4, %v9455_v11 }
0x1baa   :  { %8538 = vmatprep.subr.mxu1 %v9455_v11 }
0x1bfc   :  { %v5787_v35 = vpop.f32.mrf.mxu0 }
0x1bfd   :  { %8526 = vmatmul.mubr.msk.f32.vlgmr.msra.gmra.mxu0 %vm804_vm5, %v5787_v35 }
0x1bfe   :  { %v8507_v47 = vpop.f32.mrf.mxu0  ;;  %8534 = vmatpush3.msra.mxu0 %v10475_v34  ;;  %8535 = vmatprep.mubr.msk.f32.mxu0 %vm9457_vm4, %v9455_v11 }
0x1bff   :  { %8543 = vmatprep.subr.mxu0 %v9455_v11 }
0x1c64   :  { %v5863_v32 = vpop.f32.mrf.mxu1 }
0x1c65   :  { %v5939_v49 = vpop.f32.mrf.mxu0  ;;  %8531 = vmatmul.mubr.msk.f32.vlgmr.msra.gmra.mxu1 %vm804_vm5, %v5863_v32 }
0x1c66   :  { %8536 = vmatmul.mubr.msk.f32.vlgmr.msra.gmra.mxu0 %vm804_vm5, %v5939_v49  ;;  %v8512_v39 = vpop.f32.mrf.mxu1  ;;  %8539 = vmatpush3.msra.mxu1 %v10485_v61 }
0x1c67   :  { %8544 = vmatpush3.xpose.msk.msra.mxu0 %vm804_vm5, %v10378_v16  ;;  %v8517_v40 = vpop.f32.mrf.mxu0  ;;  %8540 = vmatprep.mubr.msk.f32.mxu1 %vm9457_vm4, %v9455_v11 }
0x1c68   :  { %v6015_v41 = vpop.f32.mrf.mxu1  ;;  %8545 = vmatprep.mubr.msk.f32.mxu0 %vm9457_vm4, %v9455_v11  ;;  %8548 = vmatprep.subr.mxu1 %v9455_v11 }
0x1c69   :  { %8553 = vmatprep.subr.mxu0 %v9455_v11  ;;  %8541 = vmatmul.mubr.msk.f32.vlgmr.msra.gmra.mxu1 %vm804_vm5, %v6015_v41  ;;  %v10549_v41 = vld [vmem:[#allocation29] ss:$0 sm:$0xff] }
0x1c6a   :  { %8546 = vmatmul.mubr.msk.f32.vlgmr.msra.gmra.mxu0 %vm804_vm5, %v10390_v20  ;;  %8549 = vmatpush3.xpose.msk.msra.mxu1 %vm804_vm5, %v10482_v52  ;;  %v8522_v5 = vpop.f32.mrf.mxu1  ;;  %v6320_v20 = vpop.permute.xlu1 %6319 }
0x1c6b   :  { %8554 = vmatpush3.xpose.msk.msra.mxu0 %vm804_vm5, %v10487_v29  ;;  %8550 = vmatprep.mubr.msk.f32.mxu1 %vm9457_vm4, %v9455_v11 }
0x1c6c   :  { %8555 = vmatprep.mubr.msk.f32.mxu0 %vm9457_vm4, %v9455_v11  ;;  %8558 = vmatprep.subr.mxu1 %v9455_v11 }
0x1c6d   :  { %8551 = vmatmul.mubr.msk.f32.vlgmr.msra.gmra.mxu1 %vm804_vm5, %v6316_v38  ;;  %8563 = vmatprep.subr.mxu0 %v9455_v11 }
0x1c6e   :  { %8556 = vmatmul.mubr.msk.f32.vlgmr.msra.gmra.mxu0 %vm804_vm5, %v6318_v7  ;;  %8559 = vmatpush3.xpose.msk.msra.mxu1 %vm804_vm5, %v10501_v3 }
0x1c6f   :  { %8560 = vmatprep.mubr.msk.f32.mxu1 %vm9457_vm4, %v9455_v11  ;;  %8568 = vmatprep.subr.mxu1 %v9455_v11 }
0x1c70   :  { %8565 = vmatprep.mubr.msk.f32.mxu0 %vm9457_vm4, %v9455_v11 }
0x1c71   :  { %8561 = vmatmul.mubr.msk.f32.vlgmr.msra.gmra.mxu1 %vm804_vm5, %v6320_v20 }
0x1c72   :  { %8570 = vmatprep.mubr.msk.f32.mxu1 %vm9457_vm4, %v9455_v11 }
0x1cbd   :  { %v6088_v10 = vpop.f32.mrf.mxu0 }
0x1cbf   :  { %v8527_v42 = vpop.f32.mrf.mxu0 }
0x1d25   :  { %v6161_v17 = vpop.f32.mrf.mxu1 }
0x1d26   :  { %v6311_v50 = vadd.f32 %v6161_v17, %v6088_v10  ;;  %v6234_v45 = vpop.f32.mrf.mxu0 }
0x1d27   :  { %v8532_v6 = vpop.f32.mrf.mxu1 }
0x1d28   :  { %v6312_v31 = vadd.f32 %v6311_v50, %v6234_v45  ;;  %v8537_v48 = vpop.f32.mrf.mxu0 }
0x1d29   :  { %v6307_v37 = vpop.f32.mrf.mxu1 }
0x1d2a   :  { %v6313_v8 = vadd.f32 %v6312_v31, %v6307_v37  ;;  %v6398_v43 = vpop.f32.mrf.mxu0 }
0x1d2b   :  { %v6399_v57 = vadd.f32 %v6398_v43, %v9970_v55  ;;  %v8542_v59 = vpop.f32.mrf.mxu1 }
0x1d2c   :  { %v8547_v33 = vpop.f32.mrf.mxu0  ;;  %v7267_v40 = vadd.f32 %v6313_v8, %v10302_v46 }
0x1d2d   :  { %v6624_v21 = vsel %vm804_vm5, %v6399_v57, -inf  ;;  %v6472_v44 = vpop.f32.mrf.mxu1 }
0x1d2e   :  { %6625 = vmax.xlane.f32.xlu0 %v6624_v21  ;;  %v6473_v36 = vadd.f32 %v6472_v44, %v9970_v55  ;;  %v6546_v51 = vpop.f32.mrf.mxu0  ;;  %v10552_v5 = vadd.f32 %v10549_v41, %v7267_v40  ;;  %v526_v40 = vld [vmem:[%s10700_s20 + $0x8] sm:$0xff] }
0x1d2f   :  { %v6547_v1 = vadd.f32 %v6546_v51, %v9970_v55  ;;  %v8552_v53 = vpop.f32.mrf.mxu1 }
0x1d30   :  { %v8557_v54 = vpop.f32.mrf.mxu0  ;;  %v6627_v56 = vsel %vm804_vm5, %v6473_v36, -inf  ;;  %v7277_v7 = vsel %vm660_vm3, %v10552_v5, 0.0 }
0x1d31   :  { %6628 = vmax.xlane.f32.xlu1 %v6627_v56  ;;  %v6620_v62 = vpop.f32.mrf.mxu1  ;;  %v6630_v4 = vsel %vm804_vm5, %v6547_v1, -inf }
0x1d32   :  { %v6621_v26 = vadd.f32 %v6620_v62, %v9970_v55  ;;  %6631 = vmax.xlane.f32.xlu0 %v6630_v4 }
0x1d33   :  { %v8562_v63 = vpop.f32.mrf.mxu1 }
0x1d34   :  { %v6633_v23 = vsel %vm804_vm5, %v6621_v26, -inf }
0x1d36   :  { %6634 = vmax.xlane.f32.xlu0 %v6633_v23  ;;  %v7892_v23 = vld [vmem:[#allocation32] ss:$0 sm:$0xff] }
0x1d42   :  { %6668 = vrot.lane.b32.xlu1 %v10378_v16, %s9460_s7 }
0x1db7   :  { %v6626_v60 = vpop.xlane.xlu0 %6625 }
0x1db8   :  { %v6636_v0 = vsub.f32 %v6399_v57, %v6626_v60 }
0x1dba   :  { %v6640_v14 = vmul.f32 1.442695, %v6636_v0  ;;  %v6629_v15 = vpop.xlane.xlu1 %6628 }
0x1dbb   :  { %v6637_v2 = vsub.f32 %v6473_v36, %v6629_v15  ;;  %v6632_v24 = vpop.xlane.xlu0 %6631 }
0x1dbc   :  { %8825 = vpow2.f32 %v6640_v14  ;;  %v6638_v58 = vsub.f32 %v6547_v1, %v6632_v24 }
0x1dbd   :  { %v6642_v18 = vmul.f32 1.442695, %v6637_v2 }
0x1dbe   :  { %v6644_v19 = vmul.f32 1.442695, %v6638_v58  ;;  %v6669_v22 = vpop.permute.xlu1 %6668 }
0x1dbf   :  { %8827 = vpow2.f32 %v6642_v18  ;;  %v6635_v55 = vpop.xlane.xlu0 %6634  ;;  %8564 = vmatpush3.msra.mxu0 %v6669_v22 }
0x1dc0   :  { %8829 = vpow2.f32 %v6644_v19  ;;  %v6639_v12 = vsub.f32 %v6621_v26, %v6635_v55  ;;  %8573 = vmatprep.subr.mxu0 %v9455_v11  ;;  %v7891_v26 = vld [vmem:[#allocation31] ss:$0 sm:$0xff] }
0x1dc2   :  { %v6646_v27 = vmul.f32 1.442695, %v6639_v12 }
0x1dc4   :  { %8831 = vpow2.f32 %v6646_v27 }
0x1dc9   :  { %v8826_v16 = vpop.eup %8825 }
0x1dca   :  { %v6648_v28 = vsel %vm804_vm5, %v8826_v16, 0.0 }
0x1dcb   :  { %6649 = vadd.xlane.f32.xlu1 %v6648_v28 }
0x1dcc   :  { %v8828_v35 = vpop.eup %8827 }
0x1dcd   :  { %v8830_v47 = vpop.eup %8829  ;;  %v6651_v32 = vsel %vm804_vm5, %v8828_v35, 0.0 }
0x1dce   :  { %6652 = vadd.xlane.f32.xlu0 %v6651_v32  ;;  %v6654_v49 = vsel %vm804_vm5, %v8830_v47, 0.0 }
0x1dcf   :  { %6655 = vadd.xlane.f32.xlu1 %v6654_v49 }
0x1dd1   :  { %v8832_v39 = vpop.eup %8831 }
0x1dd2   :  { %v6657_v38 = vsel %vm804_vm5, %v8832_v39, 0.0 }
0x1dd3   :  { %6658 = vadd.xlane.f32.xlu0 %v6657_v38  ;;  %v528_v38 = vld [vmem:[%s10700_s20 + $0x18] sm:$0xff] }
0x1de0   :  { %6820 = vrot.lane.b32.xlu1 %v10487_v29, %s9460_s7 }
0x1de4   :  { %6896 = vrot.lane.b32.xlu1 %v10501_v3, %s9460_s7 }
0x1de9   :  { %6744 = vrot.lane.b32.xlu0 %v10482_v52, %s9460_s7 }
0x1e08   :  { %7278 = vadd.xlane.f32.xlu0 %v7277_v7  ;;  %v537_v7 = vld [vmem:[%s10701_s22 + $0x38] sm:$0xff] }
0x1e54   :  { %v6650_v20 = vpop.xlane.xlu1 %6649 }
0x1e55   :  { %8833 = vrcp.f32 %v6650_v20  ;;  %v536_v20 = vld [vmem:[%s10701_s22 + $0x30] sm:$0xff] }
0x1e57   :  { %v6653_v29 = vpop.xlane.xlu0 %6652 }
0x1e58   :  { %v6656_v10 = vpop.xlane.xlu1 %6655  ;;  %8835 = vrcp.f32 %v6653_v29  ;;  %v535_v29 = vld [vmem:[%s10701_s22 + $0x28] sm:$0xff] }
0x1e59   :  { %8837 = vrcp.f32 %v6656_v10  ;;  %v534_v10 = vld [vmem:[%s10701_s22 + $0x20] sm:$0xff] }
0x1e5c   :  { %v6659_v3 = vpop.xlane.xlu0 %6658  ;;  %v6821_v42 = vpop.permute.xlu1 %6820 }
0x1e5d   :  { %8839 = vrcp.f32 %v6659_v3 }
0x1e60   :  { %v6745_v52 = vpop.permute.xlu0 %6744  ;;  %v6897_v48 = vpop.permute.xlu1 %6896 }
0x1e61   :  { %8569 = vmatpush3.msra.mxu1 %v6745_v52 }
0x1e62   :  { %v8834_v46 = vpop.eup %8833  ;;  %8578 = vmatprep.subr.mxu1 %v9455_v11 }
0x1e63   :  { %v6664_v17 = vmul.f32 %v8834_v46, %v8826_v16 }
0x1e65   :  { %v8836_v50 = vpop.eup %8835  ;;  %8566 = vmatmul.mubr.msk.f32.vlgmr.msra.gmra.mxu0 %vm804_vm5, %v6664_v17 }
0x1e66   :  { %v8838_v45 = vpop.eup %8837  ;;  %8574 = vmatpush3.msra.mxu0 %v6821_v42  ;;  %8575 = vmatprep.mubr.msk.f32.mxu0 %vm9457_vm4, %v9455_v11  ;;  %v6665_v6 = vmul.f32 %v8836_v50, %v8828_v35 }
0x1e67   :  { %v6666_v31 = vmul.f32 %v8838_v45, %v8830_v47  ;;  %8583 = vmatprep.subr.mxu0 %v9455_v11 }
0x1e68   :  { %8571 = vmatmul.mubr.msk.f32.vlgmr.msra.gmra.mxu1 %vm804_vm5, %v6665_v6  ;;  %v533_v6 = vld [vmem:[%s10701_s22 + $0x18] sm:$0xff] }
0x1e69   :  { %8576 = vmatmul.mubr.msk.f32.vlgmr.msra.gmra.mxu0 %vm804_vm5, %v6666_v31  ;;  %8579 = vmatpush3.msra.mxu1 %v6897_v48  ;;  %v532_v31 = vld [vmem:[%s10701_s22 + $0x10] sm:$0xff]  ;;  %v531_v48 = vld [vmem:[%s10701_s22 + $0x8] sm:$0xff] }
0x1e6a   :  { %v8840_v37 = vpop.eup %8839  ;;  %8580 = vmatprep.mubr.msk.f32.mxu1 %vm9457_vm4, %v9455_v11  ;;  %8584 = vmatpush3.msra.mxu0 %v10455_v25 }
0x1e6b   :  { %v6667_v8 = vmul.f32 %v8840_v37, %v8832_v39  ;;  %8585 = vmatprep.mubr.msk.f32.mxu0 %vm9457_vm4, %v9455_v11  ;;  %8588 = vmatprep.subr.mxu1 %v9455_v11  ;;  %v530_v37 = vld [vmem:[%s10701_s22] sm:$0xff] }
0x1e6c   :  { %8593 = vmatprep.subr.mxu0 %v9455_v11 }
0x1e6d   :  { %8581 = vmatmul.mubr.msk.f32.vlgmr.msra.gmra.mxu1 %vm804_vm5, %v6667_v8  ;;  %v7893_v8 = vld [vmem:[#allocation34] ss:$0 sm:$0xff] }
0x1e6e   :  { %8589 = vmatpush3.msra.mxu1 %v10463_v30  ;;  %8590 = vmatprep.mubr.msk.f32.mxu1 %vm9457_vm4, %v9455_v11 }
0x1e6f   :  { %8598 = vmatprep.subr.mxu1 %v9455_v11 }
0x1e91   :  { %v7279_v43 = vpop.xlane.xlu0 %7278 }
0x1e92   :  { %v7283_v57 = vmul.f32 0.03125, %v7279_v43 }
0x1e94   :  { %v7285_v25 = vsub.f32 %v10552_v5, %v7283_v57 }
0x1e96   :  { %v7287_v59 = vmul.f32 %v7285_v25, %v7285_v25 }
0x1e98   :  { %v7289_v33 = vsel %vm660_vm3, %v7287_v59, 0.0 }
0x1e99   :  { %7290 = vadd.xlane.f32.xlu0 %v7289_v33 }
0x1f22   :  { %v7291_v21 = vpop.xlane.xlu0 %7290 }
0x1f23   :  { %v7295_v44 = vmul.f32 0.03125, %v7291_v21 }
0x1f25   :  { %v7297_v36 = vadd.f32 1e-05, %v7295_v44  ;;  %v6740_v51 = vpop.f32.mrf.mxu0  ;;  %v7898_v44 = vld [vmem:[#allocation35] ss:$0 sm:$0xff] }
0x1f26   :  { %8586 = vmatmul.mubr.msk.f32.vlgmr.msra.gmra.mxu0 %vm804_vm5, %v6740_v51 }
0x1f27   :  { %8841 = vrsqrt.f32 %v7297_v36  ;;  %v8567_v30 = vpop.f32.mrf.mxu0  ;;  %8594 = vmatpush3.msra.mxu0 %v10475_v34  ;;  %8595 = vmatprep.mubr.msk.f32.mxu0 %vm9457_vm4, %v9455_v11 }
0x1f28   :  { %v6816_v1 = vpop.f32.mrf.mxu1  ;;  %8603 = vmatprep.subr.mxu0 %v528_v38 }
0x1f29   :  { %v6892_v53 = vpop.f32.mrf.mxu0  ;;  %8591 = vmatmul.mubr.msk.f32.vlgmr.msra.gmra.mxu1 %vm804_vm5, %v6816_v1 }
0x1f2a   :  { %8596 = vmatmul.mubr.msk.f32.vlgmr.msra.gmra.mxu0 %vm804_vm5, %v6892_v53  ;;  %v8572_v54 = vpop.f32.mrf.mxu1  ;;  %8599 = vmatpush3.msra.mxu1 %v10485_v61 }
0x1f2b   :  { %v8577_v56 = vpop.f32.mrf.mxu0  ;;  %8600 = vmatprep.mubr.msk.f32.mxu1 %vm9457_vm4, %v9455_v11  ;;  %8604 = vmatpush3.msra.mxu0 %v528_v38 }
0x1f2c   :  { %8614 = vmatprep.subr.mxu1 %v537_v7 }
0x1f2d   :  { %v6968_v62 = vpop.f32.mrf.mxu1 }
0x1f2e   :  { %8601 = vmatmul.mubr.msk.f32.vlgmr.msra.gmra.mxu1 %vm804_vm5, %v6968_v62 }
0x1f2f   :  { %v8582_v34 = vpop.f32.mrf.mxu1  ;;  %8615 = vmatpush3.msra.mxu1 %v537_v7 }
0x1f30   :  { %8616 = vmatprep.subr.mxu1 %v536_v20 }
0x1f31   :  { %8617 = vmatpush3.msra.mxu1 %v536_v20 }
0x1f32   :  { %8618 = vmatprep.subr.mxu1 %v535_v29 }
0x1f33   :  { %8619 = vmatpush3.msra.mxu1 %v535_v29 }
0x1f34   :  { %v8842_v4 = vpop.eup %8841  ;;  %8620 = vmatprep.subr.mxu1 %v534_v10 }
0x1f35   :  { %v7301_v63 = vmul.f32 %v8842_v4, %v7285_v25  ;;  %8621 = vmatpush3.msra.mxu1 %v534_v10 }
0x1f36   :  { %8622 = vmatprep.subr.mxu1 %v533_v6 }
0x1f37   :  { %v7309_v60 = vmul.f32 %v7891_v26, %v7301_v63  ;;  %8623 = vmatpush3.msra.mxu1 %v533_v6 }
0x1f38   :  { %8624 = vmatprep.subr.mxu1 %v532_v31 }
0x1f39   :  { %v7317_v0 = vadd.f32 %v7892_v23, %v7309_v60  ;;  %8625 = vmatpush3.msra.mxu1 %v532_v31 }
0x1f3a   :  { %8626 = vmatprep.subr.mxu1 %v531_v48 }
0x1f3b   :  { %8611 = vmatprep.mubr.msk.f32.mxu0 %vm660_vm3, %v7317_v0  ;;  %8627 = vmatpush3.msra.mxu1 %v531_v48 }
0x1f3c   :  { %8628 = vmatprep.subr.mxu1 %v530_v37 }
0x1f3d   :  { %8629 = vmatpush3.msra.mxu1 %v530_v37 }
0x1fe6   :  { %v7041_v14 = vpop.f32.mrf.mxu0 }
0x1fe8   :  { %v8587_v15 = vpop.f32.mrf.mxu0 }
0x1fe9   :  { %v7114_v2 = vpop.f32.mrf.mxu1 }
0x1fea   :  { %v7264_v61 = vadd.f32 %v7114_v2, %v7041_v14  ;;  %v7187_v24 = vpop.f32.mrf.mxu0  ;;  %v544_v2 = vld [vmem:[%s9692_s5 + $0x18] sm:$0xff] }
0x1feb   :  { %v8592_v58 = vpop.f32.mrf.mxu1 }
0x1fec   :  { %v7265_v18 = vadd.f32 %v7264_v61, %v7187_v24  ;;  %v8597_v19 = vpop.f32.mrf.mxu0  ;;  %v543_v61 = vld [vmem:[%s9692_s5 + $0x10] sm:$0xff]  ;;  %v542_v24 = vld [vmem:[%s9692_s5 + $0x8] sm:$0xff]  ;;  %v541_v58 = vld [vmem:[%s9692_s5] sm:$0xff]  ;;  %s10702_s5 = sld [smem:[#allocation57_spill]] }
0x1fee   :  { %v7260_v22 = vpop.f32.mrf.mxu1 }
0x1fef   :  { %v7266_v55 = vadd.f32 %v7265_v18, %v7260_v22 }
0x1ff0   :  { %v8602_v12 = vpop.f32.mrf.mxu1 }
0x1ff1   :  { %v7268_v27 = vadd.f32 %v7266_v55, %v10353_v9  ;;  %v527_v9 = vld [vmem:[%s10700_s20 + $0x10] sm:$0xff] }
0x1ff2   :  { %8605 = vmatprep.subr.mxu0 %v527_v9  ;;  %v7645_v6 = vld [vmem:[%s10702_s5] sm:$0xff]  ;;  %v7646_v31 = vld [vmem:[%s10702_s5 + $0x8] sm:$0xff] }
0x1ff3   :  { %v10590_v16 = vadd.f32 %v10549_v41, %v7268_v27  ;;  %8606 = vmatpush3.msra.mxu0 %v527_v9  ;;  %v525_v41 = vld [vmem:[%s10700_s20] sm:$0xff]  ;;  %vm7656_vm12 = vcmp.ne.s32.totalorder %v7646_v31, 1  ;;  %vm7655_vm13 = vcmp.ne.s32.totalorder %v7645_v6, 1 }
0x1ff4   :  { %8607 = vmatprep.subr.mxu0 %v526_v40 }
0x1ff5   :  { %v7280_v28 = vsel %vm660_vm3, %v10590_v16, 0.0  ;;  %8608 = vmatpush3.msra.mxu0 %v526_v40 }
0x1ff6   :  { %7281 = vadd.xlane.f32.xlu1 %v7280_v28  ;;  %8609 = vmatprep.subr.mxu0 %v525_v41  ;;  %v7899_v28 = vld [vmem:[#allocation37] ss:$0 sm:$0xff] }
0x1ff7   :  { %8610 = vmatpush3.msra.mxu0 %v525_v41 }
0x1ff8   :  { %8633 = vmatprep.subr.mxu0 %v544_v2 }
0x207f   :  { %v7282_v35 = vpop.xlane.xlu1 %7281 }
0x2080   :  { %v7284_v47 = vmul.f32 0.03125, %v7282_v35 }
0x2082   :  { %v7286_v32 = vsub.f32 %v10590_v16, %v7284_v47 }
0x2084   :  { %v7288_v49 = vmul.f32 %v7286_v32, %v7286_v32 }
0x2086   :  { %v7292_v39 = vsel %vm660_vm3, %v7288_v49, 0.0 }
0x2087   :  { %7293 = vadd.xlane.f32.xlu0 %v7292_v39  ;;  %v7900_v39 = vld [vmem:[#allocation38] ss:$0 sm:$0xff] }
0x2110   :  { %v7294_v3 = vpop.xlane.xlu0 %7293 }
0x2111   :  { %v7296_v52 = vmul.f32 0.03125, %v7294_v3 }
0x2113   :  { %v7298_v46 = vadd.f32 1e-05, %v7296_v52 }
0x2115   :  { %8843 = vrsqrt.f32 %v7298_v46 }
0x2122   :  { %v8844_v42 = vpop.eup %8843 }
0x2123   :  { %v7302_v17 = vmul.f32 %v8844_v42, %v7286_v32 }
0x2125   :  { %v7310_v50 = vmul.f32 %v7891_v26, %v7302_v17 }
0x2127   :  { %v7318_v45 = vadd.f32 %v7892_v23, %v7310_v50 }
0x2129   :  { %8612 = vmatmul.mubr.msk.f32.vlgmr.msra.gmra.mxu0 %vm660_vm3, %v7318_v45 }
0x212a   :  { %8634 = vmatpush3.msra.mxu0 %v544_v2 }
0x212b   :  { %8635 = vmatprep.subr.mxu0 %v543_v61 }
0x212c   :  { %8636 = vmatpush3.msra.mxu0 %v543_v61 }
0x212d   :  { %8637 = vmatprep.subr.mxu0 %v542_v24 }
0x212e   :  { %8638 = vmatpush3.msra.mxu0 %v542_v24 }
0x212f   :  { %8639 = vmatprep.subr.mxu0 %v541_v58 }
0x2130   :  { %8640 = vmatpush3.msra.mxu0 %v541_v58 }
0x21e9   :  { %v8613_v43 = vpop.f32.mrf.mxu0 }
0x21ea   :  { %v7403_v57 = vadd.f32 %v8613_v43, %v7893_v8 }
0x21eb   :  { %v7397_v25 = vpop.f32.mrf.mxu0 }
0x21ec   :  { %v7398_v59 = vadd.f32 %v7893_v8, %v7397_v25  ;;  %v7407_v21 = vmax.f32 %v7403_v57, 0.0 }
0x21ee   :  { %v7406_v33 = vmax.f32 %v7398_v59, 0.0 }
0x21f0   :  { %8630 = vmatprep.mubr.msk.f32.mxu1 %vm572_vm0, %v7406_v33 }
0x21f1   :  { %8631 = vmatmul.mubr.msk.f32.vlgmr.msra.gmra.mxu1 %vm572_vm0, %v7407_v21 }
0x22b1   :  { %v8632_v36 = vpop.f32.mrf.mxu1 }
0x22b2   :  { %v7490_v51 = vadd.f32 %v8632_v36, %v10590_v16 }
0x22b3   :  { %v7480_v30 = vpop.f32.mrf.mxu1 }
0x22b4   :  { %v7498_v1 = vadd.f32 %v7898_v44, %v7490_v51  ;;  %v7489_v53 = vadd.f32 %v7480_v30, %v10552_v5  ;;  %v7904_v30 = vsel %vm7656_vm12, 1.0, %v9455_v11 }
0x22b6   :  { %v7497_v54 = vadd.f32 %v7898_v44, %v7489_v53  ;;  %v7502_v56 = vsel %vm660_vm3, %v7498_v1, 0.0  ;;  %v7903_v53 = vsel %vm7655_vm13, 1.0, %v9455_v11 }
0x22b7   :  { %7503 = vadd.xlane.f32.xlu0 %v7502_v56 }
0x22b8   :  { %v7499_v62 = vsel %vm660_vm3, %v7497_v54, 0.0 }
0x22b9   :  { %7500 = vadd.xlane.f32.xlu1 %v7499_v62 }
0x2340   :  { %v7504_v34 = vpop.xlane.xlu0 %7503 }
0x2341   :  { %v7506_v4 = vmul.f32 0.03125, %v7504_v34 }
0x2342   :  { %v7501_v26 = vpop.xlane.xlu1 %7500 }
0x2343   :  { %v7508_v63 = vsub.f32 %v7498_v1, %v7506_v4  ;;  %v7505_v23 = vmul.f32 0.03125, %v7501_v26 }
0x2345   :  { %v7507_v60 = vsub.f32 %v7497_v54, %v7505_v23  ;;  %v7510_v0 = vmul.f32 %v7508_v63, %v7508_v63 }
0x2347   :  { %v7514_v5 = vsel %vm660_vm3, %v7510_v0, 0.0  ;;  %v7509_v14 = vmul.f32 %v7507_v60, %v7507_v60 }
0x2348   :  { %7515 = vadd.xlane.f32.xlu0 %v7514_v5 }
0x2349   :  { %v7511_v15 = vsel %vm660_vm3, %v7509_v14, 0.0 }
0x234a   :  { %7512 = vadd.xlane.f32.xlu1 %v7511_v15 }
0x23d1   :  { %v7516_v18 = vpop.xlane.xlu0 %7515 }
0x23d2   :  { %v7518_v19 = vmul.f32 0.03125, %v7516_v18 }
0x23d3   :  { %v7513_v22 = vpop.xlane.xlu1 %7512 }
0x23d4   :  { %v7520_v55 = vadd.f32 1e-05, %v7518_v19  ;;  %v7517_v12 = vmul.f32 0.03125, %v7513_v22 }
0x23d6   :  { %8845 = vrsqrt.f32 %v7520_v55  ;;  %v7519_v27 = vadd.f32 1e-05, %v7517_v12 }
0x23d8   :  { %8847 = vrsqrt.f32 %v7519_v27 }
0x23e3   :  { %v8846_v16 = vpop.eup %8845 }
0x23e4   :  { %v7524_v35 = vmul.f32 %v8846_v16, %v7508_v63 }
0x23e5   :  { %v8848_v47 = vpop.eup %8847 }
0x23e6   :  { %v7523_v32 = vmul.f32 %v8848_v47, %v7507_v60  ;;  %v7532_v49 = vmul.f32 %v7899_v28, %v7524_v35 }
0x23e8   :  { %v7531_v38 = vmul.f32 %v7899_v28, %v7523_v32  ;;  %v7540_v40 = vadd.f32 %v7900_v39, %v7532_v49 }
0x23ea   :  { %v7539_v9 = vadd.f32 %v7900_v39, %v7531_v38 }
0x23ec   :  { %8641 = vmatprep.mubr.msk.f32.mxu0 %vm660_vm3, %v7539_v9 }
0x23ed   :  { %8642 = vmatmul.mubr.msk.f32.vlgmr.msra.gmra.mxu0 %vm660_vm3, %v7540_v40 }
0x24ad   :  { %v8643_v41 = vpop.f32.mrf.mxu0 }
0x24ae   :  { %v7624_v7 = vsel %vm7622_vm9, %v8643_v41, -1e+09 }
0x24af   :  { %7627 = vmax.xlane.f32.xlu0 %v7624_v7  ;;  %v7613_v20 = vpop.f32.mrf.mxu0 }
0x24b0   :  { %v7623_v29 = vsel %vm7622_vm9, %v7613_v20, -1e+09 }
0x24b1   :  { %7625 = vmax.xlane.f32.xlu1 %v7623_v29 }
0x2538   :  { %v7628_v10 = vpop.xlane.xlu0 %7627 }
0x2539   :  { %v7630_v3 = vsub.f32 %v7624_v7, %v7628_v10 }
0x253a   :  { %v7626_v52 = vpop.xlane.xlu1 %7625 }
0x253b   :  { %v7633_v46 = vmul.f32 1.442695, %v7630_v3  ;;  %v7629_v42 = vsub.f32 %v7623_v29, %v7626_v52 }
0x253d   :  { %8849 = vpow2.f32 %v7633_v46  ;;  %v7631_v17 = vmul.f32 1.442695, %v7629_v42 }
0x253f   :  { %8851 = vpow2.f32 %v7631_v17 }
0x254a   :  { %v8850_v50 = vpop.eup %8849 }
0x254b   :  { %7637 = vadd.xlane.f32.xlu0 %v8850_v50 }
0x254c   :  { %v8852_v45 = vpop.eup %8851 }
0x254d   :  { %7635 = vadd.xlane.f32.xlu1 %v8852_v45 }
0x255e   :  { %7648 = vperm.xlu1 %8724, %v7645_v6  }
0x2561   :  { %7651 = vperm.xlu0 %8723, %v7646_v31  }
0x25d4   :  { %v7638_v48 = vpop.xlane.xlu0 %7637 }
0x25d5   :  { %8853 = vlog2.f32 %v7638_v48 }
0x25d6   :  { %v7636_v37 = vpop.xlane.xlu1 %7635 }
0x25d7   :  { %8855 = vlog2.f32 %v7636_v37 }
0x25da   :  { %v7649_v33 = vpop.permute.xlu1 %7648 }
0x25db   :  { %vm7653_vm11 = vcmp.eq.s32.totalorder %v9767_v13, %v7649_v33 }
0x25dc   :  { %v7652_v57 = vpop.permute.xlu0 %7651 }
0x25dd   :  { %vm7654_vm10 = vcmp.eq.s32.totalorder %v9767_v13, %v7652_v57 }
0x25e2   :  { %v8854_v8 = vpop.eup %8853 }
0x25e3   :  { %v7642_v43 = vmul.f32 0.6931472, %v8854_v8 }
0x25e4   :  { %v8856_v25 = vpop.eup %8855 }
0x25e5   :  { %v7640_v59 = vmul.f32 0.6931472, %v8856_v25  ;;  %v7644_v21 = vsub.f32 %v7630_v3, %v7642_v43 }
0x25e7   :  { %v7643_v44 = vsub.f32 %v7629_v42, %v7640_v59  ;;  %v7662_v36 = vsel %vm7654_vm10, %v7644_v21, 0.0 }
0x25e8   :  { %7665 = vadd.xlane.f32.xlu0 %v7662_v36 }
0x25e9   :  { %v7661_v51 = vsel %vm7653_vm11, %v7643_v44, 0.0 }
0x25ea   :  { %7663 = vadd.xlane.f32.xlu1 %v7661_v51 }
0x2671   :  { %v7666_v1 = vpop.xlane.xlu0 %7665 }
0x2672   :  { %v7668_v54 = vmul.f32 %v7904_v30, %v7666_v1 }
0x2673   :  { %v7664_v56 = vpop.xlane.xlu1 %7663 }
0x2674   :  { %v7667_v62 = vmul.f32 %v7903_v53, %v7664_v56  ;;  %v7671_v34 = vsel %vm7669_vm14, %v7668_v54, 0.0 }
0x2676   :  { %v7670_v4 = vsel %vm7669_vm14, %v7667_v62, 0.0 }
0x2677   :  { %v7672_v26 = vadd.f32 %v7671_v34, %v7670_v4 }
0x2679   :  { %v7673_v63 = vrot.slane %v7672_v26, 4 }
0x267b   :  { %v7674_v23 = vadd.f32 %v7673_v63, %v7672_v26 }
0x267d   :  { %v7675_v13 = vrot.slane %v7674_v23, 2 }
0x267f   :  { %v7676_v60 = vadd.f32 %v7675_v13, %v7674_v23 }
0x2681   :  { %v7677_v0 = vrot.slane %v7676_v60, 1 }
0x2683   :  { %v7678_v5 = vadd.f32 %v7677_v0, %v7676_v60 }
0x2685   :  { %v7679_v14 = vsub.f32 0.0, %v7678_v5 }
0x2687   :  { %7681 = vst.msk [vmem:[#allocation40] sm:$0x1] %vm7680_vm15, %v7679_v14 }
0x2688   :  { %9348 = shalt.err (!%p9345_p12)
}
0x2689   :  { %7691 = dma.vmem_to_hbm [thread:$0]  %s7689_s19, 16, %s9697_s4, [#allocation4]  }
0x268a   :  { %9383 = dma.done.wait [#allocation4], 16  }
0x268b   :  { %9384 = vsyncadd [#allocation4], 4294967280 }
0x268c   :  { %7695 = vsyncpa [#allocation3], 1 }
0x268d   :  { %7696 = vsyncpa [#allocation6], 1 }
0x268e   :  { %7697 = vsyncpa [#allocation9], 1 }
0x268f   :  { %7698 = vsyncpa [#allocation12], 1 }
0x2690   :  { %7699 = vsyncpa [#allocation15], 1 }
0x2691   :  { %7700 = vsyncpa [#allocation18], 1 }
0x2692   :  { %7701 = vsyncpa [#allocation21], 1 }
0x2693   :  { %7702 = vsyncpa [#allocation24], 1 }
0x2694   :  { %7703 = vsyncpa [#allocation27], 1 }
0x2695   :  { %7704 = vsyncpa [#allocation30], 1 }
0x2696   :  { %7705 = vsyncpa [#allocation33], 1 }
0x2697   :  { %7706 = vsyncpa [#allocation36], 1 }
0x2698   :  { %7707 = vsyncpa [#allocation39], 1 }
0x2699   :  { %7708 = vsyncpa [#allocation4], 1 }

</bundles_post_ra>
